<compile_context>
chip_gen: v7x
topology: tpu7x:2x2x1
jax: 0.10.0
libtpu: 0.0.40
codegen_flags: <defaults>
</compile_context>

<pallas_src>
import functools

import jax
import jax.numpy as jnp
from jax import lax
from jax.experimental import pallas as pl
from jax.experimental.pallas import tpu as pltpu

# ----------------------------- dimensions ------------------------------------
B = 2            # batch
C_IN = 3         # input channels (RGB MiniWorld frames)
H, W = 60, 80    # MiniWorld observation is 80x60 -> (H, W) = (60, 80)
CONV_DIM = 32    # channels of every conv layer (fixed by the module)
EMBED_DIM = 32   # final embedding dim
FLAT_DIM = 32 * 5 * 7   # = 1120, hard-coded by nn.Linear(32 * 7 * 5, embed_dim)


# ------------------------------- kernel ---------------------------------------
def _gemm_bias_act_kernel(x_ref, w_ref, b_ref, o_ref, *, scale, relu):
  """o = act((scale * x) @ w + b) for one row tile; runs on the MXU."""
  x = x_ref[...]
  if scale != 1.0:                       # static: fused /255 for the first conv
    x = x * jnp.float32(scale)
  acc = jnp.dot(x, w_ref[...], preferred_element_type=jnp.float32) + b_ref[...]
  if relu:
    acc = jnp.maximum(acc, 0.0)
  o_ref[...] = acc                       # single lane-dense store per tile


def _row_tile(m):
  # Split large-M GEMMs into two row tiles so the "parallel" grid axis can be
  # sharded across TensorCores (v7x megacore); small GEMMs stay single-shot.
  if m >= 1024 and m % 16 == 0:
    return m // 2
  return m


def gemm_bias_act(x, w, b, *, scale=1.0, relu=True):
  """Pallas GEMM: act((scale*x) @ w + b).  x:(M,K)  w:(K,N)  b:(1,N) -> (M,N)."""
  m, k = x.shape
  k2, n = w.shape
  assert k == k2, (k, k2)
  tm = _row_tile(m)
  kernel = functools.partial(_gemm_bias_act_kernel, scale=scale, relu=relu)
  return pl.pallas_call(
      kernel,
      out_shape=jax.ShapeDtypeStruct((m, n), jnp.float32),
      grid=(m // tm,),
      in_specs=[
          pl.BlockSpec((tm, k), lambda i: (i, 0)),
          pl.BlockSpec((k, n), lambda i: (0, 0)),
          pl.BlockSpec((1, n), lambda i: (0, 0)),
      ],
      out_specs=pl.BlockSpec((tm, n), lambda i: (i, 0)),
      compiler_params=pltpu.CompilerParams(
          dimension_semantics=("parallel",)),
  )(x, w, b)


# ------------------------- wrapper-side layout helpers -------------------------
def _extract_patches(x_nhwc, k, s):
  """im2col: (B,H,W,C) -> ((B*OH*OW, k*k*C), OH, OW); patch order (ky, kx, c)."""
  b, h, w, c = x_nhwc.shape
  oh = (h - k) // s + 1
  ow = (w - k) // s + 1
  cols = []
  for ky in range(k):
    for kx in range(k):
      cols.append(lax.slice(
          x_nhwc,
          (0, ky, kx, 0),
          (b, ky + s * (oh - 1) + 1, kx + s * (ow - 1) + 1, c),
          (1, s, s, 1)))                                # (B, OH, OW, C)
  patches = jnp.stack(cols, axis=3)                     # (B, OH, OW, k*k, C)
  return patches.reshape(b * oh * ow, k * k * c), oh, ow


def _conv_w_to_gemm(w_oihw):
  """(Cout, Cin, kh, kw) -> (kh*kw*Cin, Cout), matching _extract_patches order."""
  co, ci, kh, kw = w_oihw.shape
  return jnp.transpose(w_oihw, (2, 3, 1, 0)).reshape(kh * kw * ci, co)


# ------------------------------- forward ---------------------------------------
@jax.jit
def miniworld_forward(obs, params):
  """obs: (B, C, H, W) float32 pixels in [0, 255].  Returns (B, EMBED_DIM)."""
  b = obs.shape[0]
  x = jnp.transpose(obs, (0, 2, 3, 1))                  # NCHW -> NHWC (layout only)

  # conv1 + ReLU (the /255 normalization is fused into the kernel).
  p1, oh1, ow1 = _extract_patches(x, 5, 2)
  h1 = gemm_bias_act(p1, _conv_w_to_gemm(params["w1"]), params["b1"][None, :],
                     scale=1.0 / 255.0, relu=True)
  h1 = h1.reshape(b, oh1, ow1, CONV_DIM)

  # conv2 + ReLU
  p2, oh2, ow2 = _extract_patches(h1, 5, 2)
  h2 = gemm_bias_act(p2, _conv_w_to_gemm(params["w2"]), params["b2"][None, :],
                     relu=True)
  h2 = h2.reshape(b, oh2, ow2, CONV_DIM)

  # conv3 + ReLU
  p3, oh3, ow3 = _extract_patches(h2, 4, 2)
  h3 = gemm_bias_act(p3, _conv_w_to_gemm(params["w3"]), params["b3"][None, :],
                     relu=True)                         # (B*OH3*OW3, 32)

  # Flatten + Linear.  PyTorch flattens NCHW as (c, h, w); our rows are in
  # (h, w, c) order, so permute the FC weight once instead of the activations.
  flat = h3.reshape(b, oh3 * ow3 * CONV_DIM)            # (B, 1120), (h, w, c) order
  e = params["w_fc"].shape[0]
  w_fc = jnp.transpose(params["w_fc"].reshape(e, CONV_DIM, oh3, ow3),
                       (2, 3, 1, 0)).reshape(oh3 * ow3 * CONV_DIM, e)
  return gemm_bias_act(flat, w_fc, params["b_fc"][None, :], relu=False)


# ---------------------------- pure-JAX reference --------------------------------
def miniworld_reference(obs, params):
  """Mirrors the PyTorch module with XLA ops (NCHW convs + torch-style flatten)."""
  dn = ("NCHW", "OIHW", "NCHW")
  hp = lax.Precision.HIGHEST
  x = obs / 255.0
  for wk, bk in (("w1", "b1"), ("w2", "b2"), ("w3", "b3")):
    x = lax.conv_general_dilated(x, params[wk], window_strides=(2, 2),
                                 padding="VALID", dimension_numbers=dn,
                                 precision=hp)
    x = jnp.maximum(x + params[bk][None, :, None, None], 0.0)
  flat = x.reshape(x.shape[0], -1)                      # Flatten on NCHW
  return jnp.dot(flat, params["w_fc"].T, precision=hp) + params["b_fc"][None, :]


# ---------------------------------- main -----------------------------------------
def init_params(key):
  ks = jax.random.split(key, 8)
  s = 0.05
  return {
      "w1": s * jax.random.normal(ks[0], (CONV_DIM, C_IN, 5, 5), jnp.float32),
      "b1": s * jax.random.normal(ks[1], (CONV_DIM,), jnp.float32),
      "w2": s * jax.random.normal(ks[2], (CONV_DIM, CONV_DIM, 5, 5), jnp.float32),
      "b2": s * jax.random.normal(ks[3], (CONV_DIM,), jnp.float32),
      "w3": s * jax.random.normal(ks[4], (CONV_DIM, CONV_DIM, 4, 4), jnp.float32),
      "b3": s * jax.random.normal(ks[5], (CONV_DIM,), jnp.float32),
      "w_fc": s * jax.random.normal(ks[6], (EMBED_DIM, FLAT_DIM), jnp.float32),
      "b_fc": s * jax.random.normal(ks[7], (EMBED_DIM,), jnp.float32),
  }


if __name__ == "__main__":
  key = jax.random.PRNGKey(0)
  k_param, k_obs = jax.random.split(key)

  params = init_params(k_param)
  obs = jax.random.uniform(k_obs, (B, C_IN, H, W), jnp.float32,
                           minval=0.0, maxval=255.0)

  out = miniworld_forward(obs, params)
  out = jax.block_until_ready(out)

  ref = miniworld_reference(obs, params)
  assert out.shape == (B, EMBED_DIM), out.shape
  max_err = float(jnp.max(jnp.abs(out - ref)))
  assert jnp.allclose(out, ref, atol=2e-3, rtol=2e-3), max_err

  print("KERNEL_OK")
</pallas_src>

<mosaic_0001>
module attributes {stable_mosaic.version = 11 : i64} {
  func.func @_gemm_bias_act_kernel(%arg0: i32, %arg1: memref<1064x75xf32, #tpu.memory_space<vmem>>, %arg2: memref<75x32xf32, #tpu.memory_space<vmem>>, %arg3: memref<1x32xf32, #tpu.memory_space<vmem>>, %arg4: memref<1064x32xf32, #tpu.memory_space<vmem>>) attributes {dimension_semantics = [#tpu.dimension_semantics<parallel>], iteration_bounds = array<i64: 2>, scalar_prefetch = 0 : i64, scratch_operands = 0 : i64, tpu.core_type = #tpu.core_type<tc>, window_params = [{transform_indices = @transform_0, window_bounds = array<i64: 1064, 75>}, {pipeline_mode = #tpu.pipeline_mode<synchronous>, transform_indices = @transform_1, window_bounds = array<i64: 75, 32>}, {pipeline_mode = #tpu.pipeline_mode<synchronous>, transform_indices = @transform_2, window_bounds = array<i64: 1, 32>}, {transform_indices = @transform_3, window_bounds = array<i64: 1064, 32>}]} {
    %c0 = arith.constant 0 : index
    %c0_0 = arith.constant 0 : index
    %0 = vector.load %arg1[%c0, %c0_0] : memref<1064x75xf32, #tpu.memory_space<vmem>>, vector<1064x75xf32>
    %cst = arith.constant 0.00392156886 : f32
    %1 = vector.broadcast %cst : f32 to vector<1064x75xf32>
    %2 = arith.mulf %0, %1 : vector<1064x75xf32>
    %c0_1 = arith.constant 0 : index
    %c0_2 = arith.constant 0 : index
    %3 = vector.load %arg2[%c0_1, %c0_2] : memref<75x32xf32, #tpu.memory_space<vmem>>, vector<75x32xf32>
    %cst_3 = arith.constant dense<0.000000e+00> : vector<1064x32xf32>
    %4 = tpu.matmul %2, %3, %cst_3 {dimension_numbers = #tpu.dot_dimension_numbers<[1], [0], [0], [1], [0, 0, 1, 1], [], []>} : vector<1064x75xf32>, vector<75x32xf32>, vector<1064x32xf32> -> vector<1064x32xf32>
    %c0_4 = arith.constant 0 : index
    %c0_5 = arith.constant 0 : index
    %5 = vector.load %arg3[%c0_4, %c0_5] : memref<1x32xf32, #tpu.memory_space<vmem>>, vector<1x32xf32>
    %6 = vector.broadcast %5 : vector<1x32xf32> to vector<1064x32xf32>
    %7 = arith.addf %4, %6 : vector<1064x32xf32>
    %cst_6 = arith.constant 0.000000e+00 : f32
    %8 = vector.broadcast %cst_6 : f32 to vector<1064x32xf32>
    %9 = arith.maximumf %7, %8 : vector<1064x32xf32>
    %c0_7 = arith.constant 0 : index
    %c0_8 = arith.constant 0 : index
    %10 = vector.load %arg4[%c0_7, %c0_8] : memref<1064x32xf32, #tpu.memory_space<vmem>>, vector<1064x32xf32>
    tpu.vector_store %arg4[%c0_7, %c0_8], %9 {strides = array<i32>} : memref<1064x32xf32, #tpu.memory_space<vmem>>, vector<1064x32xf32>,
    return
  }
  func.func @transform_0(%arg0: i32) -> (i32, i32) {
    %c0_i32 = arith.constant 0 : i32
    %c0_i32_0 = arith.constant 0 : i32
    return %arg0, %c0_i32 : i32, i32
  }
  func.func @transform_1(%arg0: i32) -> (i32, i32) {
    %c0_i32 = arith.constant 0 : i32
    %c0_i32_0 = arith.constant 0 : i32
    %c0_i32_1 = arith.constant 0 : i32
    return %c0_i32, %c0_i32_0 : i32, i32
  }
  func.func @transform_2(%arg0: i32) -> (i32, i32) {
    %c0_i32 = arith.constant 0 : i32
    %c0_i32_0 = arith.constant 0 : i32
    %c0_i32_1 = arith.constant 0 : i32
    return %c0_i32, %c0_i32_0 : i32, i32
  }
  func.func @transform_3(%arg0: i32) -> (i32, i32) {
    %c0_i32 = arith.constant 0 : i32
    %c0_i32_0 = arith.constant 0 : i32
    return %arg0, %c0_i32 : i32, i32
  }
}

module attributes {stable_mosaic.version = 11 : i64} {
  func.func @_gemm_bias_act_kernel(%arg0: i32, %arg1: memref<408x800xf32, #tpu.memory_space<vmem>>, %arg2: memref<800x32xf32, #tpu.memory_space<vmem>>, %arg3: memref<1x32xf32, #tpu.memory_space<vmem>>, %arg4: memref<408x32xf32, #tpu.memory_space<vmem>>) attributes {dimension_semantics = [#tpu.dimension_semantics<parallel>], iteration_bounds = array<i64: 1>, scalar_prefetch = 0 : i64, scratch_operands = 0 : i64, tpu.core_type = #tpu.core_type<tc>, window_params = [{transform_indices = @transform_0, window_bounds = array<i64: 408, 800>}, {pipeline_mode = #tpu.pipeline_mode<synchronous>, transform_indices = @transform_1, window_bounds = array<i64: 800, 32>}, {pipeline_mode = #tpu.pipeline_mode<synchronous>, transform_indices = @transform_2, window_bounds = array<i64: 1, 32>}, {transform_indices = @transform_3, window_bounds = array<i64: 408, 32>}]} {
    %c0 = arith.constant 0 : index
    %c0_0 = arith.constant 0 : index
    %0 = vector.load %arg1[%c0, %c0_0] : memref<408x800xf32, #tpu.memory_space<vmem>>, vector<408x800xf32>
    %c0_1 = arith.constant 0 : index
    %c0_2 = arith.constant 0 : index
    %1 = vector.load %arg2[%c0_1, %c0_2] : memref<800x32xf32, #tpu.memory_space<vmem>>, vector<800x32xf32>
    %cst = arith.constant dense<0.000000e+00> : vector<408x32xf32>
    %2 = tpu.matmul %0, %1, %cst {dimension_numbers = #tpu.dot_dimension_numbers<[1], [0], [0], [1], [0, 0, 1, 1], [], []>} : vector<408x800xf32>, vector<800x32xf32>, vector<408x32xf32> -> vector<408x32xf32>
    %c0_3 = arith.constant 0 : index
    %c0_4 = arith.constant 0 : index
    %3 = vector.load %arg3[%c0_3, %c0_4] : memref<1x32xf32, #tpu.memory_space<vmem>>, vector<1x32xf32>
    %4 = vector.broadcast %3 : vector<1x32xf32> to vector<408x32xf32>
    %5 = arith.addf %2, %4 : vector<408x32xf32>
    %cst_5 = arith.constant 0.000000e+00 : f32
    %6 = vector.broadcast %cst_5 : f32 to vector<408x32xf32>
    %7 = arith.maximumf %5, %6 : vector<408x32xf32>
    %c0_6 = arith.constant 0 : index
    %c0_7 = arith.constant 0 : index
    %8 = vector.load %arg4[%c0_6, %c0_7] : memref<408x32xf32, #tpu.memory_space<vmem>>, vector<408x32xf32>
    tpu.vector_store %arg4[%c0_6, %c0_7], %7 {strides = array<i32>} : memref<408x32xf32, #tpu.memory_space<vmem>>, vector<408x32xf32>,
    return
  }
  func.func @transform_0(%arg0: i32) -> (i32, i32) {
    %c0_i32 = arith.constant 0 : i32
    %c0_i32_0 = arith.constant 0 : i32
    return %arg0, %c0_i32 : i32, i32
  }
  func.func @transform_1(%arg0: i32) -> (i32, i32) {
    %c0_i32 = arith.constant 0 : i32
    %c0_i32_0 = arith.constant 0 : i32
    %c0_i32_1 = arith.constant 0 : i32
    return %c0_i32, %c0_i32_0 : i32, i32
  }
  func.func @transform_2(%arg0: i32) -> (i32, i32) {
    %c0_i32 = arith.constant 0 : i32
    %c0_i32_0 = arith.constant 0 : i32
    %c0_i32_1 = arith.constant 0 : i32
    return %c0_i32, %c0_i32_0 : i32, i32
  }
  func.func @transform_3(%arg0: i32) -> (i32, i32) {
    %c0_i32 = arith.constant 0 : i32
    %c0_i32_0 = arith.constant 0 : i32
    return %arg0, %c0_i32 : i32, i32
  }
}

module attributes {stable_mosaic.version = 11 : i64} {
  func.func @_gemm_bias_act_kernel(%arg0: i32, %arg1: memref<70x512xf32, #tpu.memory_space<vmem>>, %arg2: memref<512x32xf32, #tpu.memory_space<vmem>>, %arg3: memref<1x32xf32, #tpu.memory_space<vmem>>, %arg4: memref<70x32xf32, #tpu.memory_space<vmem>>) attributes {dimension_semantics = [#tpu.dimension_semantics<parallel>], iteration_bounds = array<i64: 1>, scalar_prefetch = 0 : i64, scratch_operands = 0 : i64, tpu.core_type = #tpu.core_type<tc>, window_params = [{transform_indices = @transform_0, window_bounds = array<i64: 70, 512>}, {pipeline_mode = #tpu.pipeline_mode<synchronous>, transform_indices = @transform_1, window_bounds = array<i64: 512, 32>}, {pipeline_mode = #tpu.pipeline_mode<synchronous>, transform_indices = @transform_2, window_bounds = array<i64: 1, 32>}, {transform_indices = @transform_3, window_bounds = array<i64: 70, 32>}]} {
    %c0 = arith.constant 0 : index
    %c0_0 = arith.constant 0 : index
    %0 = vector.load %arg1[%c0, %c0_0] : memref<70x512xf32, #tpu.memory_space<vmem>>, vector<70x512xf32>
    %c0_1 = arith.constant 0 : index
    %c0_2 = arith.constant 0 : index
    %1 = vector.load %arg2[%c0_1, %c0_2] : memref<512x32xf32, #tpu.memory_space<vmem>>, vector<512x32xf32>
    %cst = arith.constant dense<0.000000e+00> : vector<70x32xf32>
    %2 = tpu.matmul %0, %1, %cst {dimension_numbers = #tpu.dot_dimension_numbers<[1], [0], [0], [1], [0, 0, 1, 1], [], []>} : vector<70x512xf32>, vector<512x32xf32>, vector<70x32xf32> -> vector<70x32xf32>
    %c0_3 = arith.constant 0 : index
    %c0_4 = arith.constant 0 : index
    %3 = vector.load %arg3[%c0_3, %c0_4] : memref<1x32xf32, #tpu.memory_space<vmem>>, vector<1x32xf32>
    %4 = vector.broadcast %3 : vector<1x32xf32> to vector<70x32xf32>
    %5 = arith.addf %2, %4 : vector<70x32xf32>
    %cst_5 = arith.constant 0.000000e+00 : f32
    %6 = vector.broadcast %cst_5 : f32 to vector<70x32xf32>
    %7 = arith.maximumf %5, %6 : vector<70x32xf32>
    %c0_6 = arith.constant 0 : index
    %c0_7 = arith.constant 0 : index
    %8 = vector.load %arg4[%c0_6, %c0_7] : memref<70x32xf32, #tpu.memory_space<vmem>>, vector<70x32xf32>
    tpu.vector_store %arg4[%c0_6, %c0_7], %7 {strides = array<i32>} : memref<70x32xf32, #tpu.memory_space<vmem>>, vector<70x32xf32>,
    return
  }
  func.func @transform_0(%arg0: i32) -> (i32, i32) {
    %c0_i32 = arith.constant 0 : i32
    %c0_i32_0 = arith.constant 0 : i32
    return %arg0, %c0_i32 : i32, i32
  }
  func.func @transform_1(%arg0: i32) -> (i32, i32) {
    %c0_i32 = arith.constant 0 : i32
    %c0_i32_0 = arith.constant 0 : i32
    %c0_i32_1 = arith.constant 0 : i32
    return %c0_i32, %c0_i32_0 : i32, i32
  }
  func.func @transform_2(%arg0: i32) -> (i32, i32) {
    %c0_i32 = arith.constant 0 : i32
    %c0_i32_0 = arith.constant 0 : i32
    %c0_i32_1 = arith.constant 0 : i32
    return %c0_i32, %c0_i32_0 : i32, i32
  }
  func.func @transform_3(%arg0: i32) -> (i32, i32) {
    %c0_i32 = arith.constant 0 : i32
    %c0_i32_0 = arith.constant 0 : i32
    return %arg0, %c0_i32 : i32, i32
  }
}

module attributes {stable_mosaic.version = 11 : i64} {
  func.func @_gemm_bias_act_kernel(%arg0: i32, %arg1: memref<2x1120xf32, #tpu.memory_space<vmem>>, %arg2: memref<1120x32xf32, #tpu.memory_space<vmem>>, %arg3: memref<1x32xf32, #tpu.memory_space<vmem>>, %arg4: memref<2x32xf32, #tpu.memory_space<vmem>>) attributes {dimension_semantics = [#tpu.dimension_semantics<parallel>], iteration_bounds = array<i64: 1>, scalar_prefetch = 0 : i64, scratch_operands = 0 : i64, tpu.core_type = #tpu.core_type<tc>, window_params = [{transform_indices = @transform_0, window_bounds = array<i64: 2, 1120>}, {pipeline_mode = #tpu.pipeline_mode<synchronous>, transform_indices = @transform_1, window_bounds = array<i64: 1120, 32>}, {pipeline_mode = #tpu.pipeline_mode<synchronous>, transform_indices = @transform_2, window_bounds = array<i64: 1, 32>}, {transform_indices = @transform_3, window_bounds = array<i64: 2, 32>}]} {
    %c0 = arith.constant 0 : index
    %c0_0 = arith.constant 0 : index
    %0 = vector.load %arg1[%c0, %c0_0] : memref<2x1120xf32, #tpu.memory_space<vmem>>, vector<2x1120xf32>
    %c0_1 = arith.constant 0 : index
    %c0_2 = arith.constant 0 : index
    %1 = vector.load %arg2[%c0_1, %c0_2] : memref<1120x32xf32, #tpu.memory_space<vmem>>, vector<1120x32xf32>
    %cst = arith.constant dense<0.000000e+00> : vector<2x32xf32>
    %2 = tpu.matmul %0, %1, %cst {dimension_numbers = #tpu.dot_dimension_numbers<[1], [0], [0], [1], [0, 0, 1, 1], [], []>} : vector<2x1120xf32>, vector<1120x32xf32>, vector<2x32xf32> -> vector<2x32xf32>
    %c0_3 = arith.constant 0 : index
    %c0_4 = arith.constant 0 : index
    %3 = vector.load %arg3[%c0_3, %c0_4] : memref<1x32xf32, #tpu.memory_space<vmem>>, vector<1x32xf32>
    %4 = vector.broadcast %3 : vector<1x32xf32> to vector<2x32xf32>
    %5 = arith.addf %2, %4 : vector<2x32xf32>
    %c0_5 = arith.constant 0 : index
    %c0_6 = arith.constant 0 : index
    %6 = vector.load %arg4[%c0_5, %c0_6] : memref<2x32xf32, #tpu.memory_space<vmem>>, vector<2x32xf32>
    tpu.vector_store %arg4[%c0_5, %c0_6], %5 {strides = array<i32>} : memref<2x32xf32, #tpu.memory_space<vmem>>, vector<2x32xf32>,
    return
  }
  func.func @transform_0(%arg0: i32) -> (i32, i32) {
    %c0_i32 = arith.constant 0 : i32
    %c0_i32_0 = arith.constant 0 : i32
    return %arg0, %c0_i32 : i32, i32
  }
  func.func @transform_1(%arg0: i32) -> (i32, i32) {
    %c0_i32 = arith.constant 0 : i32
    %c0_i32_0 = arith.constant 0 : i32
    %c0_i32_1 = arith.constant 0 : i32
    return %c0_i32, %c0_i32_0 : i32, i32
  }
  func.func @transform_2(%arg0: i32) -> (i32, i32) {
    %c0_i32 = arith.constant 0 : i32
    %c0_i32_0 = arith.constant 0 : i32
    %c0_i32_1 = arith.constant 0 : i32
    return %c0_i32, %c0_i32_0 : i32, i32
  }
  func.func @transform_3(%arg0: i32) -> (i32, i32) {
    %c0_i32 = arith.constant 0 : i32
    %c0_i32_0 = arith.constant 0 : i32
    return %arg0, %c0_i32 : i32, i32
  }
}

</mosaic_0001>

<bundles_post_ra>
// kernel: miniworld_forward.4
= control target key start
LH: loop header
LB: loop body
LE: loop exit
PB: predicated region body
PF: predicated region fallthrough
CT: control target
= control target key end

     0   :  { %s2691_s12 = smov 0   ;;  %s3690_s0 = inlined_call_operand.vmem [shape: f32[2128,75], index: 0, kind: input, shape index: {}]   ;;  %s3691_s1 = inlined_call_operand.vmem [shape: f32[75,32], index: 1, kind: input, shape index: {}]   ;;  %s3692_s2 = inlined_call_operand.vmem [shape: f32[1,32], index: 2, kind: input, shape index: {}]   ;;  %s3693_s3 = inlined_call_operand.vmem [shape: f32[2128,32], index: 3, kind: output, shape index: {}]  }
   0x1 LB: > { %s1914_s13 = sadd.s32 4294967295, %s2665_s12   ;;  %p1918_p0 = scmp.ge.s32.totalorder %s2665_s12, 1  ;;  %s2665_s12 = sphi %s2691_s12, %s13_s12  }
   0x2   : > { %p138_p1 = scmp.lt.s32.totalorder %s2665_s12, 3 }
   0x4   : > { %p139_p2 = pnand %p1918_p0, %p138_p1 }
   0x5   : > { %v440_v0 = vld [vmem:[%s3691_s1] sm:$0xff] (!%p139_p2)  ;;  %v441_v1 = vld [vmem:[%s3691_s1 + $0x8] sm:$0xff] (!%p139_p2)  ;;  %v442_v2 = vld [vmem:[%s3691_s1 + $0x10] sm:$0xff] (!%p139_p2)  ;;  %v2667_v3 = vmov (!%p139_p2), 0.0|0.0   ;;  %s162_s22 = smul.u32 (!%p139_p2), 133, %s1914_s13  ;;  %vm2668_vm0 = vmmov (!%p139_p2), 0  }
   0x6   : > { %142 = sbr.rel (%p139_p2) target bundleno = 508 (0x1fc), region = 32  ;;  %2620 = vmatprep.subr.bf16.mxu0 (!%p139_p2), %v2667_v3  ;;  %v2621_v4 = vpack.c.bf16 (!%p139_p2), %v441_v1, %v440_v0  ;;  %2636 = vmatprep.subr.bf16.mxu1 (!%p139_p2), %v2667_v3  ;;  %v443_v5 = vld [vmem:[%s3691_s1 + $0x18] sm:$0xff] (!%p139_p2)  ;;  %v2669_v6 = vmov (!%p139_p2), 0.0   ;;  %v444_v8 = vld [vmem:[%s3691_s1 + $0x20] sm:$0xff] (!%p139_p2)  ;;  %v445_v9 = vld [vmem:[%s3691_s1 + $0x28] sm:$0xff] (!%p139_p2)  ;;  %vm857_vm1 = vcmask (!%p139_p2), 1042432  }
   0x7   : > { %2221 = vmatprep.mubr.msk.f32.mxu0 (!%p139_p2), %vm2668_vm0, %v2669_v6  ;;  %2422 = vmatprep.mubr.msk.f32.mxu1 (!%p139_p2), %vm2668_vm0, %v2669_v6  ;;  %v2624_v7 = vpack.c.bf16 (!%p139_p2), %v443_v5, %v442_v2  ;;  %p163_p3 = scmp.lt.s32.totalorder (!%p139_p2), %s162_s22, 265  ;;  %v2627_v10 = vpack.c.bf16 (!%p139_p2), %v445_v9, %v444_v8  ;;  %v446_v11 = vld [vmem:[%s3691_s1 + $0x30] sm:$0xff] (!%p139_p2)  ;;  %v447_v12 = vld [vmem:[%s3691_s1 + $0x38] sm:$0xff] (!%p139_p2)  ;;  %v448_v14 = vld [vmem:[%s3691_s1 + $0x40] sm:$0xff] (!%p139_p2)  ;;  %vm2670_vm2 = vmmov (!%p139_p2), 1   ;;  %vm457_vm4 = vcmask (!%p139_p2), 613376  }
   0x8   : > { %2622 = vmatpush3.bf16.msra.mxu0 (!%p139_p2), %v2621_v4  ;;  %2641 = vmatpush3.bf16.msra.mxu1 (!%p139_p2), %v2621_v4  ;;  %v2630_v13 = vpack.c.bf16 (!%p139_p2), %v447_v12, %v446_v11  ;;  %v449_v15 = vld [vmem:[%s3691_s1 + $0x48] sm:$0x7] (!%p139_p2)  ;;  %vm2634_vm3 = vmpackc.low (!%p139_p2), %vm857_vm1, %vm2670_vm2  ;;  %vm1724_vm5 = vcmask (!%p139_p2), 261120  }
   0x9   : > { %2623 = vmatprep.subr.bf16.mxu0 (!%p139_p2), %v2667_v3  ;;  %2637 = vmatprep.subr.bf16.mxu1 (!%p139_p2), %v2667_v3  ;;  %v2633_v16 = vpack.c.bf16 (!%p139_p2), %v449_v15, %v448_v14 }
   0xc   : > { %2625 = vmatpush3.bf16.msra.mxu0 (!%p139_p2), %v2624_v7  ;;  %2642 = vmatpush3.bf16.msra.mxu1 (!%p139_p2), %v2624_v7 }
   0xd   : > { %s3695_s22 = smov (!%p163_p3, %s162_s22), 265  ;;  %2626 = vmatprep.subr.bf16.mxu0 %v2667_v3  ;;  %2638 = vmatprep.subr.bf16.mxu1 %v2667_v3 }
   0xe   : > { %s1919_s4 = sshll.u32 %s3695_s22, 3 }
   0xf   : > { %s2741_s11 = scalar_lea.vmem %s3690_s0, %s1919_s4  ;;  %s3185_s17 = scalar_lea.vmem %s3693_s3, %s1919_s4 }
  0x10   : > { %2628 = vmatpush3.bf16.msra.mxu0 %v2627_v10  ;;  %2643 = vmatpush3.bf16.msra.mxu1 %v2627_v10  ;;  %v174_v17 = vld [vmem:[%s2741_s11] sm:$0xff]  ;;  %v241_v18 = vld [vmem:[%s2741_s11 + $0x218] sm:$0xff]  ;;  %v175_v21 = vld [vmem:[%s2741_s11 + $0x8] sm:$0xff] }
  0x11   : > { %2629 = vmatprep.subr.bf16.mxu0 %v2667_v3  ;;  %2639 = vmatprep.subr.bf16.mxu1 %v2667_v3  ;;  %v307_v19 = vmul.f32 0.003921569, %v174_v17  ;;  %v374_v20 = vmul.f32 0.003921569, %v241_v18  ;;  %v242_v22 = vld [vmem:[%s2741_s11 + $0x220] sm:$0xff]  ;;  %v176_v25 = vld [vmem:[%s2741_s11 + $0x10] sm:$0xff] }
  0x12   : > { %v308_v23 = vmul.f32 0.003921569, %v175_v21  ;;  %v375_v24 = vmul.f32 0.003921569, %v242_v22  ;;  %v243_v26 = vld [vmem:[%s2741_s11 + $0x228] sm:$0xff]  ;;  %v177_v29 = vld [vmem:[%s2741_s11 + $0x18] sm:$0xff] }
  0x13   : > { %v309_v27 = vmul.f32 0.003921569, %v176_v25  ;;  %v376_v28 = vmul.f32 0.003921569, %v243_v26  ;;  %v244_v30 = vld [vmem:[%s2741_s11 + $0x230] sm:$0xff]  ;;  %v178_v33 = vld [vmem:[%s2741_s11 + $0x20] sm:$0xff] }
  0x14   : > { %2631 = vmatpush3.bf16.msra.mxu0 %v2630_v13  ;;  %2644 = vmatpush3.bf16.msra.mxu1 %v2630_v13  ;;  %v310_v31 = vmul.f32 0.003921569, %v177_v29  ;;  %v377_v32 = vmul.f32 0.003921569, %v244_v30  ;;  %v245_v34 = vld [vmem:[%s2741_s11 + $0x238] sm:$0xff]  ;;  %v179_v37 = vld [vmem:[%s2741_s11 + $0x28] sm:$0xff] }
  0x15   : > { %2632 = vmatprep.subr.bf16.mxu0 %v2667_v3  ;;  %2640 = vmatprep.subr.bf16.mxu1 %v2667_v3  ;;  %v311_v35 = vmul.f32 0.003921569, %v178_v33  ;;  %v378_v36 = vmul.f32 0.003921569, %v245_v34  ;;  %v246_v38 = vld [vmem:[%s2741_s11 + $0x240] sm:$0xff]  ;;  %v180_v41 = vld [vmem:[%s2741_s11 + $0x30] sm:$0xff] }
  0x16   : > { %v312_v39 = vmul.f32 0.003921569, %v179_v37  ;;  %v379_v40 = vmul.f32 0.003921569, %v246_v38  ;;  %v247_v42 = vld [vmem:[%s2741_s11 + $0x248] sm:$0xff]  ;;  %v181_v45 = vld [vmem:[%s2741_s11 + $0x38] sm:$0xff] }
  0x17   : > { %v313_v43 = vmul.f32 0.003921569, %v180_v41  ;;  %v380_v44 = vmul.f32 0.003921569, %v247_v42  ;;  %v248_v46 = vld [vmem:[%s2741_s11 + $0x250] sm:$0xff]  ;;  %v182_v49 = vld [vmem:[%s2741_s11 + $0x40] sm:$0xff] }
  0x18   : > { %2635 = vmatpush3.bf16.msk.msra.mxu0 %vm2634_vm3, %v2633_v16  ;;  %2645 = vmatpush3.bf16.msk.msra.mxu1 %vm2634_vm3, %v2633_v16  ;;  %v314_v47 = vmul.f32 0.003921569, %v181_v45  ;;  %v381_v48 = vmul.f32 0.003921569, %v248_v46  ;;  %v249_v50 = vld [vmem:[%s2741_s11 + $0x258] sm:$0xff]  ;;  %v183_v53 = vld [vmem:[%s2741_s11 + $0x48] sm:$0xff] }
  0x19   : > { %v315_v51 = vmul.f32 0.003921569, %v182_v49  ;;  %v382_v52 = vmul.f32 0.003921569, %v249_v50  ;;  %v250_v54 = vld [vmem:[%s2741_s11 + $0x260] sm:$0xff]  ;;  %v184_v57 = vld [vmem:[%s2741_s11 + $0x50] sm:$0xff] }
  0x1a   : > { %v316_v55 = vmul.f32 0.003921569, %v183_v53  ;;  %v383_v56 = vmul.f32 0.003921569, %v250_v54  ;;  %v251_v58 = vld [vmem:[%s2741_s11 + $0x268] sm:$0xff]  ;;  %v185_v61 = vld [vmem:[%s2741_s11 + $0x58] sm:$0xff] }
  0x1b   : > { %2222 = vmatmul.mubr.msk.f32.vlgmr.msra.gmra.mrb[0].mxu0 %vm457_vm4, %v307_v19  ;;  %2423 = vmatmul.mubr.msk.f32.vlgmr.msra.gmra.mrb[0].mxu1 %vm457_vm4, %v374_v20  ;;  %v317_v59 = vmul.f32 0.003921569, %v184_v57  ;;  %v384_v60 = vmul.f32 0.003921569, %v251_v58  ;;  %v252_v62 = vld [vmem:[%s2741_s11 + $0x270] sm:$0xff]  ;;  %v186_v1 = vld [vmem:[%s2741_s11 + $0x60] sm:$0xff] }
  0x1c   : > { %2224 = vmatprep.mubr.msk.f32.mxu0 %vm2668_vm0, %v2669_v6  ;;  %2425 = vmatprep.mubr.msk.f32.mxu1 %vm2668_vm0, %v2669_v6  ;;  %v318_v63 = vmul.f32 0.003921569, %v185_v61  ;;  %v385_v0 = vmul.f32 0.003921569, %v252_v62  ;;  %v253_v2 = vld [vmem:[%s2741_s11 + $0x278] sm:$0xff]  ;;  %v187_v5 = vld [vmem:[%s2741_s11 + $0x68] sm:$0xff] }
  0x1d   : > { %v319_v3 = vmul.f32 0.003921569, %v186_v1  ;;  %v386_v4 = vmul.f32 0.003921569, %v253_v2  ;;  %v254_v7 = vld [vmem:[%s2741_s11 + $0x280] sm:$0xff]  ;;  %v188_v10 = vld [vmem:[%s2741_s11 + $0x70] sm:$0xff] }
  0x1e   : > { %v320_v8 = vmul.f32 0.003921569, %v187_v5  ;;  %v387_v9 = vmul.f32 0.003921569, %v254_v7  ;;  %v255_v11 = vld [vmem:[%s2741_s11 + $0x288] sm:$0xff]  ;;  %v189_v14 = vld [vmem:[%s2741_s11 + $0x78] sm:$0xff] }
  0x1f   : > { %2225 = vmatmul.mubr.msk.f32.gmra.mrb[2].mxu0 %vm457_vm4, %v308_v23  ;;  %2426 = vmatmul.mubr.msk.f32.gmra.mrb[2].mxu1 %vm457_vm4, %v375_v24  ;;  %v321_v12 = vmul.f32 0.003921569, %v188_v10  ;;  %v388_v13 = vmul.f32 0.003921569, %v255_v11  ;;  %v256_v15 = vld [vmem:[%s2741_s11 + $0x290] sm:$0xff]  ;;  %v190_v18 = vld [vmem:[%s2741_s11 + $0x80] sm:$0xff] }
  0x20   : > { %2227 = vmatprep.mubr.msk.f32.mxu0 %vm2668_vm0, %v2669_v6  ;;  %2428 = vmatprep.mubr.msk.f32.mxu1 %vm2668_vm0, %v2669_v6  ;;  %v322_v16 = vmul.f32 0.003921569, %v189_v14  ;;  %v389_v17 = vmul.f32 0.003921569, %v256_v15  ;;  %v257_v19 = vld [vmem:[%s2741_s11 + $0x298] sm:$0xff]  ;;  %v191_v22 = vld [vmem:[%s2741_s11 + $0x88] sm:$0xff] }
  0x21   : > { %v323_v20 = vmul.f32 0.003921569, %v190_v18  ;;  %v390_v21 = vmul.f32 0.003921569, %v257_v19  ;;  %v258_v23 = vld [vmem:[%s2741_s11 + $0x2a0] sm:$0xff]  ;;  %v192_v26 = vld [vmem:[%s2741_s11 + $0x90] sm:$0xff] }
  0x22   : > { %v324_v24 = vmul.f32 0.003921569, %v191_v22  ;;  %v391_v25 = vmul.f32 0.003921569, %v258_v23  ;;  %v193_v30 = vld [vmem:[%s2741_s11 + $0x98] sm:$0xff]  ;;  %v194_v34 = vld [vmem:[%s2741_s11 + $0xa0] sm:$0xff] }
  0x23   : > { %2228 = vmatmul.mubr.msk.f32.gmra.mrb[4].mxu0 %vm457_vm4, %v309_v27  ;;  %2429 = vmatmul.mubr.msk.f32.gmra.mrb[4].mxu1 %vm457_vm4, %v376_v28  ;;  %v259_v27 = vld [vmem:[%s2741_s11 + $0x2a8] sm:$0xff]  ;;  %v325_v28 = vmul.f32 0.003921569, %v192_v26  ;;  %v196_v42 = vld [vmem:[%s2741_s11 + $0xb0] sm:$0xff]  ;;  %v197_v46 = vld [vmem:[%s2741_s11 + $0xb8] sm:$0xff] }
  0x24   : > { %2230 = vmatprep.mubr.msk.f32.mxu0 %vm2668_vm0, %v2669_v6  ;;  %2431 = vmatprep.mubr.msk.f32.mxu1 %vm2668_vm0, %v2669_v6  ;;  %v392_v29 = vmul.f32 0.003921569, %v259_v27  ;;  %v195_v38 = vld [vmem:[%s2741_s11 + $0xa8] sm:$0xff]  ;;  %v198_v50 = vld [vmem:[%s2741_s11 + $0xc0] sm:$0xff]  ;;  %v200_v58 = vld [vmem:[%s2741_s11 + $0xd0] sm:$0xff] }
  0x25   : > { %v199_v54 = vld [vmem:[%s2741_s11 + $0xc8] sm:$0xff]  ;;  %v201_v62 = vld [vmem:[%s2741_s11 + $0xd8] sm:$0xff]  ;;  %v202_v2 = vld [vmem:[%s2741_s11 + $0xe0] sm:$0xff] }
  0x26   : > { %v203_v7 = vld [vmem:[%s2741_s11 + $0xe8] sm:$0xff]  ;;  %v204_v11 = vld [vmem:[%s2741_s11 + $0xf0] sm:$0xff]  ;;  %v205_v15 = vld [vmem:[%s2741_s11 + $0xf8] sm:$0xff] }
  0x27   : > { %2231 = vmatmul.mubr.msk.f32.gmra.mrb[6].mxu0 %vm457_vm4, %v310_v31  ;;  %2432 = vmatmul.mubr.msk.f32.gmra.mrb[6].mxu1 %vm457_vm4, %v377_v32  ;;  %v260_v31 = vld [vmem:[%s2741_s11 + $0x2b0] sm:$0xff]  ;;  %v326_v32 = vmul.f32 0.003921569, %v193_v30  ;;  %v206_v19 = vld [vmem:[%s2741_s11 + $0x100] sm:$0xff]  ;;  %v207_v23 = vld [vmem:[%s2741_s11 + $0x108] sm:$0xff] }
  0x28   : > { %2233 = vmatprep.mubr.msk.f32.mxu0 %vm2668_vm0, %v2669_v6  ;;  %2434 = vmatprep.mubr.msk.f32.mxu1 %vm2668_vm0, %v2669_v6  ;;  %v393_v33 = vmul.f32 0.003921569, %v260_v31  ;;  %v208_v27 = vld [vmem:[%s2741_s11 + $0x110] sm:$0xff]  ;;  %v209_v31 = vld [vmem:[%s2741_s11 + $0x118] sm:$0xff] }
  0x2b   : > { %2234 = vmatmul.mubr.msk.f32.gmra.mrb[8].mxu0 %vm457_vm4, %v311_v35  ;;  %2435 = vmatmul.mubr.msk.f32.gmra.mrb[8].mxu1 %vm457_vm4, %v378_v36  ;;  %v261_v35 = vld [vmem:[%s2741_s11 + $0x2b8] sm:$0xff]  ;;  %v327_v36 = vmul.f32 0.003921569, %v194_v34 }
  0x2c   : > { %2236 = vmatprep.mubr.msk.f32.mxu0 %vm2668_vm0, %v2669_v6  ;;  %2437 = vmatprep.mubr.msk.f32.mxu1 %vm2668_vm0, %v2669_v6  ;;  %v394_v37 = vmul.f32 0.003921569, %v261_v35  ;;  %v210_v35 = vld [vmem:[%s2741_s11 + $0x120] sm:$0xff] }
  0x2f   : > { %2237 = vmatmul.mubr.msk.f32.gmra.mrb[10].mxu0 %vm457_vm4, %v312_v39  ;;  %2438 = vmatmul.mubr.msk.f32.gmra.mrb[10].mxu1 %vm457_vm4, %v379_v40  ;;  %v262_v39 = vld [vmem:[%s2741_s11 + $0x2c0] sm:$0xff]  ;;  %v328_v40 = vmul.f32 0.003921569, %v195_v38 }
  0x30   : > { %2239 = vmatprep.mubr.msk.f32.mxu0 %vm2668_vm0, %v2669_v6  ;;  %2440 = vmatprep.mubr.msk.f32.mxu1 %vm2668_vm0, %v2669_v6  ;;  %v395_v41 = vmul.f32 0.003921569, %v262_v39  ;;  %v211_v39 = vld [vmem:[%s2741_s11 + $0x128] sm:$0xff] }
  0x33   : > { %2240 = vmatmul.mubr.msk.f32.gmra.mrb[12].mxu0 %vm457_vm4, %v313_v43  ;;  %2441 = vmatmul.mubr.msk.f32.gmra.mrb[12].mxu1 %vm457_vm4, %v380_v44  ;;  %v263_v43 = vld [vmem:[%s2741_s11 + $0x2c8] sm:$0xff]  ;;  %v329_v44 = vmul.f32 0.003921569, %v196_v42 }
  0x34   : > { %2242 = vmatprep.mubr.msk.f32.mxu0 %vm2668_vm0, %v2669_v6  ;;  %2443 = vmatprep.mubr.msk.f32.mxu1 %vm2668_vm0, %v2669_v6  ;;  %v396_v45 = vmul.f32 0.003921569, %v263_v43  ;;  %v212_v43 = vld [vmem:[%s2741_s11 + $0x130] sm:$0xff] }
  0x37   : > { %2243 = vmatmul.mubr.msk.f32.gmra.mrb[14].mxu0 %vm457_vm4, %v314_v47  ;;  %2444 = vmatmul.mubr.msk.f32.gmra.mrb[14].mxu1 %vm457_vm4, %v381_v48  ;;  %v264_v47 = vld [vmem:[%s2741_s11 + $0x2d0] sm:$0xff]  ;;  %v330_v48 = vmul.f32 0.003921569, %v197_v46 }
  0x38   : > { %2245 = vmatprep.mubr.msk.f32.mxu0 %vm2668_vm0, %v2669_v6  ;;  %2446 = vmatprep.mubr.msk.f32.mxu1 %vm2668_vm0, %v2669_v6  ;;  %v397_v49 = vmul.f32 0.003921569, %v264_v47  ;;  %v213_v47 = vld [vmem:[%s2741_s11 + $0x138] sm:$0xff] }
  0x3b   : > { %2246 = vmatmul.mubr.msk.f32.gmra.mrb[16].mxu0 %vm457_vm4, %v315_v51  ;;  %2447 = vmatmul.mubr.msk.f32.gmra.mrb[16].mxu1 %vm457_vm4, %v382_v52  ;;  %v265_v51 = vld [vmem:[%s2741_s11 + $0x2d8] sm:$0xff]  ;;  %v331_v52 = vmul.f32 0.003921569, %v198_v50 }
  0x3c   : > { %2248 = vmatprep.mubr.msk.f32.mxu0 %vm2668_vm0, %v2669_v6  ;;  %2449 = vmatprep.mubr.msk.f32.mxu1 %vm2668_vm0, %v2669_v6  ;;  %v398_v53 = vmul.f32 0.003921569, %v265_v51  ;;  %v214_v51 = vld [vmem:[%s2741_s11 + $0x140] sm:$0xff] }
  0x3f   : > { %2249 = vmatmul.mubr.msk.f32.gmra.mrb[18].mxu0 %vm457_vm4, %v316_v55  ;;  %2450 = vmatmul.mubr.msk.f32.gmra.mrb[18].mxu1 %vm457_vm4, %v383_v56  ;;  %v266_v55 = vld [vmem:[%s2741_s11 + $0x2e0] sm:$0xff]  ;;  %v332_v56 = vmul.f32 0.003921569, %v199_v54 }
  0x40   : > { %2251 = vmatprep.mubr.msk.f32.mxu0 %vm2668_vm0, %v2669_v6  ;;  %2452 = vmatprep.mubr.msk.f32.mxu1 %vm2668_vm0, %v2669_v6  ;;  %v399_v57 = vmul.f32 0.003921569, %v266_v55  ;;  %v215_v55 = vld [vmem:[%s2741_s11 + $0x148] sm:$0xff] }
  0x43   : > { %2252 = vmatmul.mubr.msk.f32.gmra.mrb[20].mxu0 %vm457_vm4, %v317_v59  ;;  %2453 = vmatmul.mubr.msk.f32.gmra.mrb[20].mxu1 %vm457_vm4, %v384_v60  ;;  %v267_v59 = vld [vmem:[%s2741_s11 + $0x2e8] sm:$0xff]  ;;  %v333_v60 = vmul.f32 0.003921569, %v200_v58 }
  0x44   : > { %2254 = vmatprep.mubr.msk.f32.mxu0 %vm2668_vm0, %v2669_v6  ;;  %2455 = vmatprep.mubr.msk.f32.mxu1 %vm2668_vm0, %v2669_v6  ;;  %v400_v61 = vmul.f32 0.003921569, %v267_v59  ;;  %v216_v59 = vld [vmem:[%s2741_s11 + $0x150] sm:$0xff] }
  0x47   : > { %2255 = vmatmul.mubr.msk.f32.gmra.mrb[22].mxu0 %vm457_vm4, %v318_v63  ;;  %2456 = vmatmul.mubr.msk.f32.gmra.mrb[22].mxu1 %vm457_vm4, %v385_v0  ;;  %v268_v63 = vld [vmem:[%s2741_s11 + $0x2f0] sm:$0xff]  ;;  %v334_v0 = vmul.f32 0.003921569, %v201_v62 }
  0x48   : > { %2257 = vmatprep.mubr.msk.f32.mxu0 %vm2668_vm0, %v2669_v6  ;;  %2458 = vmatprep.mubr.msk.f32.mxu1 %vm2668_vm0, %v2669_v6  ;;  %v401_v1 = vmul.f32 0.003921569, %v268_v63  ;;  %v217_v63 = vld [vmem:[%s2741_s11 + $0x158] sm:$0xff] }
  0x4b   : > { %2258 = vmatmul.mubr.msk.f32.gmra.mrb[24].mxu0 %vm457_vm4, %v319_v3  ;;  %2459 = vmatmul.mubr.msk.f32.gmra.mrb[24].mxu1 %vm457_vm4, %v386_v4  ;;  %v269_v3 = vld [vmem:[%s2741_s11 + $0x2f8] sm:$0xff]  ;;  %v335_v4 = vmul.f32 0.003921569, %v202_v2 }
  0x4c   : > { %2260 = vmatprep.mubr.msk.f32.mxu0 %vm2668_vm0, %v2669_v6  ;;  %2461 = vmatprep.mubr.msk.f32.mxu1 %vm2668_vm0, %v2669_v6  ;;  %v402_v5 = vmul.f32 0.003921569, %v269_v3  ;;  %v218_v3 = vld [vmem:[%s2741_s11 + $0x160] sm:$0xff] }
  0x4f   : > { %2261 = vmatmul.mubr.msk.f32.gmra.mrb[26].mxu0 %vm457_vm4, %v320_v8  ;;  %2462 = vmatmul.mubr.msk.f32.gmra.mrb[26].mxu1 %vm457_vm4, %v387_v9  ;;  %v270_v8 = vld [vmem:[%s2741_s11 + $0x300] sm:$0xff]  ;;  %v336_v9 = vmul.f32 0.003921569, %v203_v7 }
  0x50   : > { %2263 = vmatprep.mubr.msk.f32.mxu0 %vm2668_vm0, %v2669_v6  ;;  %2464 = vmatprep.mubr.msk.f32.mxu1 %vm2668_vm0, %v2669_v6  ;;  %v403_v10 = vmul.f32 0.003921569, %v270_v8  ;;  %v219_v8 = vld [vmem:[%s2741_s11 + $0x168] sm:$0xff] }
  0x53   : > { %2264 = vmatmul.mubr.msk.f32.gmra.mrb[28].mxu0 %vm457_vm4, %v321_v12  ;;  %2465 = vmatmul.mubr.msk.f32.gmra.mrb[28].mxu1 %vm457_vm4, %v388_v13  ;;  %v271_v12 = vld [vmem:[%s2741_s11 + $0x308] sm:$0xff]  ;;  %v337_v13 = vmul.f32 0.003921569, %v204_v11 }
  0x54   : > { %2266 = vmatprep.mubr.msk.f32.mxu0 %vm2668_vm0, %v2669_v6  ;;  %2467 = vmatprep.mubr.msk.f32.mxu1 %vm2668_vm0, %v2669_v6  ;;  %v404_v14 = vmul.f32 0.003921569, %v271_v12  ;;  %v220_v12 = vld [vmem:[%s2741_s11 + $0x170] sm:$0xff] }
  0x57   : > { %2267 = vmatmul.mubr.msk.f32.gmra.mrb[30].mxu0 %vm457_vm4, %v322_v16  ;;  %2468 = vmatmul.mubr.msk.f32.gmra.mrb[30].mxu1 %vm457_vm4, %v389_v17  ;;  %v272_v16 = vld [vmem:[%s2741_s11 + $0x310] sm:$0xff]  ;;  %v338_v17 = vmul.f32 0.003921569, %v205_v15 }
  0x58   : > { %2269 = vmatprep.mubr.msk.f32.mxu0 %vm2668_vm0, %v2669_v6  ;;  %2470 = vmatprep.mubr.msk.f32.mxu1 %vm2668_vm0, %v2669_v6  ;;  %v405_v18 = vmul.f32 0.003921569, %v272_v16  ;;  %v221_v16 = vld [vmem:[%s2741_s11 + $0x178] sm:$0xff] }
  0x5b   : > { %2270 = vmatmul.mubr.msk.f32.gmra.mrb[32].mxu0 %vm457_vm4, %v323_v20  ;;  %2471 = vmatmul.mubr.msk.f32.gmra.mrb[32].mxu1 %vm457_vm4, %v390_v21  ;;  %v273_v20 = vld [vmem:[%s2741_s11 + $0x318] sm:$0xff]  ;;  %v339_v21 = vmul.f32 0.003921569, %v206_v19 }
  0x5c   : > { %2272 = vmatprep.mubr.msk.f32.mxu0 %vm2668_vm0, %v2669_v6  ;;  %2473 = vmatprep.mubr.msk.f32.mxu1 %vm2668_vm0, %v2669_v6  ;;  %v406_v22 = vmul.f32 0.003921569, %v273_v20  ;;  %v222_v20 = vld [vmem:[%s2741_s11 + $0x180] sm:$0xff] }
  0x5f   : > { %2273 = vmatmul.mubr.msk.f32.gmra.mrb[34].mxu0 %vm457_vm4, %v324_v24  ;;  %2474 = vmatmul.mubr.msk.f32.gmra.mrb[34].mxu1 %vm457_vm4, %v391_v25  ;;  %v274_v24 = vld [vmem:[%s2741_s11 + $0x320] sm:$0xff]  ;;  %v340_v25 = vmul.f32 0.003921569, %v207_v23 }
  0x60   : > { %2275 = vmatprep.mubr.msk.f32.mxu0 %vm2668_vm0, %v2669_v6  ;;  %2476 = vmatprep.mubr.msk.f32.mxu1 %vm2668_vm0, %v2669_v6  ;;  %v407_v26 = vmul.f32 0.003921569, %v274_v24  ;;  %v223_v24 = vld [vmem:[%s2741_s11 + $0x188] sm:$0xff] }
  0x63   : > { %2276 = vmatmul.mubr.msk.f32.gmra.mrb[36].mxu0 %vm457_vm4, %v325_v28  ;;  %2477 = vmatmul.mubr.msk.f32.gmra.mrb[36].mxu1 %vm457_vm4, %v392_v29  ;;  %v275_v28 = vld [vmem:[%s2741_s11 + $0x328] sm:$0xff]  ;;  %v341_v29 = vmul.f32 0.003921569, %v208_v27 }
  0x64   : > { %2278 = vmatprep.mubr.msk.f32.mxu0 %vm2668_vm0, %v2669_v6  ;;  %2479 = vmatprep.mubr.msk.f32.mxu1 %vm2668_vm0, %v2669_v6  ;;  %v408_v30 = vmul.f32 0.003921569, %v275_v28  ;;  %v224_v28 = vld [vmem:[%s2741_s11 + $0x190] sm:$0xff] }
  0x67   : > { %2279 = vmatmul.mubr.msk.f32.gmra.mrb[38].mxu0 %vm457_vm4, %v326_v32  ;;  %2480 = vmatmul.mubr.msk.f32.gmra.mrb[38].mxu1 %vm457_vm4, %v393_v33  ;;  %v276_v32 = vld [vmem:[%s2741_s11 + $0x330] sm:$0xff]  ;;  %v342_v33 = vmul.f32 0.003921569, %v209_v31 }
  0x68   : > { %2281 = vmatprep.mubr.msk.f32.mxu0 %vm2668_vm0, %v2669_v6  ;;  %2482 = vmatprep.mubr.msk.f32.mxu1 %vm2668_vm0, %v2669_v6  ;;  %v409_v34 = vmul.f32 0.003921569, %v276_v32  ;;  %v225_v32 = vld [vmem:[%s2741_s11 + $0x198] sm:$0xff] }
  0x6b   : > { %2282 = vmatmul.mubr.msk.f32.gmra.mrb[40].mxu0 %vm457_vm4, %v327_v36  ;;  %2483 = vmatmul.mubr.msk.f32.gmra.mrb[40].mxu1 %vm457_vm4, %v394_v37  ;;  %v277_v36 = vld [vmem:[%s2741_s11 + $0x338] sm:$0xff]  ;;  %v343_v37 = vmul.f32 0.003921569, %v210_v35 }
  0x6c   : > { %2284 = vmatprep.mubr.msk.f32.mxu0 %vm2668_vm0, %v2669_v6  ;;  %2485 = vmatprep.mubr.msk.f32.mxu1 %vm2668_vm0, %v2669_v6  ;;  %v410_v38 = vmul.f32 0.003921569, %v277_v36  ;;  %v226_v36 = vld [vmem:[%s2741_s11 + $0x1a0] sm:$0xff] }
  0x6f   : > { %2285 = vmatmul.mubr.msk.f32.gmra.mrb[42].mxu0 %vm457_vm4, %v328_v40  ;;  %2486 = vmatmul.mubr.msk.f32.gmra.mrb[42].mxu1 %vm457_vm4, %v395_v41  ;;  %v278_v40 = vld [vmem:[%s2741_s11 + $0x340] sm:$0xff]  ;;  %v344_v41 = vmul.f32 0.003921569, %v211_v39 }
  0x70   : > { %2287 = vmatprep.mubr.msk.f32.mxu0 %vm2668_vm0, %v2669_v6  ;;  %2488 = vmatprep.mubr.msk.f32.mxu1 %vm2668_vm0, %v2669_v6  ;;  %v411_v42 = vmul.f32 0.003921569, %v278_v40  ;;  %v227_v40 = vld [vmem:[%s2741_s11 + $0x1a8] sm:$0xff] }
  0x73   : > { %2288 = vmatmul.mubr.msk.f32.gmra.mrb[44].mxu0 %vm457_vm4, %v329_v44  ;;  %2489 = vmatmul.mubr.msk.f32.gmra.mrb[44].mxu1 %vm457_vm4, %v396_v45  ;;  %v279_v44 = vld [vmem:[%s2741_s11 + $0x348] sm:$0xff]  ;;  %v345_v45 = vmul.f32 0.003921569, %v212_v43 }
  0x74   : > { %2290 = vmatprep.mubr.msk.f32.mxu0 %vm2668_vm0, %v2669_v6  ;;  %2491 = vmatprep.mubr.msk.f32.mxu1 %vm2668_vm0, %v2669_v6  ;;  %v412_v46 = vmul.f32 0.003921569, %v279_v44  ;;  %v3168_v44 = vld [vmem:[%s3692_s2] ss:$0 sm:$0xff] }
  0x77   : > { %2291 = vmatmul.mubr.msk.f32.gmra.mrb[46].mxu0 %vm457_vm4, %v330_v48  ;;  %2492 = vmatmul.mubr.msk.f32.gmra.mrb[46].mxu1 %vm457_vm4, %v397_v49  ;;  %v280_v48 = vld [vmem:[%s2741_s11 + $0x350] sm:$0xff]  ;;  %v346_v49 = vmul.f32 0.003921569, %v213_v47 }
  0x78   : > { %2293 = vmatprep.mubr.msk.f32.mxu0 %vm2668_vm0, %v2669_v6  ;;  %2494 = vmatprep.mubr.msk.f32.mxu1 %vm2668_vm0, %v2669_v6  ;;  %v413_v50 = vmul.f32 0.003921569, %v280_v48 }
  0x7b   : > { %2294 = vmatmul.mubr.msk.f32.gmra.mrb[48].mxu0 %vm457_vm4, %v331_v52  ;;  %2495 = vmatmul.mubr.msk.f32.gmra.mrb[48].mxu1 %vm457_vm4, %v398_v53  ;;  %v281_v52 = vld [vmem:[%s2741_s11 + $0x358] sm:$0xff]  ;;  %v347_v53 = vmul.f32 0.003921569, %v214_v51 }
  0x7c   : > { %2296 = vmatprep.mubr.msk.f32.mxu0 %vm2668_vm0, %v2669_v6  ;;  %2497 = vmatprep.mubr.msk.f32.mxu1 %vm2668_vm0, %v2669_v6  ;;  %v414_v54 = vmul.f32 0.003921569, %v281_v52 }
  0x7f   : > { %2297 = vmatmul.mubr.msk.f32.gmra.mrb[50].mxu0 %vm457_vm4, %v332_v56  ;;  %2498 = vmatmul.mubr.msk.f32.gmra.mrb[50].mxu1 %vm457_vm4, %v399_v57  ;;  %v282_v56 = vld [vmem:[%s2741_s11 + $0x360] sm:$0xff]  ;;  %v348_v57 = vmul.f32 0.003921569, %v215_v55  ;;  %v229_v55 = vld [vmem:[%s2741_s11 + $0x1b8] sm:$0xff] }
  0x80   : > { %2299 = vmatprep.mubr.msk.f32.mxu0 %vm2668_vm0, %v2669_v6  ;;  %2500 = vmatprep.mubr.msk.f32.mxu1 %vm2668_vm0, %v2669_v6  ;;  %v415_v58 = vmul.f32 0.003921569, %v282_v56  ;;  %v296_v56 = vld [vmem:[%s2741_s11 + $0x3d0] sm:$0xff] }
  0x83   : > { %2300 = vmatmul.mubr.msk.f32.gmra.mrb[52].mxu0 %vm457_vm4, %v333_v60  ;;  %2501 = vmatmul.mubr.msk.f32.gmra.mrb[52].mxu1 %vm457_vm4, %v400_v61  ;;  %v283_v60 = vld [vmem:[%s2741_s11 + $0x368] sm:$0xff]  ;;  %v349_v61 = vmul.f32 0.003921569, %v216_v59 }
  0x84   : > { %2302 = vmatprep.mubr.msk.f32.mxu0 %vm2668_vm0, %v2669_v6  ;;  %2503 = vmatprep.mubr.msk.f32.mxu1 %vm2668_vm0, %v2669_v6  ;;  %v416_v62 = vmul.f32 0.003921569, %v283_v60 }
  0x87   : > { %2303 = vmatmul.mubr.msk.f32.gmra.mrb[54].mxu0 %vm457_vm4, %v334_v0  ;;  %2504 = vmatmul.mubr.msk.f32.gmra.mrb[54].mxu1 %vm457_vm4, %v401_v1  ;;  %v284_v0 = vld [vmem:[%s2741_s11 + $0x370] sm:$0xff]  ;;  %v350_v1 = vmul.f32 0.003921569, %v217_v63 }
  0x88   : > { %2305 = vmatprep.mubr.msk.f32.mxu0 %vm2668_vm0, %v2669_v6  ;;  %2506 = vmatprep.mubr.msk.f32.mxu1 %vm2668_vm0, %v2669_v6  ;;  %v417_v2 = vmul.f32 0.003921569, %v284_v0 }
  0x8b   : > { %2306 = vmatmul.mubr.msk.f32.gmra.mrb[56].mxu0 %vm457_vm4, %v335_v4  ;;  %2507 = vmatmul.mubr.msk.f32.gmra.mrb[56].mxu1 %vm457_vm4, %v402_v5  ;;  %v285_v4 = vld [vmem:[%s2741_s11 + $0x378] sm:$0xff]  ;;  %v351_v5 = vmul.f32 0.003921569, %v218_v3  ;;  %v230_v3 = vld [vmem:[%s2741_s11 + $0x1c0] sm:$0xff] }
  0x8c   : > { %2308 = vmatprep.mubr.msk.f32.mxu0 %vm2668_vm0, %v2669_v6  ;;  %2509 = vmatprep.mubr.msk.f32.mxu1 %vm2668_vm0, %v2669_v6  ;;  %v418_v7 = vmul.f32 0.003921569, %v285_v4  ;;  %v297_v4 = vld [vmem:[%s2741_s11 + $0x3d8] sm:$0xff] }
  0x8f   : > { %2309 = vmatmul.mubr.msk.f32.gmra.mrb[58].mxu0 %vm457_vm4, %v336_v9  ;;  %2510 = vmatmul.mubr.msk.f32.gmra.mrb[58].mxu1 %vm457_vm4, %v403_v10  ;;  %v286_v9 = vld [vmem:[%s2741_s11 + $0x380] sm:$0xff]  ;;  %v352_v10 = vmul.f32 0.003921569, %v219_v8 }
  0x90   : > { %2311 = vmatprep.mubr.msk.f32.mxu0 %vm2668_vm0, %v2669_v6  ;;  %2512 = vmatprep.mubr.msk.f32.mxu1 %vm2668_vm0, %v2669_v6  ;;  %v419_v11 = vmul.f32 0.003921569, %v286_v9 }
  0x93   : > { %2312 = vmatmul.mubr.msk.f32.gmra.mrb[60].mxu0 %vm457_vm4, %v337_v13  ;;  %2513 = vmatmul.mubr.msk.f32.gmra.mrb[60].mxu1 %vm457_vm4, %v404_v14  ;;  %v287_v13 = vld [vmem:[%s2741_s11 + $0x388] sm:$0xff]  ;;  %v353_v14 = vmul.f32 0.003921569, %v220_v12 }
  0x94   : > { %2314 = vmatprep.mubr.msk.f32.mxu0 %vm2668_vm0, %v2669_v6  ;;  %2515 = vmatprep.mubr.msk.f32.mxu1 %vm2668_vm0, %v2669_v6  ;;  %v420_v15 = vmul.f32 0.003921569, %v287_v13 }
  0x97   : > { %2315 = vmatmul.mubr.msk.f32.gmra.mrb[62].mxu0 %vm457_vm4, %v338_v17  ;;  %2516 = vmatmul.mubr.msk.f32.gmra.mrb[62].mxu1 %vm457_vm4, %v405_v18  ;;  %v288_v17 = vld [vmem:[%s2741_s11 + $0x390] sm:$0xff]  ;;  %v354_v18 = vmul.f32 0.003921569, %v221_v16  ;;  %v231_v16 = vld [vmem:[%s2741_s11 + $0x1c8] sm:$0xff] }
  0x98   : > { %2317 = vmatprep.mubr.msk.f32.mxu0 %vm2668_vm0, %v2669_v6  ;;  %2518 = vmatprep.mubr.msk.f32.mxu1 %vm2668_vm0, %v2669_v6  ;;  %v421_v19 = vmul.f32 0.003921569, %v288_v17  ;;  %v298_v17 = vld [vmem:[%s2741_s11 + $0x3e0] sm:$0xff] }
  0x9b   : > { %2318 = vmatmul.mubr.msk.f32.gmra.mrb[64].mxu0 %vm457_vm4, %v339_v21  ;;  %2519 = vmatmul.mubr.msk.f32.gmra.mrb[64].mxu1 %vm457_vm4, %v406_v22  ;;  %v289_v21 = vld [vmem:[%s2741_s11 + $0x398] sm:$0xff]  ;;  %v355_v22 = vmul.f32 0.003921569, %v222_v20 }
  0x9c   : > { %2320 = vmatprep.mubr.msk.f32.mxu0 %vm2668_vm0, %v2669_v6  ;;  %2521 = vmatprep.mubr.msk.f32.mxu1 %vm2668_vm0, %v2669_v6  ;;  %v422_v23 = vmul.f32 0.003921569, %v289_v21 }
  0x9f   : > { %2321 = vmatmul.mubr.msk.f32.gmra.mrb[66].mxu0 %vm457_vm4, %v340_v25  ;;  %2522 = vmatmul.mubr.msk.f32.gmra.mrb[66].mxu1 %vm457_vm4, %v407_v26  ;;  %v290_v25 = vld [vmem:[%s2741_s11 + $0x3a0] sm:$0xff]  ;;  %v356_v26 = vmul.f32 0.003921569, %v223_v24 }
  0xa0   : > { %2323 = vmatprep.mubr.msk.f32.mxu0 %vm2668_vm0, %v2669_v6  ;;  %2524 = vmatprep.mubr.msk.f32.mxu1 %vm2668_vm0, %v2669_v6  ;;  %v423_v27 = vmul.f32 0.003921569, %v290_v25 }
  0xa3   : > { %2324 = vmatmul.mubr.msk.f32.gmra.mrb[68].mxu0 %vm457_vm4, %v341_v29  ;;  %2525 = vmatmul.mubr.msk.f32.gmra.mrb[68].mxu1 %vm457_vm4, %v408_v30  ;;  %v291_v29 = vld [vmem:[%s2741_s11 + $0x3a8] sm:$0xff]  ;;  %v357_v30 = vmul.f32 0.003921569, %v224_v28  ;;  %v232_v28 = vld [vmem:[%s2741_s11 + $0x1d0] sm:$0xff] }
  0xa4   : > { %2326 = vmatprep.mubr.msk.f32.mxu0 %vm2668_vm0, %v2669_v6  ;;  %2527 = vmatprep.mubr.msk.f32.mxu1 %vm2668_vm0, %v2669_v6  ;;  %v424_v31 = vmul.f32 0.003921569, %v291_v29  ;;  %v299_v29 = vld [vmem:[%s2741_s11 + $0x3e8] sm:$0xff] }
  0xa7   : > { %2327 = vmatmul.mubr.msk.f32.gmra.mrb[70].mxu0 %vm457_vm4, %v342_v33  ;;  %2528 = vmatmul.mubr.msk.f32.gmra.mrb[70].mxu1 %vm457_vm4, %v409_v34  ;;  %v292_v33 = vld [vmem:[%s2741_s11 + $0x3b0] sm:$0xff]  ;;  %v358_v34 = vmul.f32 0.003921569, %v225_v32 }
  0xa8   : > { %2329 = vmatprep.mubr.msk.f32.mxu0 %vm2668_vm0, %v2669_v6  ;;  %2530 = vmatprep.mubr.msk.f32.mxu1 %vm2668_vm0, %v2669_v6  ;;  %v425_v35 = vmul.f32 0.003921569, %v292_v33 }
  0xab   : > { %2330 = vmatmul.mubr.msk.f32.gmra.mrb[72].mxu0 %vm457_vm4, %v343_v37  ;;  %2531 = vmatmul.mubr.msk.f32.gmra.mrb[72].mxu1 %vm457_vm4, %v410_v38  ;;  %v293_v37 = vld [vmem:[%s2741_s11 + $0x3b8] sm:$0xff]  ;;  %v359_v38 = vmul.f32 0.003921569, %v226_v36 }
  0xac   : > { %2332 = vmatprep.mubr.msk.f32.mxu0 %vm2668_vm0, %v2669_v6  ;;  %2533 = vmatprep.mubr.msk.f32.mxu1 %vm2668_vm0, %v2669_v6  ;;  %v426_v39 = vmul.f32 0.003921569, %v293_v37 }
  0xaf   : > { %2333 = vmatmul.mubr.msk.f32.gmra.mrb[74].mxu0 %vm457_vm4, %v344_v41  ;;  %2534 = vmatmul.mubr.msk.f32.gmra.mrb[74].mxu1 %vm457_vm4, %v411_v42  ;;  %v294_v41 = vld [vmem:[%s2741_s11 + $0x3c0] sm:$0xff]  ;;  %v360_v42 = vmul.f32 0.003921569, %v227_v40  ;;  %v233_v40 = vld [vmem:[%s2741_s11 + $0x1d8] sm:$0xff] }
  0xb0   : > { %2335 = vmatprep.mubr.msk.f32.mxu0 %vm2668_vm0, %v2669_v6  ;;  %2536 = vmatprep.mubr.msk.f32.mxu1 %vm2668_vm0, %v2669_v6  ;;  %v427_v43 = vmul.f32 0.003921569, %v294_v41  ;;  %v300_v41 = vld [vmem:[%s2741_s11 + $0x3f0] sm:$0xff] }
  0xb3   : > { %2336 = vmatmul.mubr.msk.f32.gmra.mrb[76].mxu0 %vm457_vm4, %v345_v45  ;;  %2537 = vmatmul.mubr.msk.f32.gmra.mrb[76].mxu1 %vm457_vm4, %v412_v46  ;;  %v228_v45 = vld [vmem:[%s2741_s11 + $0x1b0] sm:$0xff]  ;;  %v295_v46 = vld [vmem:[%s2741_s11 + $0x3c8] sm:$0xff] }
  0xb4   : > { %2338 = vmatprep.mubr.msk.f32.mxu0 %vm2668_vm0, %v2669_v6  ;;  %2539 = vmatprep.mubr.msk.f32.mxu1 %vm2668_vm0, %v2669_v6 }
  0xb7   : > { %2339 = vmatmul.mubr.msk.f32.gmra.mrb[78].mxu0 %vm457_vm4, %v346_v49  ;;  %2540 = vmatmul.mubr.msk.f32.gmra.mrb[78].mxu1 %vm457_vm4, %v413_v50 }
  0xb8   : > { %2341 = vmatprep.mubr.msk.f32.mxu0 %vm2668_vm0, %v2669_v6  ;;  %2542 = vmatprep.mubr.msk.f32.mxu1 %vm2668_vm0, %v2669_v6 }
  0xbb   : > { %2342 = vmatmul.mubr.msk.f32.gmra.mrb[80].mxu0 %vm457_vm4, %v347_v53  ;;  %2543 = vmatmul.mubr.msk.f32.gmra.mrb[80].mxu1 %vm457_vm4, %v414_v54  ;;  %v361_v53 = vmul.f32 0.003921569, %v228_v45  ;;  %v428_v54 = vmul.f32 0.003921569, %v295_v46 }
  0xbc   : > { %2344 = vmatprep.mubr.msk.f32.mxu0 %vm2668_vm0, %v2669_v6  ;;  %2545 = vmatprep.mubr.msk.f32.mxu1 %vm2668_vm0, %v2669_v6 }
  0xbf   : > { %2345 = vmatmul.mubr.msk.f32.gmra.mrb[82].mxu0 %vm457_vm4, %v348_v57  ;;  %2546 = vmatmul.mubr.msk.f32.gmra.mrb[82].mxu1 %vm457_vm4, %v415_v58 }
  0xc0   : > { %2347 = vmatprep.mubr.msk.f32.mxu0 %vm2668_vm0, %v2669_v6  ;;  %2548 = vmatprep.mubr.msk.f32.mxu1 %vm2668_vm0, %v2669_v6 }
  0xc3   : > { %2348 = vmatmul.mubr.msk.f32.gmra.mrb[84].mxu0 %vm457_vm4, %v349_v61  ;;  %2549 = vmatmul.mubr.msk.f32.gmra.mrb[84].mxu1 %vm457_vm4, %v416_v62 }
  0xc4   : > { %2350 = vmatprep.mubr.msk.f32.mxu0 %vm2668_vm0, %v2669_v6  ;;  %2551 = vmatprep.mubr.msk.f32.mxu1 %vm2668_vm0, %v2669_v6 }
  0xc7   : > { %2351 = vmatmul.mubr.msk.f32.gmra.mrb[86].mxu0 %vm457_vm4, %v350_v1  ;;  %2552 = vmatmul.mubr.msk.f32.gmra.mrb[86].mxu1 %vm457_vm4, %v417_v2  ;;  %v362_v1 = vmul.f32 0.003921569, %v229_v55  ;;  %v429_v2 = vmul.f32 0.003921569, %v296_v56 }
  0xc8   : > { %2353 = vmatprep.mubr.msk.f32.mxu0 %vm2668_vm0, %v2669_v6  ;;  %2554 = vmatprep.mubr.msk.f32.mxu1 %vm2668_vm0, %v2669_v6 }
  0xcb   : > { %2354 = vmatmul.mubr.msk.f32.gmra.mrb[88].mxu0 %vm457_vm4, %v351_v5  ;;  %2555 = vmatmul.mubr.msk.f32.gmra.mrb[88].mxu1 %vm457_vm4, %v418_v7 }
  0xcc   : > { %2356 = vmatprep.mubr.msk.f32.mxu0 %vm2668_vm0, %v2669_v6  ;;  %2557 = vmatprep.mubr.msk.f32.mxu1 %vm2668_vm0, %v2669_v6 }
  0xcf   : > { %2357 = vmatmul.mubr.msk.f32.gmra.mrb[90].mxu0 %vm457_vm4, %v352_v10  ;;  %2558 = vmatmul.mubr.msk.f32.gmra.mrb[90].mxu1 %vm457_vm4, %v419_v11 }
  0xd0   : > { %2359 = vmatprep.mubr.msk.f32.mxu0 %vm2668_vm0, %v2669_v6  ;;  %2560 = vmatprep.mubr.msk.f32.mxu1 %vm2668_vm0, %v2669_v6 }
  0xd3   : > { %2360 = vmatmul.mubr.msk.f32.gmra.mrb[92].mxu0 %vm457_vm4, %v353_v14  ;;  %2561 = vmatmul.mubr.msk.f32.gmra.mrb[92].mxu1 %vm457_vm4, %v420_v15  ;;  %v363_v14 = vmul.f32 0.003921569, %v230_v3  ;;  %v430_v15 = vmul.f32 0.003921569, %v297_v4 }
  0xd4   : > { %2362 = vmatprep.mubr.msk.f32.mxu0 %vm2668_vm0, %v2669_v6  ;;  %2563 = vmatprep.mubr.msk.f32.mxu1 %vm2668_vm0, %v2669_v6 }
  0xd7   : > { %2363 = vmatmul.mubr.msk.f32.gmra.mrb[94].mxu0 %vm457_vm4, %v354_v18  ;;  %2564 = vmatmul.mubr.msk.f32.gmra.mrb[94].mxu1 %vm457_vm4, %v421_v19 }
  0xd8   : > { %2365 = vmatprep.mubr.msk.f32.mxu0 %vm2668_vm0, %v2669_v6  ;;  %2566 = vmatprep.mubr.msk.f32.mxu1 %vm2668_vm0, %v2669_v6 }
  0xdb   : > { %2366 = vmatmul.mubr.msk.f32.gmra.mrb[96].mxu0 %vm457_vm4, %v355_v22  ;;  %2567 = vmatmul.mubr.msk.f32.gmra.mrb[96].mxu1 %vm457_vm4, %v422_v23 }
  0xdc   : > { %2368 = vmatprep.mubr.msk.f32.mxu0 %vm2668_vm0, %v2669_v6  ;;  %2569 = vmatprep.mubr.msk.f32.mxu1 %vm2668_vm0, %v2669_v6 }
  0xdf   : > { %2369 = vmatmul.mubr.msk.f32.gmra.mrb[98].mxu0 %vm457_vm4, %v356_v26  ;;  %2570 = vmatmul.mubr.msk.f32.gmra.mrb[98].mxu1 %vm457_vm4, %v423_v27  ;;  %v364_v26 = vmul.f32 0.003921569, %v231_v16  ;;  %v431_v27 = vmul.f32 0.003921569, %v298_v17 }
  0xe0   : > { %2371 = vmatprep.mubr.msk.f32.mxu0 %vm2668_vm0, %v2669_v6  ;;  %2572 = vmatprep.mubr.msk.f32.mxu1 %vm2668_vm0, %v2669_v6 }
  0xe3   : > { %2372 = vmatmul.mubr.msk.f32.gmra.mrb[100].mxu0 %vm457_vm4, %v357_v30  ;;  %2573 = vmatmul.mubr.msk.f32.gmra.mrb[100].mxu1 %vm457_vm4, %v424_v31 }
  0xe4   : > { %2374 = vmatprep.mubr.msk.f32.mxu0 %vm2668_vm0, %v2669_v6  ;;  %2575 = vmatprep.mubr.msk.f32.mxu1 %vm2668_vm0, %v2669_v6 }
  0xe7   : > { %2375 = vmatmul.mubr.msk.f32.gmra.mrb[102].mxu0 %vm457_vm4, %v358_v34  ;;  %2576 = vmatmul.mubr.msk.f32.gmra.mrb[102].mxu1 %vm457_vm4, %v425_v35 }
  0xe8   : > { %2377 = vmatprep.mubr.msk.f32.mxu0 %vm2668_vm0, %v2669_v6  ;;  %2578 = vmatprep.mubr.msk.f32.mxu1 %vm2668_vm0, %v2669_v6 }
  0xeb   : > { %2378 = vmatmul.mubr.msk.f32.gmra.mrb[104].mxu0 %vm457_vm4, %v359_v38  ;;  %2579 = vmatmul.mubr.msk.f32.gmra.mrb[104].mxu1 %vm457_vm4, %v426_v39  ;;  %v365_v38 = vmul.f32 0.003921569, %v232_v28  ;;  %v432_v39 = vmul.f32 0.003921569, %v299_v29 }
  0xec   : > { %2380 = vmatprep.mubr.msk.f32.mxu0 %vm2668_vm0, %v2669_v6  ;;  %2581 = vmatprep.mubr.msk.f32.mxu1 %vm2668_vm0, %v2669_v6 }
  0xee   : > { %v927_v47 = vpop.f32.mrb[0].mxu0  ;;  %v1262_v48 = vpop.f32.mrb[0].mxu1 }
  0xef   : > { %v928_v49 = vadd.f32 %v3168_v44, %v927_v47  ;;  %v2223_v50 = vpop.f32.mrb[1].mxu0  ;;  %2381 = vmatmul.mubr.msk.f32.gmra.mrb[106].mxu0 %vm457_vm4, %v360_v42  ;;  %v1263_v51 = vadd.f32 %v3168_v44, %v1262_v48  ;;  %v2424_v52 = vpop.f32.mrb[1].mxu1  ;;  %2582 = vmatmul.mubr.msk.f32.gmra.mrb[106].mxu1 %vm457_vm4, %v427_v43 }
  0xf0   : > { %2383 = vmatprep.mubr.msk.f32.mxu0 %vm2668_vm0, %v2669_v6  ;;  %2584 = vmatprep.mubr.msk.f32.mxu1 %vm2668_vm0, %v2669_v6  ;;  %v433_v52 = vmul.f32 0.003921569, %v300_v41 }
  0xf1   : > { %v1591_v57 = vmax.f32 %v928_v49, 0.0  ;;  %v1658_v58 = vmax.f32 %v1263_v51, 0.0  ;;  %v366_v51 = vmul.f32 0.003921569, %v233_v40 }
  0xf2   : > { %v932_v59 = vpop.f32.mrb[2].mxu0  ;;  %v1267_v60 = vpop.f32.mrb[2].mxu1 }
  0xf3   : > { %1725 = vst.msk [vmem:[%s3185_s17] sm:$0xff] %vm1724_vm5, %v1591_v57  ;;  %1792 = vst.msk [vmem:[%s3185_s17 + $0x218] sm:$0xff] %vm1724_vm5, %v1658_v58  ;;  %v933_v61 = vadd.f32 %v3168_v44, %v932_v59  ;;  %v2226_v62 = vpop.f32.mrb[3].mxu0  ;;  %2384 = vmatmul.mubr.msk.f32.gmra.mrb[108].mxu0 %vm457_vm4, %v361_v53  ;;  %v1268_v63 = vadd.f32 %v3168_v44, %v1267_v60  ;;  %v2427_v0 = vpop.f32.mrb[3].mxu1  ;;  %2585 = vmatmul.mubr.msk.f32.gmra.mrb[108].mxu1 %vm457_vm4, %v428_v54  ;;  %v234_v53 = vld [vmem:[%s2741_s11 + $0x1e0] sm:$0xff]  ;;  %v301_v54 = vld [vmem:[%s2741_s11 + $0x3f8] sm:$0xff] }
  0xf4   : > { %2386 = vmatprep.mubr.msk.f32.mxu0 %vm2668_vm0, %v2669_v6  ;;  %2587 = vmatprep.mubr.msk.f32.mxu1 %vm2668_vm0, %v2669_v6  ;;  %v434_v0 = vmul.f32 0.003921569, %v301_v54 }
  0xf5   : > { %v1592_v5 = vmax.f32 %v933_v61, 0.0  ;;  %v1659_v7 = vmax.f32 %v1268_v63, 0.0  ;;  %v367_v63 = vmul.f32 0.003921569, %v234_v53 }
  0xf6   : > { %v937_v8 = vpop.f32.mrb[4].mxu0  ;;  %v1272_v9 = vpop.f32.mrb[4].mxu1 }
  0xf7   : > { %1726 = vst.msk [vmem:[%s3185_s17 + $0x8] sm:$0xff] %vm1724_vm5, %v1592_v5  ;;  %1793 = vst.msk [vmem:[%s3185_s17 + $0x220] sm:$0xff] %vm1724_vm5, %v1659_v7  ;;  %v938_v10 = vadd.f32 %v3168_v44, %v937_v8  ;;  %v2229_v11 = vpop.f32.mrb[5].mxu0  ;;  %2387 = vmatmul.mubr.msk.f32.gmra.mrb[110].mxu0 %vm457_vm4, %v362_v1  ;;  %v1273_v12 = vadd.f32 %v3168_v44, %v1272_v9  ;;  %v2430_v13 = vpop.f32.mrb[5].mxu1  ;;  %2588 = vmatmul.mubr.msk.f32.gmra.mrb[110].mxu1 %vm457_vm4, %v429_v2  ;;  %v235_v1 = vld [vmem:[%s2741_s11 + $0x1e8] sm:$0xff]  ;;  %v302_v2 = vld [vmem:[%s2741_s11 + $0x400] sm:$0xff] }
  0xf8   : > { %2389 = vmatprep.mubr.msk.f32.mxu0 %vm2668_vm0, %v2669_v6  ;;  %2590 = vmatprep.mubr.msk.f32.mxu1 %vm2668_vm0, %v2669_v6  ;;  %v435_v13 = vmul.f32 0.003921569, %v302_v2 }
  0xf9   : > { %v1593_v18 = vmax.f32 %v938_v10, 0.0  ;;  %v1660_v19 = vmax.f32 %v1273_v12, 0.0  ;;  %v368_v12 = vmul.f32 0.003921569, %v235_v1 }
  0xfa   : > { %v942_v20 = vpop.f32.mrb[6].mxu0  ;;  %v1277_v21 = vpop.f32.mrb[6].mxu1 }
  0xfb   : > { %1727 = vst.msk [vmem:[%s3185_s17 + $0x10] sm:$0xff] %vm1724_vm5, %v1593_v18  ;;  %1794 = vst.msk [vmem:[%s3185_s17 + $0x228] sm:$0xff] %vm1724_vm5, %v1660_v19  ;;  %v943_v22 = vadd.f32 %v3168_v44, %v942_v20  ;;  %v2232_v23 = vpop.f32.mrb[7].mxu0  ;;  %2390 = vmatmul.mubr.msk.f32.gmra.mrb[112].mxu0 %vm457_vm4, %v363_v14  ;;  %v1278_v24 = vadd.f32 %v3168_v44, %v1277_v21  ;;  %v2433_v25 = vpop.f32.mrb[7].mxu1  ;;  %2591 = vmatmul.mubr.msk.f32.gmra.mrb[112].mxu1 %vm457_vm4, %v430_v15  ;;  %v236_v14 = vld [vmem:[%s2741_s11 + $0x1f0] sm:$0xff]  ;;  %v303_v15 = vld [vmem:[%s2741_s11 + $0x408] sm:$0xff] }
  0xfc   : > { %2392 = vmatprep.mubr.msk.f32.mxu0 %vm2668_vm0, %v2669_v6  ;;  %2593 = vmatprep.mubr.msk.f32.mxu1 %vm2668_vm0, %v2669_v6  ;;  %v436_v25 = vmul.f32 0.003921569, %v303_v15 }
  0xfd   : > { %v1594_v30 = vmax.f32 %v943_v22, 0.0  ;;  %v1661_v31 = vmax.f32 %v1278_v24, 0.0  ;;  %v369_v24 = vmul.f32 0.003921569, %v236_v14 }
  0xfe   : > { %v947_v32 = vpop.f32.mrb[8].mxu0  ;;  %v1282_v33 = vpop.f32.mrb[8].mxu1 }
  0xff   : > { %1728 = vst.msk [vmem:[%s3185_s17 + $0x18] sm:$0xff] %vm1724_vm5, %v1594_v30  ;;  %1795 = vst.msk [vmem:[%s3185_s17 + $0x230] sm:$0xff] %vm1724_vm5, %v1661_v31  ;;  %v948_v34 = vadd.f32 %v3168_v44, %v947_v32  ;;  %v2235_v35 = vpop.f32.mrb[9].mxu0  ;;  %2393 = vmatmul.mubr.msk.f32.gmra.mrb[114].mxu0 %vm457_vm4, %v364_v26  ;;  %v1283_v36 = vadd.f32 %v3168_v44, %v1282_v33  ;;  %v2436_v37 = vpop.f32.mrb[9].mxu1  ;;  %2594 = vmatmul.mubr.msk.f32.gmra.mrb[114].mxu1 %vm457_vm4, %v431_v27  ;;  %v237_v26 = vld [vmem:[%s2741_s11 + $0x1f8] sm:$0xff]  ;;  %v304_v27 = vld [vmem:[%s2741_s11 + $0x410] sm:$0xff] }
 0x100   : > { %2395 = vmatprep.mubr.msk.f32.mxu0 %vm2668_vm0, %v2669_v6  ;;  %2596 = vmatprep.mubr.msk.f32.mxu1 %vm2668_vm0, %v2669_v6  ;;  %v437_v37 = vmul.f32 0.003921569, %v304_v27 }
 0x101   : > { %v1595_v42 = vmax.f32 %v948_v34, 0.0  ;;  %v1662_v43 = vmax.f32 %v1283_v36, 0.0  ;;  %v370_v36 = vmul.f32 0.003921569, %v237_v26 }
 0x102   : > { %v952_v45 = vpop.f32.mrb[10].mxu0  ;;  %v1287_v46 = vpop.f32.mrb[10].mxu1 }
 0x103   : > { %1729 = vst.msk [vmem:[%s3185_s17 + $0x20] sm:$0xff] %vm1724_vm5, %v1595_v42  ;;  %1796 = vst.msk [vmem:[%s3185_s17 + $0x238] sm:$0xff] %vm1724_vm5, %v1662_v43  ;;  %v953_v47 = vadd.f32 %v3168_v44, %v952_v45  ;;  %v2238_v48 = vpop.f32.mrb[11].mxu0  ;;  %2396 = vmatmul.mubr.msk.f32.gmra.mrb[116].mxu0 %vm457_vm4, %v365_v38  ;;  %v1288_v49 = vadd.f32 %v3168_v44, %v1287_v46  ;;  %v2439_v50 = vpop.f32.mrb[11].mxu1  ;;  %2597 = vmatmul.mubr.msk.f32.gmra.mrb[116].mxu1 %vm457_vm4, %v432_v39  ;;  %v238_v38 = vld [vmem:[%s2741_s11 + $0x200] sm:$0xff]  ;;  %v305_v39 = vld [vmem:[%s2741_s11 + $0x418] sm:$0xff] }
 0x104   : > { %2398 = vmatprep.mubr.msk.f32.mxu0 %vm2668_vm0, %v2669_v6  ;;  %2599 = vmatprep.mubr.msk.f32.mxu1 %vm2668_vm0, %v2669_v6  ;;  %v438_v50 = vmul.f32 0.003921569, %v305_v39 }
 0x105   : > { %v1596_v55 = vmax.f32 %v953_v47, 0.0  ;;  %v1663_v56 = vmax.f32 %v1288_v49, 0.0  ;;  %v371_v49 = vmul.f32 0.003921569, %v238_v38 }
 0x106   : > { %v957_v57 = vpop.f32.mrb[12].mxu0  ;;  %v1292_v58 = vpop.f32.mrb[12].mxu1 }
 0x107   : > { %1730 = vst.msk [vmem:[%s3185_s17 + $0x28] sm:$0xff] %vm1724_vm5, %v1596_v55  ;;  %1797 = vst.msk [vmem:[%s3185_s17 + $0x240] sm:$0xff] %vm1724_vm5, %v1663_v56  ;;  %v958_v59 = vadd.f32 %v3168_v44, %v957_v57  ;;  %v2241_v60 = vpop.f32.mrb[13].mxu0  ;;  %2399 = vmatmul.mubr.msk.f32.gmra.mrb[118].mxu0 %vm457_vm4, %v366_v51  ;;  %v1293_v61 = vadd.f32 %v3168_v44, %v1292_v58  ;;  %v2442_v62 = vpop.f32.mrb[13].mxu1  ;;  %2600 = vmatmul.mubr.msk.f32.gmra.mrb[118].mxu1 %vm457_vm4, %v433_v52  ;;  %v239_v51 = vld [vmem:[%s2741_s11 + $0x208] sm:$0xff]  ;;  %v306_v52 = vld [vmem:[%s2741_s11 + $0x420] sm:$0xff] }
 0x108   : > { %2401 = vmatprep.mubr.msk.f32.mxu0 %vm2668_vm0, %v2669_v6  ;;  %2602 = vmatprep.mubr.msk.f32.mxu1 %vm2668_vm0, %v2669_v6  ;;  %v439_v62 = vmul.f32 0.003921569, %v306_v52 }
 0x109   : > { %v1597_v3 = vmax.f32 %v958_v59, 0.0  ;;  %v1664_v4 = vmax.f32 %v1293_v61, 0.0  ;;  %v372_v61 = vmul.f32 0.003921569, %v239_v51 }
 0x10a   : > { %v962_v5 = vpop.f32.mrb[14].mxu0  ;;  %v1297_v7 = vpop.f32.mrb[14].mxu1 }
 0x10b   : > { %1731 = vst.msk [vmem:[%s3185_s17 + $0x30] sm:$0xff] %vm1724_vm5, %v1597_v3  ;;  %1798 = vst.msk [vmem:[%s3185_s17 + $0x248] sm:$0xff] %vm1724_vm5, %v1664_v4  ;;  %v963_v8 = vadd.f32 %v3168_v44, %v962_v5  ;;  %v2244_v9 = vpop.f32.mrb[15].mxu0  ;;  %2402 = vmatmul.mubr.msk.f32.gmra.mrb[120].mxu0 %vm457_vm4, %v367_v63  ;;  %v1298_v10 = vadd.f32 %v3168_v44, %v1297_v7  ;;  %v2445_v11 = vpop.f32.mrb[15].mxu1  ;;  %2603 = vmatmul.mubr.msk.f32.gmra.mrb[120].mxu1 %vm457_vm4, %v434_v0  ;;  %v240_v63 = vld [vmem:[%s2741_s11 + $0x210] sm:$0xff] }
 0x10c   : > { %2404 = vmatprep.mubr.msk.f32.mxu0 %vm2668_vm0, %v2669_v6  ;;  %2605 = vmatprep.mubr.msk.f32.mxu1 %vm2668_vm0, %v2669_v6  ;;  %v373_v9 = vmul.f32 0.003921569, %v240_v63 }
 0x10d   : > { %v1598_v16 = vmax.f32 %v963_v8, 0.0  ;;  %v1665_v17 = vmax.f32 %v1298_v10, 0.0 }
 0x10e   : > { %v967_v18 = vpop.f32.mrb[16].mxu0  ;;  %v1302_v19 = vpop.f32.mrb[16].mxu1 }
 0x10f   : > { %1732 = vst.msk [vmem:[%s3185_s17 + $0x38] sm:$0xff] %vm1724_vm5, %v1598_v16  ;;  %1799 = vst.msk [vmem:[%s3185_s17 + $0x250] sm:$0xff] %vm1724_vm5, %v1665_v17  ;;  %v968_v20 = vadd.f32 %v3168_v44, %v967_v18  ;;  %v2247_v21 = vpop.f32.mrb[17].mxu0  ;;  %2405 = vmatmul.mubr.msk.f32.gmra.mrb[122].mxu0 %vm457_vm4, %v368_v12  ;;  %v1303_v22 = vadd.f32 %v3168_v44, %v1302_v19  ;;  %v2448_v23 = vpop.f32.mrb[17].mxu1  ;;  %2606 = vmatmul.mubr.msk.f32.gmra.mrb[122].mxu1 %vm457_vm4, %v435_v13 }
 0x110   : > { %2407 = vmatprep.mubr.msk.f32.mxu0 %vm2668_vm0, %v2669_v6  ;;  %2608 = vmatprep.mubr.msk.f32.mxu1 %vm2668_vm0, %v2669_v6 }
 0x111   : > { %v1599_v28 = vmax.f32 %v968_v20, 0.0  ;;  %v1666_v29 = vmax.f32 %v1303_v22, 0.0 }
 0x112   : > { %v972_v30 = vpop.f32.mrb[18].mxu0  ;;  %v1307_v31 = vpop.f32.mrb[18].mxu1 }
 0x113   : > { %1733 = vst.msk [vmem:[%s3185_s17 + $0x40] sm:$0xff] %vm1724_vm5, %v1599_v28  ;;  %1800 = vst.msk [vmem:[%s3185_s17 + $0x258] sm:$0xff] %vm1724_vm5, %v1666_v29  ;;  %v973_v32 = vadd.f32 %v3168_v44, %v972_v30  ;;  %v2250_v33 = vpop.f32.mrb[19].mxu0  ;;  %2408 = vmatmul.mubr.msk.f32.gmra.mrb[124].mxu0 %vm457_vm4, %v369_v24  ;;  %v1308_v34 = vadd.f32 %v3168_v44, %v1307_v31  ;;  %v2451_v35 = vpop.f32.mrb[19].mxu1  ;;  %2609 = vmatmul.mubr.msk.f32.gmra.mrb[124].mxu1 %vm457_vm4, %v436_v25 }
 0x114   : > { %2410 = vmatprep.mubr.msk.f32.mxu0 %vm2668_vm0, %v2669_v6  ;;  %2611 = vmatprep.mubr.msk.f32.mxu1 %vm2668_vm0, %v2669_v6 }
 0x115   : > { %v1600_v40 = vmax.f32 %v973_v32, 0.0  ;;  %v1667_v41 = vmax.f32 %v1308_v34, 0.0 }
 0x116   : > { %v977_v42 = vpop.f32.mrb[20].mxu0  ;;  %v1312_v43 = vpop.f32.mrb[20].mxu1 }
 0x117   : > { %1734 = vst.msk [vmem:[%s3185_s17 + $0x48] sm:$0xff] %vm1724_vm5, %v1600_v40  ;;  %1801 = vst.msk [vmem:[%s3185_s17 + $0x260] sm:$0xff] %vm1724_vm5, %v1667_v41  ;;  %v978_v45 = vadd.f32 %v3168_v44, %v977_v42  ;;  %v2253_v46 = vpop.f32.mrb[21].mxu0  ;;  %2411 = vmatmul.mubr.msk.f32.gmra.mrb[126].mxu0 %vm457_vm4, %v370_v36  ;;  %v1313_v47 = vadd.f32 %v3168_v44, %v1312_v43  ;;  %v2454_v48 = vpop.f32.mrb[21].mxu1  ;;  %2612 = vmatmul.mubr.msk.f32.gmra.mrb[126].mxu1 %vm457_vm4, %v437_v37 }
 0x118   : > { %2413 = vmatprep.mubr.msk.f32.mxu0 %vm2668_vm0, %v2669_v6  ;;  %2614 = vmatprep.mubr.msk.f32.mxu1 %vm2668_vm0, %v2669_v6 }
 0x119   : > { %v1601_v53 = vmax.f32 %v978_v45, 0.0  ;;  %v1668_v54 = vmax.f32 %v1313_v47, 0.0 }
 0x11a   : > { %v982_v55 = vpop.f32.mrb[22].mxu0  ;;  %v1317_v56 = vpop.f32.mrb[22].mxu1 }
 0x11b   : > { %1735 = vst.msk [vmem:[%s3185_s17 + $0x50] sm:$0xff] %vm1724_vm5, %v1601_v53  ;;  %1802 = vst.msk [vmem:[%s3185_s17 + $0x268] sm:$0xff] %vm1724_vm5, %v1668_v54  ;;  %v983_v57 = vadd.f32 %v3168_v44, %v982_v55  ;;  %v2256_v58 = vpop.f32.mrb[23].mxu0  ;;  %2414 = vmatmul.mubr.msk.f32.gmra.mrb[128].mxu0 %vm457_vm4, %v371_v49  ;;  %v1318_v59 = vadd.f32 %v3168_v44, %v1317_v56  ;;  %v2457_v60 = vpop.f32.mrb[23].mxu1  ;;  %2615 = vmatmul.mubr.msk.f32.gmra.mrb[128].mxu1 %vm457_vm4, %v438_v50 }
 0x11c   : > { %2416 = vmatprep.mubr.msk.f32.mxu0 %vm2668_vm0, %v2669_v6  ;;  %2617 = vmatprep.mubr.msk.f32.mxu1 %vm2668_vm0, %v2669_v6 }
 0x11d   : > { %v1602_v0 = vmax.f32 %v983_v57, 0.0  ;;  %v1669_v1 = vmax.f32 %v1318_v59, 0.0 }
 0x11e   : > { %v987_v2 = vpop.f32.mrb[24].mxu0  ;;  %v1322_v3 = vpop.f32.mrb[24].mxu1 }
 0x11f   : > { %1736 = vst.msk [vmem:[%s3185_s17 + $0x58] sm:$0xff] %vm1724_vm5, %v1602_v0  ;;  %1803 = vst.msk [vmem:[%s3185_s17 + $0x270] sm:$0xff] %vm1724_vm5, %v1669_v1  ;;  %v988_v4 = vadd.f32 %v3168_v44, %v987_v2  ;;  %v2259_v5 = vpop.f32.mrb[25].mxu0  ;;  %2417 = vmatmul.mubr.msk.f32.gmra.mrb[130].mxu0 %vm457_vm4, %v372_v61  ;;  %v1323_v7 = vadd.f32 %v3168_v44, %v1322_v3  ;;  %v2460_v8 = vpop.f32.mrb[25].mxu1  ;;  %2618 = vmatmul.mubr.msk.f32.gmra.mrb[130].mxu1 %vm457_vm4, %v439_v62 }
 0x120   : > { %2419 = vmatprep.mubr.msk.f32.mxu0 %vm2668_vm0, %v2669_v6 }
 0x121   : > { %v1603_v10 = vmax.f32 %v988_v4, 0.0  ;;  %v1670_v11 = vmax.f32 %v1323_v7, 0.0 }
 0x122   : > { %v992_v12 = vpop.f32.mrb[26].mxu0  ;;  %v1327_v13 = vpop.f32.mrb[26].mxu1 }
 0x123   : > { %1737 = vst.msk [vmem:[%s3185_s17 + $0x60] sm:$0xff] %vm1724_vm5, %v1603_v10  ;;  %1804 = vst.msk [vmem:[%s3185_s17 + $0x278] sm:$0xff] %vm1724_vm5, %v1670_v11  ;;  %v993_v14 = vadd.f32 %v3168_v44, %v992_v12  ;;  %v2262_v15 = vpop.f32.mrb[27].mxu0  ;;  %2420 = vmatmul.mubr.msk.f32.gmra.mrb[132].mxu0 %vm457_vm4, %v373_v9  ;;  %v1328_v16 = vadd.f32 %v3168_v44, %v1327_v13  ;;  %v2463_v17 = vpop.f32.mrb[27].mxu1 }
 0x125   : > { %v1604_v6 = vmax.f32 %v993_v14, 0.0  ;;  %v1671_v18 = vmax.f32 %v1328_v16, 0.0 }
 0x126   : > { %v997_v19 = vpop.f32.mrb[28].mxu0  ;;  %v1332_v20 = vpop.f32.mrb[28].mxu1 }
 0x127   : > { %1738 = vst.msk [vmem:[%s3185_s17 + $0x68] sm:$0xff] %vm1724_vm5, %v1604_v6  ;;  %1805 = vst.msk [vmem:[%s3185_s17 + $0x280] sm:$0xff] %vm1724_vm5, %v1671_v18  ;;  %v998_v21 = vadd.f32 %v3168_v44, %v997_v19  ;;  %v2265_v22 = vpop.f32.mrb[29].mxu0  ;;  %v1333_v23 = vadd.f32 %v3168_v44, %v1332_v20  ;;  %v2466_v24 = vpop.f32.mrb[29].mxu1 }
 0x129   : > { %v1605_v25 = vmax.f32 %v998_v21, 0.0  ;;  %v1672_v26 = vmax.f32 %v1333_v23, 0.0 }
 0x12a   : > { %v1002_v27 = vpop.f32.mrb[30].mxu0  ;;  %v1337_v28 = vpop.f32.mrb[30].mxu1 }
 0x12b   : > { %1739 = vst.msk [vmem:[%s3185_s17 + $0x70] sm:$0xff] %vm1724_vm5, %v1605_v25  ;;  %1806 = vst.msk [vmem:[%s3185_s17 + $0x288] sm:$0xff] %vm1724_vm5, %v1672_v26  ;;  %v1003_v29 = vadd.f32 %v3168_v44, %v1002_v27  ;;  %v2268_v30 = vpop.f32.mrb[31].mxu0  ;;  %v1338_v31 = vadd.f32 %v3168_v44, %v1337_v28  ;;  %v2469_v32 = vpop.f32.mrb[31].mxu1 }
 0x12d   : > { %v1606_v33 = vmax.f32 %v1003_v29, 0.0  ;;  %v1673_v34 = vmax.f32 %v1338_v31, 0.0 }
 0x12e   : > { %v1007_v35 = vpop.f32.mrb[32].mxu0  ;;  %v1342_v36 = vpop.f32.mrb[32].mxu1 }
 0x12f   : > { %1740 = vst.msk [vmem:[%s3185_s17 + $0x78] sm:$0xff] %vm1724_vm5, %v1606_v33  ;;  %1807 = vst.msk [vmem:[%s3185_s17 + $0x290] sm:$0xff] %vm1724_vm5, %v1673_v34  ;;  %v1008_v37 = vadd.f32 %v3168_v44, %v1007_v35  ;;  %v2271_v38 = vpop.f32.mrb[33].mxu0  ;;  %v1343_v39 = vadd.f32 %v3168_v44, %v1342_v36  ;;  %v2472_v40 = vpop.f32.mrb[33].mxu1 }
 0x131   : > { %v1607_v41 = vmax.f32 %v1008_v37, 0.0  ;;  %v1674_v42 = vmax.f32 %v1343_v39, 0.0 }
 0x132   : > { %v1012_v43 = vpop.f32.mrb[34].mxu0  ;;  %v1347_v45 = vpop.f32.mrb[34].mxu1 }
 0x133   : > { %1741 = vst.msk [vmem:[%s3185_s17 + $0x80] sm:$0xff] %vm1724_vm5, %v1607_v41  ;;  %1808 = vst.msk [vmem:[%s3185_s17 + $0x298] sm:$0xff] %vm1724_vm5, %v1674_v42  ;;  %v1013_v46 = vadd.f32 %v3168_v44, %v1012_v43  ;;  %v2274_v47 = vpop.f32.mrb[35].mxu0  ;;  %v1348_v48 = vadd.f32 %v3168_v44, %v1347_v45  ;;  %v2475_v49 = vpop.f32.mrb[35].mxu1 }
 0x135   : > { %v1608_v50 = vmax.f32 %v1013_v46, 0.0  ;;  %v1675_v51 = vmax.f32 %v1348_v48, 0.0 }
 0x136   : > { %v1017_v52 = vpop.f32.mrb[36].mxu0  ;;  %v1352_v53 = vpop.f32.mrb[36].mxu1 }
 0x137   : > { %1742 = vst.msk [vmem:[%s3185_s17 + $0x88] sm:$0xff] %vm1724_vm5, %v1608_v50  ;;  %1809 = vst.msk [vmem:[%s3185_s17 + $0x2a0] sm:$0xff] %vm1724_vm5, %v1675_v51  ;;  %v1018_v54 = vadd.f32 %v3168_v44, %v1017_v52  ;;  %v2277_v55 = vpop.f32.mrb[37].mxu0  ;;  %v1353_v56 = vadd.f32 %v3168_v44, %v1352_v53  ;;  %v2478_v57 = vpop.f32.mrb[37].mxu1 }
 0x139   : > { %v1609_v58 = vmax.f32 %v1018_v54, 0.0  ;;  %v1676_v59 = vmax.f32 %v1353_v56, 0.0 }
 0x13a   : > { %v1022_v60 = vpop.f32.mrb[38].mxu0  ;;  %v1357_v61 = vpop.f32.mrb[38].mxu1 }
 0x13b   : > { %1743 = vst.msk [vmem:[%s3185_s17 + $0x90] sm:$0xff] %vm1724_vm5, %v1609_v58  ;;  %1810 = vst.msk [vmem:[%s3185_s17 + $0x2a8] sm:$0xff] %vm1724_vm5, %v1676_v59  ;;  %v1023_v62 = vadd.f32 %v3168_v44, %v1022_v60  ;;  %v2280_v63 = vpop.f32.mrb[39].mxu0  ;;  %v1358_v0 = vadd.f32 %v3168_v44, %v1357_v61  ;;  %v2481_v1 = vpop.f32.mrb[39].mxu1 }
 0x13d   : > { %v1610_v2 = vmax.f32 %v1023_v62, 0.0  ;;  %v1677_v3 = vmax.f32 %v1358_v0, 0.0 }
 0x13e   : > { %v1027_v4 = vpop.f32.mrb[40].mxu0  ;;  %v1362_v5 = vpop.f32.mrb[40].mxu1 }
 0x13f   : > { %1744 = vst.msk [vmem:[%s3185_s17 + $0x98] sm:$0xff] %vm1724_vm5, %v1610_v2  ;;  %1811 = vst.msk [vmem:[%s3185_s17 + $0x2b0] sm:$0xff] %vm1724_vm5, %v1677_v3  ;;  %v1028_v7 = vadd.f32 %v3168_v44, %v1027_v4  ;;  %v2283_v8 = vpop.f32.mrb[41].mxu0  ;;  %v1363_v9 = vadd.f32 %v3168_v44, %v1362_v5  ;;  %v2484_v10 = vpop.f32.mrb[41].mxu1 }
 0x141   : > { %v1611_v11 = vmax.f32 %v1028_v7, 0.0  ;;  %v1678_v12 = vmax.f32 %v1363_v9, 0.0 }
 0x142   : > { %v1032_v13 = vpop.f32.mrb[42].mxu0  ;;  %v1367_v14 = vpop.f32.mrb[42].mxu1 }
 0x143   : > { %1745 = vst.msk [vmem:[%s3185_s17 + $0xa0] sm:$0xff] %vm1724_vm5, %v1611_v11  ;;  %1812 = vst.msk [vmem:[%s3185_s17 + $0x2b8] sm:$0xff] %vm1724_vm5, %v1678_v12  ;;  %v1033_v15 = vadd.f32 %v3168_v44, %v1032_v13  ;;  %v2286_v16 = vpop.f32.mrb[43].mxu0  ;;  %v1368_v17 = vadd.f32 %v3168_v44, %v1367_v14  ;;  %v2487_v6 = vpop.f32.mrb[43].mxu1 }
 0x145   : > { %v1612_v18 = vmax.f32 %v1033_v15, 0.0  ;;  %v1679_v19 = vmax.f32 %v1368_v17, 0.0 }
 0x146   : > { %v1037_v20 = vpop.f32.mrb[44].mxu0  ;;  %v1372_v21 = vpop.f32.mrb[44].mxu1 }
 0x147   : > { %1746 = vst.msk [vmem:[%s3185_s17 + $0xa8] sm:$0xff] %vm1724_vm5, %v1612_v18  ;;  %1813 = vst.msk [vmem:[%s3185_s17 + $0x2c0] sm:$0xff] %vm1724_vm5, %v1679_v19  ;;  %v1038_v22 = vadd.f32 %v3168_v44, %v1037_v20  ;;  %v2289_v23 = vpop.f32.mrb[45].mxu0  ;;  %v1373_v24 = vadd.f32 %v3168_v44, %v1372_v21  ;;  %v2490_v25 = vpop.f32.mrb[45].mxu1 }
 0x149   : > { %v1613_v26 = vmax.f32 %v1038_v22, 0.0  ;;  %v1680_v27 = vmax.f32 %v1373_v24, 0.0 }
 0x14a   : > { %v1042_v28 = vpop.f32.mrb[46].mxu0  ;;  %v1377_v29 = vpop.f32.mrb[46].mxu1 }
 0x14b   : > { %1747 = vst.msk [vmem:[%s3185_s17 + $0xb0] sm:$0xff] %vm1724_vm5, %v1613_v26  ;;  %1814 = vst.msk [vmem:[%s3185_s17 + $0x2c8] sm:$0xff] %vm1724_vm5, %v1680_v27  ;;  %v1043_v30 = vadd.f32 %v3168_v44, %v1042_v28  ;;  %v2292_v31 = vpop.f32.mrb[47].mxu0  ;;  %v1378_v32 = vadd.f32 %v3168_v44, %v1377_v29  ;;  %v2493_v33 = vpop.f32.mrb[47].mxu1 }
 0x14d   : > { %v1614_v34 = vmax.f32 %v1043_v30, 0.0  ;;  %v1681_v35 = vmax.f32 %v1378_v32, 0.0 }
 0x14e   : > { %v1047_v36 = vpop.f32.mrb[48].mxu0  ;;  %v1382_v37 = vpop.f32.mrb[48].mxu1 }
 0x14f   : > { %1748 = vst.msk [vmem:[%s3185_s17 + $0xb8] sm:$0xff] %vm1724_vm5, %v1614_v34  ;;  %1815 = vst.msk [vmem:[%s3185_s17 + $0x2d0] sm:$0xff] %vm1724_vm5, %v1681_v35  ;;  %v1048_v38 = vadd.f32 %v3168_v44, %v1047_v36  ;;  %v2295_v39 = vpop.f32.mrb[49].mxu0  ;;  %v1383_v40 = vadd.f32 %v3168_v44, %v1382_v37  ;;  %v2496_v41 = vpop.f32.mrb[49].mxu1 }
 0x151   : > { %v1615_v42 = vmax.f32 %v1048_v38, 0.0  ;;  %v1682_v43 = vmax.f32 %v1383_v40, 0.0 }
 0x152   : > { %v1052_v45 = vpop.f32.mrb[50].mxu0  ;;  %v1387_v46 = vpop.f32.mrb[50].mxu1 }
 0x153   : > { %1749 = vst.msk [vmem:[%s3185_s17 + $0xc0] sm:$0xff] %vm1724_vm5, %v1615_v42  ;;  %1816 = vst.msk [vmem:[%s3185_s17 + $0x2d8] sm:$0xff] %vm1724_vm5, %v1682_v43  ;;  %v1053_v47 = vadd.f32 %v3168_v44, %v1052_v45  ;;  %v2298_v48 = vpop.f32.mrb[51].mxu0  ;;  %v1388_v49 = vadd.f32 %v3168_v44, %v1387_v46  ;;  %v2499_v50 = vpop.f32.mrb[51].mxu1 }
 0x155   : > { %v1616_v51 = vmax.f32 %v1053_v47, 0.0  ;;  %v1683_v52 = vmax.f32 %v1388_v49, 0.0 }
 0x156   : > { %v1057_v53 = vpop.f32.mrb[52].mxu0  ;;  %v1392_v54 = vpop.f32.mrb[52].mxu1 }
 0x157   : > { %1750 = vst.msk [vmem:[%s3185_s17 + $0xc8] sm:$0xff] %vm1724_vm5, %v1616_v51  ;;  %1817 = vst.msk [vmem:[%s3185_s17 + $0x2e0] sm:$0xff] %vm1724_vm5, %v1683_v52  ;;  %v1058_v55 = vadd.f32 %v3168_v44, %v1057_v53  ;;  %v2301_v56 = vpop.f32.mrb[53].mxu0  ;;  %v1393_v57 = vadd.f32 %v3168_v44, %v1392_v54  ;;  %v2502_v58 = vpop.f32.mrb[53].mxu1 }
 0x159   : > { %v1617_v59 = vmax.f32 %v1058_v55, 0.0  ;;  %v1684_v60 = vmax.f32 %v1393_v57, 0.0 }
 0x15a   : > { %v1062_v61 = vpop.f32.mrb[54].mxu0  ;;  %v1397_v62 = vpop.f32.mrb[54].mxu1 }
 0x15b   : > { %1751 = vst.msk [vmem:[%s3185_s17 + $0xd0] sm:$0xff] %vm1724_vm5, %v1617_v59  ;;  %1818 = vst.msk [vmem:[%s3185_s17 + $0x2e8] sm:$0xff] %vm1724_vm5, %v1684_v60  ;;  %v1063_v63 = vadd.f32 %v3168_v44, %v1062_v61  ;;  %v2304_v0 = vpop.f32.mrb[55].mxu0  ;;  %v1398_v1 = vadd.f32 %v3168_v44, %v1397_v62  ;;  %v2505_v2 = vpop.f32.mrb[55].mxu1 }
 0x15d   : > { %v1618_v3 = vmax.f32 %v1063_v63, 0.0  ;;  %v1685_v4 = vmax.f32 %v1398_v1, 0.0 }
 0x15e   : > { %v1067_v5 = vpop.f32.mrb[56].mxu0  ;;  %v1402_v7 = vpop.f32.mrb[56].mxu1 }
 0x15f   : > { %1752 = vst.msk [vmem:[%s3185_s17 + $0xd8] sm:$0xff] %vm1724_vm5, %v1618_v3  ;;  %1819 = vst.msk [vmem:[%s3185_s17 + $0x2f0] sm:$0xff] %vm1724_vm5, %v1685_v4  ;;  %v1068_v8 = vadd.f32 %v3168_v44, %v1067_v5  ;;  %v2307_v9 = vpop.f32.mrb[57].mxu0  ;;  %v1403_v10 = vadd.f32 %v3168_v44, %v1402_v7  ;;  %v2508_v11 = vpop.f32.mrb[57].mxu1 }
 0x161   : > { %v1619_v12 = vmax.f32 %v1068_v8, 0.0  ;;  %v1686_v13 = vmax.f32 %v1403_v10, 0.0 }
 0x162   : > { %v1072_v14 = vpop.f32.mrb[58].mxu0  ;;  %v1407_v15 = vpop.f32.mrb[58].mxu1 }
 0x163   : > { %1753 = vst.msk [vmem:[%s3185_s17 + $0xe0] sm:$0xff] %vm1724_vm5, %v1619_v12  ;;  %1820 = vst.msk [vmem:[%s3185_s17 + $0x2f8] sm:$0xff] %vm1724_vm5, %v1686_v13  ;;  %v1073_v16 = vadd.f32 %v3168_v44, %v1072_v14  ;;  %v2310_v17 = vpop.f32.mrb[59].mxu0  ;;  %v1408_v6 = vadd.f32 %v3168_v44, %v1407_v15  ;;  %v2511_v18 = vpop.f32.mrb[59].mxu1 }
 0x165   : > { %v1620_v19 = vmax.f32 %v1073_v16, 0.0  ;;  %v1687_v20 = vmax.f32 %v1408_v6, 0.0 }
 0x166   : > { %v1077_v21 = vpop.f32.mrb[60].mxu0  ;;  %v1412_v22 = vpop.f32.mrb[60].mxu1 }
 0x167   : > { %1754 = vst.msk [vmem:[%s3185_s17 + $0xe8] sm:$0xff] %vm1724_vm5, %v1620_v19  ;;  %1821 = vst.msk [vmem:[%s3185_s17 + $0x300] sm:$0xff] %vm1724_vm5, %v1687_v20  ;;  %v1078_v23 = vadd.f32 %v3168_v44, %v1077_v21  ;;  %v2313_v24 = vpop.f32.mrb[61].mxu0  ;;  %v1413_v25 = vadd.f32 %v3168_v44, %v1412_v22  ;;  %v2514_v26 = vpop.f32.mrb[61].mxu1 }
 0x169   : > { %v1621_v27 = vmax.f32 %v1078_v23, 0.0  ;;  %v1688_v28 = vmax.f32 %v1413_v25, 0.0 }
 0x16a   : > { %v1082_v29 = vpop.f32.mrb[62].mxu0  ;;  %v1417_v30 = vpop.f32.mrb[62].mxu1 }
 0x16b   : > { %1755 = vst.msk [vmem:[%s3185_s17 + $0xf0] sm:$0xff] %vm1724_vm5, %v1621_v27  ;;  %1822 = vst.msk [vmem:[%s3185_s17 + $0x308] sm:$0xff] %vm1724_vm5, %v1688_v28  ;;  %v1083_v31 = vadd.f32 %v3168_v44, %v1082_v29  ;;  %v2316_v32 = vpop.f32.mrb[63].mxu0  ;;  %v1418_v33 = vadd.f32 %v3168_v44, %v1417_v30  ;;  %v2517_v34 = vpop.f32.mrb[63].mxu1 }
 0x16d   : > { %v1622_v35 = vmax.f32 %v1083_v31, 0.0  ;;  %v1689_v36 = vmax.f32 %v1418_v33, 0.0 }
 0x16e   : > { %v1087_v37 = vpop.f32.mrb[64].mxu0  ;;  %v1422_v38 = vpop.f32.mrb[64].mxu1 }
 0x16f   : > { %1756 = vst.msk [vmem:[%s3185_s17 + $0xf8] sm:$0xff] %vm1724_vm5, %v1622_v35  ;;  %1823 = vst.msk [vmem:[%s3185_s17 + $0x310] sm:$0xff] %vm1724_vm5, %v1689_v36  ;;  %v1088_v39 = vadd.f32 %v3168_v44, %v1087_v37  ;;  %v2319_v40 = vpop.f32.mrb[65].mxu0  ;;  %v1423_v41 = vadd.f32 %v3168_v44, %v1422_v38  ;;  %v2520_v42 = vpop.f32.mrb[65].mxu1 }
 0x171   : > { %v1623_v43 = vmax.f32 %v1088_v39, 0.0  ;;  %v1690_v45 = vmax.f32 %v1423_v41, 0.0 }
 0x172   : > { %v1092_v46 = vpop.f32.mrb[66].mxu0  ;;  %v1427_v47 = vpop.f32.mrb[66].mxu1 }
 0x173   : > { %1757 = vst.msk [vmem:[%s3185_s17 + $0x100] sm:$0xff] %vm1724_vm5, %v1623_v43  ;;  %1824 = vst.msk [vmem:[%s3185_s17 + $0x318] sm:$0xff] %vm1724_vm5, %v1690_v45  ;;  %v1093_v48 = vadd.f32 %v3168_v44, %v1092_v46  ;;  %v2322_v49 = vpop.f32.mrb[67].mxu0  ;;  %v1428_v50 = vadd.f32 %v3168_v44, %v1427_v47  ;;  %v2523_v51 = vpop.f32.mrb[67].mxu1 }
 0x174   : > { %v3532_v49 = vld [vmem:[%s3692_s2] ss:$0 sm:$0xff] }
 0x175   : > { %v1624_v52 = vmax.f32 %v1093_v48, 0.0  ;;  %v1691_v53 = vmax.f32 %v1428_v50, 0.0 }
 0x176   : > { %v1097_v54 = vpop.f32.mrb[68].mxu0  ;;  %v1432_v55 = vpop.f32.mrb[68].mxu1 }
 0x177   : > { %1758 = vst.msk [vmem:[%s3185_s17 + $0x108] sm:$0xff] %vm1724_vm5, %v1624_v52  ;;  %1825 = vst.msk [vmem:[%s3185_s17 + $0x320] sm:$0xff] %vm1724_vm5, %v1691_v53  ;;  %v1098_v56 = vadd.f32 %v3168_v44, %v1097_v54  ;;  %v2325_v57 = vpop.f32.mrb[69].mxu0  ;;  %v1433_v58 = vadd.f32 %v3168_v44, %v1432_v55  ;;  %v2526_v59 = vpop.f32.mrb[69].mxu1 }
 0x179   : > { %v1625_v60 = vmax.f32 %v1098_v56, 0.0  ;;  %v1692_v61 = vmax.f32 %v1433_v58, 0.0 }
 0x17a   : > { %v1102_v62 = vpop.f32.mrb[70].mxu0  ;;  %v1437_v63 = vpop.f32.mrb[70].mxu1 }
 0x17b   : > { %1759 = vst.msk [vmem:[%s3185_s17 + $0x110] sm:$0xff] %vm1724_vm5, %v1625_v60  ;;  %1826 = vst.msk [vmem:[%s3185_s17 + $0x328] sm:$0xff] %vm1724_vm5, %v1692_v61  ;;  %v1103_v0 = vadd.f32 %v3168_v44, %v1102_v62  ;;  %v2328_v1 = vpop.f32.mrb[71].mxu0  ;;  %v1438_v2 = vadd.f32 %v3168_v44, %v1437_v63  ;;  %v2529_v3 = vpop.f32.mrb[71].mxu1 }
 0x17d   : > { %v1626_v4 = vmax.f32 %v1103_v0, 0.0  ;;  %v1693_v5 = vmax.f32 %v1438_v2, 0.0 }
 0x17e   : > { %v1107_v7 = vpop.f32.mrb[72].mxu0  ;;  %v1442_v8 = vpop.f32.mrb[72].mxu1 }
 0x17f   : > { %1760 = vst.msk [vmem:[%s3185_s17 + $0x118] sm:$0xff] %vm1724_vm5, %v1626_v4  ;;  %1827 = vst.msk [vmem:[%s3185_s17 + $0x330] sm:$0xff] %vm1724_vm5, %v1693_v5  ;;  %v1108_v9 = vadd.f32 %v3168_v44, %v1107_v7  ;;  %v2331_v10 = vpop.f32.mrb[73].mxu0  ;;  %v1443_v11 = vadd.f32 %v3168_v44, %v1442_v8  ;;  %v2532_v12 = vpop.f32.mrb[73].mxu1 }
 0x181   : > { %v1627_v13 = vmax.f32 %v1108_v9, 0.0  ;;  %v1694_v14 = vmax.f32 %v1443_v11, 0.0 }
 0x182   : > { %v1112_v15 = vpop.f32.mrb[74].mxu0  ;;  %v1447_v16 = vpop.f32.mrb[74].mxu1 }
 0x183   : > { %1761 = vst.msk [vmem:[%s3185_s17 + $0x120] sm:$0xff] %vm1724_vm5, %v1627_v13  ;;  %1828 = vst.msk [vmem:[%s3185_s17 + $0x338] sm:$0xff] %vm1724_vm5, %v1694_v14  ;;  %v1113_v17 = vadd.f32 %v3168_v44, %v1112_v15  ;;  %v2334_v6 = vpop.f32.mrb[75].mxu0  ;;  %v1448_v18 = vadd.f32 %v3168_v44, %v1447_v16  ;;  %v2535_v19 = vpop.f32.mrb[75].mxu1 }
 0x185   : > { %v1628_v20 = vmax.f32 %v1113_v17, 0.0  ;;  %v1695_v21 = vmax.f32 %v1448_v18, 0.0 }
 0x186   : > { %v1117_v22 = vpop.f32.mrb[76].mxu0  ;;  %v1452_v23 = vpop.f32.mrb[76].mxu1 }
 0x187   : > { %1762 = vst.msk [vmem:[%s3185_s17 + $0x128] sm:$0xff] %vm1724_vm5, %v1628_v20  ;;  %1829 = vst.msk [vmem:[%s3185_s17 + $0x340] sm:$0xff] %vm1724_vm5, %v1695_v21  ;;  %v1118_v24 = vadd.f32 %v3168_v44, %v1117_v22  ;;  %v2337_v25 = vpop.f32.mrb[77].mxu0  ;;  %v1453_v26 = vadd.f32 %v3168_v44, %v1452_v23  ;;  %v2538_v27 = vpop.f32.mrb[77].mxu1 }
 0x189   : > { %v1629_v28 = vmax.f32 %v1118_v24, 0.0  ;;  %v1696_v29 = vmax.f32 %v1453_v26, 0.0 }
 0x18a   : > { %v1122_v30 = vpop.f32.mrb[78].mxu0  ;;  %v1457_v31 = vpop.f32.mrb[78].mxu1 }
 0x18b   : > { %1763 = vst.msk [vmem:[%s3185_s17 + $0x130] sm:$0xff] %vm1724_vm5, %v1629_v28  ;;  %1830 = vst.msk [vmem:[%s3185_s17 + $0x348] sm:$0xff] %vm1724_vm5, %v1696_v29  ;;  %v1123_v32 = vadd.f32 %v3168_v44, %v1122_v30  ;;  %v2340_v33 = vpop.f32.mrb[79].mxu0  ;;  %v1458_v34 = vadd.f32 %v3168_v44, %v1457_v31  ;;  %v2541_v35 = vpop.f32.mrb[79].mxu1 }
 0x18d   : > { %v1630_v36 = vmax.f32 %v1123_v32, 0.0  ;;  %v1697_v37 = vmax.f32 %v1458_v34, 0.0 }
 0x18e   : > { %v1127_v38 = vpop.f32.mrb[80].mxu0  ;;  %v1462_v39 = vpop.f32.mrb[80].mxu1 }
 0x18f   : > { %1764 = vst.msk [vmem:[%s3185_s17 + $0x138] sm:$0xff] %vm1724_vm5, %v1630_v36  ;;  %1831 = vst.msk [vmem:[%s3185_s17 + $0x350] sm:$0xff] %vm1724_vm5, %v1697_v37  ;;  %v1128_v40 = vadd.f32 %v3168_v44, %v1127_v38  ;;  %v2343_v41 = vpop.f32.mrb[81].mxu0  ;;  %v1463_v42 = vadd.f32 %v3168_v44, %v1462_v39  ;;  %v2544_v43 = vpop.f32.mrb[81].mxu1 }
 0x191   : > { %v1631_v45 = vmax.f32 %v1128_v40, 0.0  ;;  %v1698_v46 = vmax.f32 %v1463_v42, 0.0 }
 0x192   : > { %v1132_v47 = vpop.f32.mrb[82].mxu0  ;;  %v1467_v48 = vpop.f32.mrb[82].mxu1 }
 0x193   : > { %1765 = vst.msk [vmem:[%s3185_s17 + $0x140] sm:$0xff] %vm1724_vm5, %v1631_v45  ;;  %1832 = vst.msk [vmem:[%s3185_s17 + $0x358] sm:$0xff] %vm1724_vm5, %v1698_v46  ;;  %v1133_v50 = vadd.f32 %v3532_v49, %v1132_v47  ;;  %v2346_v51 = vpop.f32.mrb[83].mxu0  ;;  %v1468_v44 = vadd.f32 %v3532_v49, %v1467_v48  ;;  %v2547_v52 = vpop.f32.mrb[83].mxu1 }
 0x195   : > { %v1632_v53 = vmax.f32 %v1133_v50, 0.0  ;;  %v1699_v54 = vmax.f32 %v1468_v44, 0.0 }
 0x196   : > { %v1137_v55 = vpop.f32.mrb[84].mxu0  ;;  %v1472_v56 = vpop.f32.mrb[84].mxu1 }
 0x197   : > { %1766 = vst.msk [vmem:[%s3185_s17 + $0x148] sm:$0xff] %vm1724_vm5, %v1632_v53  ;;  %1833 = vst.msk [vmem:[%s3185_s17 + $0x360] sm:$0xff] %vm1724_vm5, %v1699_v54  ;;  %v1138_v57 = vadd.f32 %v3532_v49, %v1137_v55  ;;  %v2349_v58 = vpop.f32.mrb[85].mxu0  ;;  %v1473_v59 = vadd.f32 %v3532_v49, %v1472_v56  ;;  %v2550_v60 = vpop.f32.mrb[85].mxu1 }
 0x199   : > { %v1633_v61 = vmax.f32 %v1138_v57, 0.0  ;;  %v1700_v62 = vmax.f32 %v1473_v59, 0.0 }
 0x19a   : > { %v1142_v63 = vpop.f32.mrb[86].mxu0  ;;  %v1477_v0 = vpop.f32.mrb[86].mxu1 }
 0x19b   : > { %1767 = vst.msk [vmem:[%s3185_s17 + $0x150] sm:$0xff] %vm1724_vm5, %v1633_v61  ;;  %1834 = vst.msk [vmem:[%s3185_s17 + $0x368] sm:$0xff] %vm1724_vm5, %v1700_v62  ;;  %v1143_v1 = vadd.f32 %v3532_v49, %v1142_v63  ;;  %v2352_v2 = vpop.f32.mrb[87].mxu0  ;;  %v1478_v3 = vadd.f32 %v3532_v49, %v1477_v0  ;;  %v2553_v4 = vpop.f32.mrb[87].mxu1 }
 0x19d   : > { %v1634_v5 = vmax.f32 %v1143_v1, 0.0  ;;  %v1701_v7 = vmax.f32 %v1478_v3, 0.0 }
 0x19e   : > { %v1147_v8 = vpop.f32.mrb[88].mxu0  ;;  %v1482_v9 = vpop.f32.mrb[88].mxu1 }
 0x19f   : > { %1768 = vst.msk [vmem:[%s3185_s17 + $0x158] sm:$0xff] %vm1724_vm5, %v1634_v5  ;;  %1835 = vst.msk [vmem:[%s3185_s17 + $0x370] sm:$0xff] %vm1724_vm5, %v1701_v7  ;;  %v1148_v10 = vadd.f32 %v3532_v49, %v1147_v8  ;;  %v2355_v11 = vpop.f32.mrb[89].mxu0  ;;  %v1483_v12 = vadd.f32 %v3532_v49, %v1482_v9  ;;  %v2556_v13 = vpop.f32.mrb[89].mxu1 }
 0x1a1   : > { %v1635_v14 = vmax.f32 %v1148_v10, 0.0  ;;  %v1702_v15 = vmax.f32 %v1483_v12, 0.0 }
 0x1a2   : > { %v1152_v16 = vpop.f32.mrb[90].mxu0  ;;  %v1487_v17 = vpop.f32.mrb[90].mxu1 }
 0x1a3   : > { %1769 = vst.msk [vmem:[%s3185_s17 + $0x160] sm:$0xff] %vm1724_vm5, %v1635_v14  ;;  %1836 = vst.msk [vmem:[%s3185_s17 + $0x378] sm:$0xff] %vm1724_vm5, %v1702_v15  ;;  %v1153_v6 = vadd.f32 %v3532_v49, %v1152_v16  ;;  %v2358_v18 = vpop.f32.mrb[91].mxu0  ;;  %v1488_v19 = vadd.f32 %v3532_v49, %v1487_v17  ;;  %v2559_v20 = vpop.f32.mrb[91].mxu1 }
 0x1a5   : > { %v1636_v21 = vmax.f32 %v1153_v6, 0.0  ;;  %v1703_v22 = vmax.f32 %v1488_v19, 0.0 }
 0x1a6   : > { %v1157_v23 = vpop.f32.mrb[92].mxu0  ;;  %v1492_v24 = vpop.f32.mrb[92].mxu1 }
 0x1a7   : > { %1770 = vst.msk [vmem:[%s3185_s17 + $0x168] sm:$0xff] %vm1724_vm5, %v1636_v21  ;;  %1837 = vst.msk [vmem:[%s3185_s17 + $0x380] sm:$0xff] %vm1724_vm5, %v1703_v22  ;;  %v1158_v25 = vadd.f32 %v3532_v49, %v1157_v23  ;;  %v2361_v26 = vpop.f32.mrb[93].mxu0  ;;  %v1493_v27 = vadd.f32 %v3532_v49, %v1492_v24  ;;  %v2562_v28 = vpop.f32.mrb[93].mxu1 }
 0x1a9   : > { %v1637_v29 = vmax.f32 %v1158_v25, 0.0  ;;  %v1704_v30 = vmax.f32 %v1493_v27, 0.0 }
 0x1aa   : > { %v1162_v31 = vpop.f32.mrb[94].mxu0  ;;  %v1497_v32 = vpop.f32.mrb[94].mxu1 }
 0x1ab   : > { %1771 = vst.msk [vmem:[%s3185_s17 + $0x170] sm:$0xff] %vm1724_vm5, %v1637_v29  ;;  %1838 = vst.msk [vmem:[%s3185_s17 + $0x388] sm:$0xff] %vm1724_vm5, %v1704_v30  ;;  %v1163_v33 = vadd.f32 %v3532_v49, %v1162_v31  ;;  %v2364_v34 = vpop.f32.mrb[95].mxu0  ;;  %v1498_v35 = vadd.f32 %v3532_v49, %v1497_v32  ;;  %v2565_v36 = vpop.f32.mrb[95].mxu1 }
 0x1ad   : > { %v1638_v37 = vmax.f32 %v1163_v33, 0.0  ;;  %v1705_v38 = vmax.f32 %v1498_v35, 0.0 }
 0x1ae   : > { %v1167_v39 = vpop.f32.mrb[96].mxu0  ;;  %v1502_v40 = vpop.f32.mrb[96].mxu1 }
 0x1af   : > { %1772 = vst.msk [vmem:[%s3185_s17 + $0x178] sm:$0xff] %vm1724_vm5, %v1638_v37  ;;  %1839 = vst.msk [vmem:[%s3185_s17 + $0x390] sm:$0xff] %vm1724_vm5, %v1705_v38  ;;  %v1168_v41 = vadd.f32 %v3532_v49, %v1167_v39  ;;  %v2367_v42 = vpop.f32.mrb[97].mxu0  ;;  %v1503_v43 = vadd.f32 %v3532_v49, %v1502_v40  ;;  %v2568_v45 = vpop.f32.mrb[97].mxu1 }
 0x1b1   : > { %v1639_v46 = vmax.f32 %v1168_v41, 0.0  ;;  %v1706_v47 = vmax.f32 %v1503_v43, 0.0 }
 0x1b2   : > { %v1172_v48 = vpop.f32.mrb[98].mxu0  ;;  %v1507_v50 = vpop.f32.mrb[98].mxu1 }
 0x1b3   : > { %1773 = vst.msk [vmem:[%s3185_s17 + $0x180] sm:$0xff] %vm1724_vm5, %v1639_v46  ;;  %1840 = vst.msk [vmem:[%s3185_s17 + $0x398] sm:$0xff] %vm1724_vm5, %v1706_v47  ;;  %v1173_v51 = vadd.f32 %v3532_v49, %v1172_v48  ;;  %v2370_v44 = vpop.f32.mrb[99].mxu0  ;;  %v1508_v52 = vadd.f32 %v3532_v49, %v1507_v50  ;;  %v2571_v53 = vpop.f32.mrb[99].mxu1 }
 0x1b5   : > { %v1640_v54 = vmax.f32 %v1173_v51, 0.0  ;;  %v1707_v55 = vmax.f32 %v1508_v52, 0.0 }
 0x1b6   : > { %v1177_v56 = vpop.f32.mrb[100].mxu0  ;;  %v1512_v57 = vpop.f32.mrb[100].mxu1 }
 0x1b7   : > { %1774 = vst.msk [vmem:[%s3185_s17 + $0x188] sm:$0xff] %vm1724_vm5, %v1640_v54  ;;  %1841 = vst.msk [vmem:[%s3185_s17 + $0x3a0] sm:$0xff] %vm1724_vm5, %v1707_v55  ;;  %v1178_v58 = vadd.f32 %v3532_v49, %v1177_v56  ;;  %v2373_v59 = vpop.f32.mrb[101].mxu0  ;;  %v1513_v60 = vadd.f32 %v3532_v49, %v1512_v57  ;;  %v2574_v61 = vpop.f32.mrb[101].mxu1 }
 0x1b9   : > { %v1641_v62 = vmax.f32 %v1178_v58, 0.0  ;;  %v1708_v63 = vmax.f32 %v1513_v60, 0.0 }
 0x1ba   : > { %v1182_v0 = vpop.f32.mrb[102].mxu0  ;;  %v1517_v1 = vpop.f32.mrb[102].mxu1 }
 0x1bb   : > { %1775 = vst.msk [vmem:[%s3185_s17 + $0x190] sm:$0xff] %vm1724_vm5, %v1641_v62  ;;  %1842 = vst.msk [vmem:[%s3185_s17 + $0x3a8] sm:$0xff] %vm1724_vm5, %v1708_v63  ;;  %v1183_v2 = vadd.f32 %v3532_v49, %v1182_v0  ;;  %v2376_v3 = vpop.f32.mrb[103].mxu0  ;;  %v1518_v4 = vadd.f32 %v3532_v49, %v1517_v1  ;;  %v2577_v5 = vpop.f32.mrb[103].mxu1 }
 0x1bd   : > { %v1642_v7 = vmax.f32 %v1183_v2, 0.0  ;;  %v1709_v8 = vmax.f32 %v1518_v4, 0.0 }
 0x1be   : > { %v1187_v9 = vpop.f32.mrb[104].mxu0  ;;  %v1522_v10 = vpop.f32.mrb[104].mxu1 }
 0x1bf   : > { %1776 = vst.msk [vmem:[%s3185_s17 + $0x198] sm:$0xff] %vm1724_vm5, %v1642_v7  ;;  %1843 = vst.msk [vmem:[%s3185_s17 + $0x3b0] sm:$0xff] %vm1724_vm5, %v1709_v8  ;;  %v1188_v11 = vadd.f32 %v3532_v49, %v1187_v9  ;;  %v2379_v12 = vpop.f32.mrb[105].mxu0  ;;  %v1523_v13 = vadd.f32 %v3532_v49, %v1522_v10  ;;  %v2580_v14 = vpop.f32.mrb[105].mxu1 }
 0x1c1   : > { %v1643_v15 = vmax.f32 %v1188_v11, 0.0  ;;  %v1710_v16 = vmax.f32 %v1523_v13, 0.0 }
 0x1c2   : > { %v1192_v17 = vpop.f32.mrb[106].mxu0  ;;  %v1527_v6 = vpop.f32.mrb[106].mxu1 }
 0x1c3   : > { %1777 = vst.msk [vmem:[%s3185_s17 + $0x1a0] sm:$0xff] %vm1724_vm5, %v1643_v15  ;;  %1844 = vst.msk [vmem:[%s3185_s17 + $0x3b8] sm:$0xff] %vm1724_vm5, %v1710_v16  ;;  %v1193_v18 = vadd.f32 %v3532_v49, %v1192_v17  ;;  %v2382_v19 = vpop.f32.mrb[107].mxu0  ;;  %v1528_v20 = vadd.f32 %v3532_v49, %v1527_v6  ;;  %v2583_v21 = vpop.f32.mrb[107].mxu1 }
 0x1c5   : > { %v1644_v22 = vmax.f32 %v1193_v18, 0.0  ;;  %v1711_v23 = vmax.f32 %v1528_v20, 0.0 }
 0x1c6   : > { %v1197_v24 = vpop.f32.mrb[108].mxu0  ;;  %v1532_v25 = vpop.f32.mrb[108].mxu1 }
 0x1c7   : > { %1778 = vst.msk [vmem:[%s3185_s17 + $0x1a8] sm:$0xff] %vm1724_vm5, %v1644_v22  ;;  %1845 = vst.msk [vmem:[%s3185_s17 + $0x3c0] sm:$0xff] %vm1724_vm5, %v1711_v23  ;;  %v1198_v26 = vadd.f32 %v3532_v49, %v1197_v24  ;;  %v2385_v27 = vpop.f32.mrb[109].mxu0  ;;  %v1533_v28 = vadd.f32 %v3532_v49, %v1532_v25  ;;  %v2586_v29 = vpop.f32.mrb[109].mxu1 }
 0x1c9   : > { %v1645_v30 = vmax.f32 %v1198_v26, 0.0  ;;  %v1712_v31 = vmax.f32 %v1533_v28, 0.0 }
 0x1ca   : > { %v1202_v32 = vpop.f32.mrb[110].mxu0  ;;  %v1537_v33 = vpop.f32.mrb[110].mxu1 }
 0x1cb   : > { %1779 = vst.msk [vmem:[%s3185_s17 + $0x1b0] sm:$0xff] %vm1724_vm5, %v1645_v30  ;;  %1846 = vst.msk [vmem:[%s3185_s17 + $0x3c8] sm:$0xff] %vm1724_vm5, %v1712_v31  ;;  %v1203_v34 = vadd.f32 %v3532_v49, %v1202_v32  ;;  %v2388_v35 = vpop.f32.mrb[111].mxu0  ;;  %v1538_v36 = vadd.f32 %v3532_v49, %v1537_v33  ;;  %v2589_v37 = vpop.f32.mrb[111].mxu1 }
 0x1cd   : > { %v1646_v38 = vmax.f32 %v1203_v34, 0.0  ;;  %v1713_v39 = vmax.f32 %v1538_v36, 0.0 }
 0x1ce   : > { %v1207_v40 = vpop.f32.mrb[112].mxu0  ;;  %v1542_v41 = vpop.f32.mrb[112].mxu1 }
 0x1cf   : > { %1780 = vst.msk [vmem:[%s3185_s17 + $0x1b8] sm:$0xff] %vm1724_vm5, %v1646_v38  ;;  %1847 = vst.msk [vmem:[%s3185_s17 + $0x3d0] sm:$0xff] %vm1724_vm5, %v1713_v39  ;;  %v1208_v42 = vadd.f32 %v3532_v49, %v1207_v40  ;;  %v2391_v43 = vpop.f32.mrb[113].mxu0  ;;  %v1543_v45 = vadd.f32 %v3532_v49, %v1542_v41  ;;  %v2592_v46 = vpop.f32.mrb[113].mxu1 }
 0x1d1   : > { %v1647_v47 = vmax.f32 %v1208_v42, 0.0  ;;  %v1714_v48 = vmax.f32 %v1543_v45, 0.0 }
 0x1d2   : > { %v1212_v50 = vpop.f32.mrb[114].mxu0  ;;  %v1547_v51 = vpop.f32.mrb[114].mxu1 }
 0x1d3   : > { %1781 = vst.msk [vmem:[%s3185_s17 + $0x1c0] sm:$0xff] %vm1724_vm5, %v1647_v47  ;;  %1848 = vst.msk [vmem:[%s3185_s17 + $0x3d8] sm:$0xff] %vm1724_vm5, %v1714_v48  ;;  %v1213_v44 = vadd.f32 %v3532_v49, %v1212_v50  ;;  %v2394_v52 = vpop.f32.mrb[115].mxu0  ;;  %v1548_v53 = vadd.f32 %v3532_v49, %v1547_v51  ;;  %v2595_v54 = vpop.f32.mrb[115].mxu1 }
 0x1d5   : > { %v1648_v55 = vmax.f32 %v1213_v44, 0.0  ;;  %v1715_v56 = vmax.f32 %v1548_v53, 0.0 }
 0x1d6   : > { %v1217_v57 = vpop.f32.mrb[116].mxu0  ;;  %v1552_v58 = vpop.f32.mrb[116].mxu1 }
 0x1d7   : > { %1782 = vst.msk [vmem:[%s3185_s17 + $0x1c8] sm:$0xff] %vm1724_vm5, %v1648_v55  ;;  %1849 = vst.msk [vmem:[%s3185_s17 + $0x3e0] sm:$0xff] %vm1724_vm5, %v1715_v56  ;;  %v1218_v59 = vadd.f32 %v3532_v49, %v1217_v57  ;;  %v2397_v60 = vpop.f32.mrb[117].mxu0  ;;  %v1553_v61 = vadd.f32 %v3532_v49, %v1552_v58  ;;  %v2598_v62 = vpop.f32.mrb[117].mxu1 }
 0x1d9   : > { %v1649_v63 = vmax.f32 %v1218_v59, 0.0  ;;  %v1716_v0 = vmax.f32 %v1553_v61, 0.0 }
 0x1da   : > { %v1222_v1 = vpop.f32.mrb[118].mxu0  ;;  %v1557_v2 = vpop.f32.mrb[118].mxu1 }
 0x1db   : > { %1783 = vst.msk [vmem:[%s3185_s17 + $0x1d0] sm:$0xff] %vm1724_vm5, %v1649_v63  ;;  %1850 = vst.msk [vmem:[%s3185_s17 + $0x3e8] sm:$0xff] %vm1724_vm5, %v1716_v0  ;;  %v1223_v3 = vadd.f32 %v3532_v49, %v1222_v1  ;;  %v2400_v4 = vpop.f32.mrb[119].mxu0  ;;  %v1558_v5 = vadd.f32 %v3532_v49, %v1557_v2  ;;  %v2601_v7 = vpop.f32.mrb[119].mxu1 }
 0x1dd   : > { %v1650_v8 = vmax.f32 %v1223_v3, 0.0  ;;  %v1717_v9 = vmax.f32 %v1558_v5, 0.0 }
 0x1de   : > { %v1227_v10 = vpop.f32.mrb[120].mxu0  ;;  %v1562_v11 = vpop.f32.mrb[120].mxu1 }
 0x1df   : > { %1784 = vst.msk [vmem:[%s3185_s17 + $0x1d8] sm:$0xff] %vm1724_vm5, %v1650_v8  ;;  %1851 = vst.msk [vmem:[%s3185_s17 + $0x3f0] sm:$0xff] %vm1724_vm5, %v1717_v9  ;;  %v1228_v12 = vadd.f32 %v3532_v49, %v1227_v10  ;;  %v2403_v13 = vpop.f32.mrb[121].mxu0  ;;  %v1563_v14 = vadd.f32 %v3532_v49, %v1562_v11  ;;  %v2604_v15 = vpop.f32.mrb[121].mxu1 }
 0x1e1   : > { %v1651_v16 = vmax.f32 %v1228_v12, 0.0  ;;  %v1718_v17 = vmax.f32 %v1563_v14, 0.0 }
 0x1e2   : > { %v1232_v6 = vpop.f32.mrb[122].mxu0  ;;  %v1567_v18 = vpop.f32.mrb[122].mxu1 }
 0x1e3   : > { %1785 = vst.msk [vmem:[%s3185_s17 + $0x1e0] sm:$0xff] %vm1724_vm5, %v1651_v16  ;;  %1852 = vst.msk [vmem:[%s3185_s17 + $0x3f8] sm:$0xff] %vm1724_vm5, %v1718_v17  ;;  %v1233_v19 = vadd.f32 %v3532_v49, %v1232_v6  ;;  %v2406_v20 = vpop.f32.mrb[123].mxu0  ;;  %v1568_v21 = vadd.f32 %v3532_v49, %v1567_v18  ;;  %v2607_v22 = vpop.f32.mrb[123].mxu1 }
 0x1e5   : > { %v1652_v23 = vmax.f32 %v1233_v19, 0.0  ;;  %v1719_v24 = vmax.f32 %v1568_v21, 0.0 }
 0x1e6   : > { %v1237_v25 = vpop.f32.mrb[124].mxu0  ;;  %v1572_v26 = vpop.f32.mrb[124].mxu1 }
 0x1e7   : > { %1786 = vst.msk [vmem:[%s3185_s17 + $0x1e8] sm:$0xff] %vm1724_vm5, %v1652_v23  ;;  %1853 = vst.msk [vmem:[%s3185_s17 + $0x400] sm:$0xff] %vm1724_vm5, %v1719_v24  ;;  %v1238_v27 = vadd.f32 %v3532_v49, %v1237_v25  ;;  %v2409_v28 = vpop.f32.mrb[125].mxu0  ;;  %v1573_v29 = vadd.f32 %v3532_v49, %v1572_v26  ;;  %v2610_v30 = vpop.f32.mrb[125].mxu1 }
 0x1e9   : > { %v1653_v31 = vmax.f32 %v1238_v27, 0.0  ;;  %v1720_v32 = vmax.f32 %v1573_v29, 0.0 }
 0x1ea   : > { %v1242_v33 = vpop.f32.mrb[126].mxu0  ;;  %v1577_v34 = vpop.f32.mrb[126].mxu1 }
 0x1eb   : > { %1787 = vst.msk [vmem:[%s3185_s17 + $0x1f0] sm:$0xff] %vm1724_vm5, %v1653_v31  ;;  %1854 = vst.msk [vmem:[%s3185_s17 + $0x408] sm:$0xff] %vm1724_vm5, %v1720_v32  ;;  %v1243_v35 = vadd.f32 %v3532_v49, %v1242_v33  ;;  %v2412_v36 = vpop.f32.mrb[127].mxu0  ;;  %v1578_v37 = vadd.f32 %v3532_v49, %v1577_v34  ;;  %v2613_v38 = vpop.f32.mrb[127].mxu1 }
 0x1ed   : > { %v1654_v39 = vmax.f32 %v1243_v35, 0.0  ;;  %v1721_v40 = vmax.f32 %v1578_v37, 0.0 }
 0x1ee   : > { %v1247_v41 = vpop.f32.mrb[128].mxu0  ;;  %v1582_v42 = vpop.f32.mrb[128].mxu1 }
 0x1ef   : > { %1788 = vst.msk [vmem:[%s3185_s17 + $0x1f8] sm:$0xff] %vm1724_vm5, %v1654_v39  ;;  %1855 = vst.msk [vmem:[%s3185_s17 + $0x410] sm:$0xff] %vm1724_vm5, %v1721_v40  ;;  %v1248_v43 = vadd.f32 %v3532_v49, %v1247_v41  ;;  %v2415_v45 = vpop.f32.mrb[129].mxu0  ;;  %v1583_v46 = vadd.f32 %v3532_v49, %v1582_v42  ;;  %v2616_v47 = vpop.f32.mrb[129].mxu1 }
 0x1f1   : > { %v1655_v48 = vmax.f32 %v1248_v43, 0.0  ;;  %v1722_v50 = vmax.f32 %v1583_v46, 0.0 }
 0x1f2   : > { %v1252_v51 = vpop.f32.mrb[130].mxu0  ;;  %v1587_v44 = vpop.f32.mrb[130].mxu1 }
 0x1f3   : > { %1789 = vst.msk [vmem:[%s3185_s17 + $0x200] sm:$0xff] %vm1724_vm5, %v1655_v48  ;;  %1856 = vst.msk [vmem:[%s3185_s17 + $0x418] sm:$0xff] %vm1724_vm5, %v1722_v50  ;;  %v1253_v52 = vadd.f32 %v3532_v49, %v1252_v51  ;;  %v2418_v53 = vpop.f32.mrb[131].mxu0  ;;  %v1588_v54 = vadd.f32 %v3532_v49, %v1587_v44  ;;  %v2619_v55 = vpop.f32.mrb[131].mxu1 }
 0x1f5   : > { %v1656_v56 = vmax.f32 %v1253_v52, 0.0  ;;  %v1723_v57 = vmax.f32 %v1588_v54, 0.0 }
 0x1f6   : > { %v1257_v58 = vpop.f32.mrb[132].mxu0 }
 0x1f7   : > { %1790 = vst.msk [vmem:[%s3185_s17 + $0x208] sm:$0xff] %vm1724_vm5, %v1656_v56  ;;  %1857 = vst.msk [vmem:[%s3185_s17 + $0x420] sm:$0xff] %vm1724_vm5, %v1723_v57  ;;  %v1258_v59 = vadd.f32 %v3532_v49, %v1257_v58  ;;  %v2421_v60 = vpop.f32.mrb[133].mxu0 }
 0x1f9   : > { %v1657_v61 = vmax.f32 %v1258_v59, 0.0 }
 0x1fb   : > { %1791 = vst.msk [vmem:[%s3185_s17 + $0x210] sm:$0xff] %vm1724_vm5, %v1657_v61 }
 0x1fc PF: > { %s13_s12 = sadd.s32 1, %s2665_s12  }
 0x1fd   : > { %p10_p4 = scmp.ge.s32.totalorder %s13_s12, 4  }
 0x1ff   :  { %12 = sbr.rel (!%p10_p4) target bundleno = 1 (0x1), region = 62 }

// kernel: miniworld_forward.5
= control target key start
LH: loop header
LB: loop body
LE: loop exit
PB: predicated region body
PF: predicated region fallthrough
CT: control target
= control target key end

     0   :  { %v2745_v0 = vmov 0.0|0.0   ;;  %vm2746_vm0 = vmmov 0   ;;  %vm478_vm1 = vcmask 261120   ;;  %s4602_s1 = inlined_call_operand.vmem [shape: f32[800,32], index: 1, kind: input, shape index: {}]   ;;  %s4603_s0 = inlined_call_operand.vmem [shape: f32[408,800], index: 0, kind: input, shape index: {}]   ;;  %s4604_s2 = inlined_call_operand.vmem [shape: f32[1,32], index: 2, kind: input, shape index: {}]   ;;  %s4605_s3 = inlined_call_operand.vmem [shape: f32[408,32], index: 3, kind: output, shape index: {}]  }
   0x1   :  { %2286 = vmatprep.subr.bf16.mxu1 %v2745_v0  ;;  %2382 = vmatprep.subr.bf16.mxu0 %v2745_v0  ;;  %v371_v1 = vld [vmem:[%s4602_s1] sm:$0xff]  ;;  %v372_v2 = vld [vmem:[%s4602_s1 + $0x8] sm:$0xff]  ;;  %v373_v6 = vld [vmem:[%s4602_s1 + $0x10] sm:$0xff] }
   0x2   :  { %v435_v3 = vld [vmem:[%s4602_s1 + $0x200] sm:$0xff]  ;;  %v2287_v4 = vpack.c.bf16 %v372_v2, %v371_v1  ;;  %v436_v5 = vld [vmem:[%s4602_s1 + $0x208] sm:$0xff]  ;;  %v374_v7 = vld [vmem:[%s4602_s1 + $0x18] sm:$0xff] }
   0x3   :  { %v2383_v8 = vpack.c.bf16 %v436_v5, %v435_v3  ;;  %v437_v9 = vld [vmem:[%s4602_s1 + $0x210] sm:$0xff]  ;;  %v438_v10 = vld [vmem:[%s4602_s1 + $0x218] sm:$0xff]  ;;  %v2290_v11 = vpack.c.bf16 %v374_v7, %v373_v6  ;;  %v375_v13 = vld [vmem:[%s4602_s1 + $0x20] sm:$0xff] }
   0x4   :  { %2288 = vmatpush1.bf16.msra.mxu1 %v2287_v4  ;;  %v2386_v12 = vpack.c.bf16 %v438_v10, %v437_v9  ;;  %v376_v14 = vld [vmem:[%s4602_s1 + $0x28] sm:$0xff]  ;;  %v439_v15 = vld [vmem:[%s4602_s1 + $0x220] sm:$0xff]  ;;  %v377_v19 = vld [vmem:[%s4602_s1 + $0x30] sm:$0xff] }
   0x5   :  { %2384 = vmatpush1.bf16.msra.mxu0 %v2383_v8  ;;  %2289 = vmatprep.subr.bf16.mxu1 %v2745_v0  ;;  %v440_v16 = vld [vmem:[%s4602_s1 + $0x228] sm:$0xff]  ;;  %v2293_v17 = vpack.c.bf16 %v376_v14, %v375_v13  ;;  %v378_v20 = vld [vmem:[%s4602_s1 + $0x38] sm:$0xff]  ;;  %v441_v21 = vld [vmem:[%s4602_s1 + $0x230] sm:$0xff] }
   0x6   :  { %2385 = vmatprep.subr.bf16.mxu0 %v2745_v0  ;;  %v2389_v18 = vpack.c.bf16 %v440_v16, %v439_v15  ;;  %v442_v22 = vld [vmem:[%s4602_s1 + $0x238] sm:$0xff]  ;;  %v2296_v23 = vpack.c.bf16 %v378_v20, %v377_v19  ;;  %v379_v25 = vld [vmem:[%s4602_s1 + $0x40] sm:$0xff]  ;;  %v380_v26 = vld [vmem:[%s4602_s1 + $0x48] sm:$0xff] }
   0x7   :  { %v2392_v24 = vpack.c.bf16 %v442_v22, %v441_v21  ;;  %v443_v27 = vld [vmem:[%s4602_s1 + $0x240] sm:$0xff]  ;;  %v444_v28 = vld [vmem:[%s4602_s1 + $0x248] sm:$0xff]  ;;  %v2299_v29 = vpack.c.bf16 %v380_v26, %v379_v25  ;;  %v381_v31 = vld [vmem:[%s4602_s1 + $0x50] sm:$0xff] }
   0x8   :  { %2291 = vmatpush1.bf16.msra.mxu1 %v2290_v11  ;;  %v2395_v30 = vpack.c.bf16 %v444_v28, %v443_v27  ;;  %v382_v32 = vld [vmem:[%s4602_s1 + $0x58] sm:$0xff]  ;;  %v445_v33 = vld [vmem:[%s4602_s1 + $0x250] sm:$0xff]  ;;  %v383_v37 = vld [vmem:[%s4602_s1 + $0x60] sm:$0xff] }
   0x9   :  { %2387 = vmatpush1.bf16.msra.mxu0 %v2386_v12  ;;  %2292 = vmatprep.subr.bf16.mxu1 %v2745_v0  ;;  %v446_v34 = vld [vmem:[%s4602_s1 + $0x258] sm:$0xff]  ;;  %v2302_v35 = vpack.c.bf16 %v382_v32, %v381_v31  ;;  %v384_v38 = vld [vmem:[%s4602_s1 + $0x68] sm:$0xff]  ;;  %v447_v39 = vld [vmem:[%s4602_s1 + $0x260] sm:$0xff] }
   0xa   :  { %2388 = vmatprep.subr.bf16.mxu0 %v2745_v0  ;;  %v2398_v36 = vpack.c.bf16 %v446_v34, %v445_v33  ;;  %v448_v40 = vld [vmem:[%s4602_s1 + $0x268] sm:$0xff]  ;;  %v2305_v43 = vpack.c.bf16 %v384_v38, %v383_v37  ;;  %v385_v45 = vld [vmem:[%s4602_s1 + $0x70] sm:$0xff]  ;;  %v386_v46 = vld [vmem:[%s4602_s1 + $0x78] sm:$0xff] }
   0xb   :  { %v15_v41 = vld [vmem:[%s4603_s0 + $0x8] sm:$0xff]  ;;  %v2401_v44 = vpack.c.bf16 %v448_v40, %v447_v39  ;;  %v449_v47 = vld [vmem:[%s4602_s1 + $0x270] sm:$0xff]  ;;  %v450_v48 = vld [vmem:[%s4602_s1 + $0x278] sm:$0xff]  ;;  %v2308_v49 = vpack.c.bf16 %v386_v46, %v385_v45 }
   0xc   :  { %2294 = vmatpush1.bf16.msra.mxu1 %v2293_v17  ;;  %v19_v42 = vld [vmem:[%s4603_s0 + $0x28] sm:$0xff]  ;;  %696 = vmatprep.mubr.f32.mxu1 %v15_v41  ;;  %v2404_v50 = vpack.c.bf16 %v450_v48, %v449_v47  ;;  %v387_v51 = vld [vmem:[%s4602_s1 + $0x80] sm:$0xff]  ;;  %v389_v57 = vld [vmem:[%s4602_s1 + $0x90] sm:$0xff] }
   0xd   :  { %2390 = vmatpush1.bf16.msra.mxu0 %v2389_v18  ;;  %2295 = vmatprep.subr.bf16.mxu1 %v2745_v0  ;;  %v388_v52 = vld [vmem:[%s4602_s1 + $0x88] sm:$0xff]  ;;  %v451_v53 = vld [vmem:[%s4602_s1 + $0x280] sm:$0xff]  ;;  %v390_v58 = vld [vmem:[%s4602_s1 + $0x98] sm:$0xff] }
   0xe   :  { %2391 = vmatprep.subr.bf16.mxu0 %v2745_v0  ;;  %1336 = vmatprep.mubr.f32.mxu0 %v19_v42  ;;  %v452_v54 = vld [vmem:[%s4602_s1 + $0x288] sm:$0xff]  ;;  %v2311_v55 = vpack.c.bf16 %v388_v52, %v387_v51  ;;  %v453_v59 = vld [vmem:[%s4602_s1 + $0x290] sm:$0xff]  ;;  %v454_v60 = vld [vmem:[%s4602_s1 + $0x298] sm:$0xff]  ;;  %v2314_v61 = vpack.c.bf16 %v390_v58, %v389_v57 }
   0xf   :  { %v2407_v56 = vpack.c.bf16 %v452_v54, %v451_v53  ;;  %v2410_v62 = vpack.c.bf16 %v454_v60, %v453_v59  ;;  %v391_v63 = vld [vmem:[%s4602_s1 + $0xa0] sm:$0xff]  ;;  %v392_v1 = vld [vmem:[%s4602_s1 + $0xa8] sm:$0xff]  ;;  %v393_v6 = vld [vmem:[%s4602_s1 + $0xb0] sm:$0xff] }
  0x10   :  { %2297 = vmatpush1.bf16.msra.mxu1 %v2296_v23  ;;  %v455_v2 = vld [vmem:[%s4602_s1 + $0x2a0] sm:$0xff]  ;;  %v456_v3 = vld [vmem:[%s4602_s1 + $0x2a8] sm:$0xff]  ;;  %v2317_v4 = vpack.c.bf16 %v392_v1, %v391_v63  ;;  %v394_v7 = vld [vmem:[%s4602_s1 + $0xb8] sm:$0xff] }
  0x11   :  { %2393 = vmatpush1.bf16.msra.mxu0 %v2392_v24  ;;  %2298 = vmatprep.subr.bf16.mxu1 %v2745_v0  ;;  %v2413_v5 = vpack.c.bf16 %v456_v3, %v455_v2  ;;  %v457_v8 = vld [vmem:[%s4602_s1 + $0x2b0] sm:$0xff]  ;;  %v458_v9 = vld [vmem:[%s4602_s1 + $0x2b8] sm:$0xff]  ;;  %v2320_v10 = vpack.c.bf16 %v394_v7, %v393_v6  ;;  %v395_v12 = vld [vmem:[%s4602_s1 + $0xc0] sm:$0xff] }
  0x12   :  { %2394 = vmatprep.subr.bf16.mxu0 %v2745_v0  ;;  %v2416_v11 = vpack.c.bf16 %v458_v9, %v457_v8  ;;  %v396_v13 = vld [vmem:[%s4602_s1 + $0xc8] sm:$0xff]  ;;  %v459_v14 = vld [vmem:[%s4602_s1 + $0x2c0] sm:$0xff]  ;;  %v397_v18 = vld [vmem:[%s4602_s1 + $0xd0] sm:$0xff] }
  0x13   :  { %v460_v15 = vld [vmem:[%s4602_s1 + $0x2c8] sm:$0xff]  ;;  %v2323_v16 = vpack.c.bf16 %v396_v13, %v395_v12  ;;  %v398_v19 = vld [vmem:[%s4602_s1 + $0xd8] sm:$0xff]  ;;  %v461_v20 = vld [vmem:[%s4602_s1 + $0x2d0] sm:$0xff] }
  0x14   :  { %2300 = vmatpush1.bf16.msra.mxu1 %v2299_v29  ;;  %v2419_v17 = vpack.c.bf16 %v460_v15, %v459_v14  ;;  %v462_v21 = vld [vmem:[%s4602_s1 + $0x2d8] sm:$0xff]  ;;  %v2326_v22 = vpack.c.bf16 %v398_v19, %v397_v18  ;;  %v399_v24 = vld [vmem:[%s4602_s1 + $0xe0] sm:$0xff]  ;;  %v400_v25 = vld [vmem:[%s4602_s1 + $0xe8] sm:$0xff] }
  0x15   :  { %2396 = vmatpush1.bf16.msra.mxu0 %v2395_v30  ;;  %2301 = vmatprep.subr.bf16.mxu1 %v2745_v0  ;;  %v2422_v23 = vpack.c.bf16 %v462_v21, %v461_v20  ;;  %v463_v26 = vld [vmem:[%s4602_s1 + $0x2e0] sm:$0xff]  ;;  %v464_v27 = vld [vmem:[%s4602_s1 + $0x2e8] sm:$0xff]  ;;  %v2329_v28 = vpack.c.bf16 %v400_v25, %v399_v24  ;;  %v401_v30 = vld [vmem:[%s4602_s1 + $0xf0] sm:$0xff] }
  0x16   :  { %2397 = vmatprep.subr.bf16.mxu0 %v2745_v0  ;;  %v2425_v29 = vpack.c.bf16 %v464_v27, %v463_v26  ;;  %v402_v31 = vld [vmem:[%s4602_s1 + $0xf8] sm:$0xff]  ;;  %v465_v32 = vld [vmem:[%s4602_s1 + $0x2f0] sm:$0xff]  ;;  %v404_v37 = vld [vmem:[%s4602_s1 + $0x108] sm:$0xff] }
  0x17   :  { %v466_v33 = vld [vmem:[%s4602_s1 + $0x2f8] sm:$0xff]  ;;  %v2332_v34 = vpack.c.bf16 %v402_v31, %v401_v30  ;;  %v467_v38 = vld [vmem:[%s4602_s1 + $0x300] sm:$0xff]  ;;  %v468_v39 = vld [vmem:[%s4602_s1 + $0x308] sm:$0xff] }
  0x18   :  { %2303 = vmatpush1.bf16.msra.mxu1 %v2302_v35  ;;  %v2428_v35 = vpack.c.bf16 %v466_v33, %v465_v32  ;;  %v14_v40 = vld [vmem:[%s4603_s0] sm:$0xff]  ;;  %v2431_v45 = vpack.c.bf16 %v468_v39, %v467_v38  ;;  %v405_v46 = vld [vmem:[%s4602_s1 + $0x110] sm:$0xff]  ;;  %v406_v47 = vld [vmem:[%s4602_s1 + $0x118] sm:$0xff] }
  0x19   :  { %2399 = vmatpush1.bf16.msra.mxu0 %v2398_v36  ;;  %2304 = vmatprep.subr.bf16.mxu1 %v2745_v0  ;;  %v403_v36 = vld [vmem:[%s4602_s1 + $0x100] sm:$0xff]  ;;  %v469_v48 = vld [vmem:[%s4602_s1 + $0x310] sm:$0xff]  ;;  %v25_v51 = vld [vmem:[%s4603_s0 + $0x58] sm:$0xff]  ;;  %v2338_v53 = vpack.c.bf16 %v406_v47, %v405_v46 }
  0x1a   :  { %2400 = vmatprep.subr.bf16.mxu0 %v2745_v0  ;;  %v2335_v41 = vpack.c.bf16 %v404_v37, %v403_v36  ;;  %v18_v42 = vld [vmem:[%s4603_s0 + $0x20] sm:$0xff]  ;;  %v29_v52 = vld [vmem:[%s4603_s0 + $0x78] sm:$0xff]  ;;  %v28_v58 = vld [vmem:[%s4603_s0 + $0x70] sm:$0xff] }
  0x1b   :  { %v33_v54 = vld [vmem:[%s4603_s0 + $0x98] sm:$0xff]  ;;  %v32_v59 = vld [vmem:[%s4603_s0 + $0x90] sm:$0xff]  ;;  %v35_v2 = vld [vmem:[%s4603_s0 + $0xa8] sm:$0xff] }
  0x1c   :  { %2306 = vmatpush1.bf16.msra.mxu1 %v2305_v43  ;;  %v22_v43 = vld [vmem:[%s4603_s0 + $0x40] sm:$0xff]  ;;  %v36_v60 = vld [vmem:[%s4603_s0 + $0xb0] sm:$0xff]  ;;  %v410_v1 = vld [vmem:[%s4602_s1 + $0x138] sm:$0xff] }
  0x1d   :  { %2402 = vmatpush1.bf16.msra.mxu0 %v2401_v44  ;;  %2307 = vmatprep.subr.bf16.mxu1 %v2745_v0  ;;  %v26_v44 = vld [vmem:[%s4603_s0 + $0x60] sm:$0xff]  ;;  %v409_v63 = vld [vmem:[%s4602_s1 + $0x130] sm:$0xff]  ;;  %v39_v3 = vld [vmem:[%s4603_s0 + $0xc8] sm:$0xff] }
  0x1e   :  { %2403 = vmatprep.subr.bf16.mxu0 %v2745_v0  ;;  %v47_v6 = vld [vmem:[%s4603_s0 + $0x108] sm:$0xff]  ;;  %v411_v7 = vld [vmem:[%s4602_s1 + $0x140] sm:$0xff]  ;;  %v413_v14 = vld [vmem:[%s4602_s1 + $0x150] sm:$0xff] }
  0x1f   :  { %v412_v8 = vld [vmem:[%s4602_s1 + $0x148] sm:$0xff]  ;;  %v42_v9 = vld [vmem:[%s4603_s0 + $0xe0] sm:$0xff]  ;;  %v414_v15 = vld [vmem:[%s4602_s1 + $0x158] sm:$0xff] }
  0x20   :  { %2309 = vmatpush1.bf16.msra.mxu1 %v2308_v49  ;;  %v470_v49 = vld [vmem:[%s4602_s1 + $0x318] sm:$0xff]  ;;  %v2347_v12 = vpack.c.bf16 %v412_v8, %v411_v7  ;;  %v54_v13 = vld [vmem:[%s4603_s0 + $0x140] sm:$0xff]  ;;  %v2350_v19 = vpack.c.bf16 %v414_v15, %v413_v14  ;;  %v60_v24 = vld [vmem:[%s4603_s0 + $0x170] sm:$0xff] }
  0x21   :  { %2405 = vmatpush1.bf16.msra.mxu0 %v2404_v50  ;;  %2310 = vmatprep.subr.bf16.mxu1 %v2745_v0  ;;  %v21_v50 = vld [vmem:[%s4603_s0 + $0x38] sm:$0xff]  ;;  %v2434_v57 = vpack.c.bf16 %v470_v49, %v469_v48  ;;  %v415_v21 = vld [vmem:[%s4602_s1 + $0x160] sm:$0xff]  ;;  %v64_v25 = vld [vmem:[%s4603_s0 + $0x190] sm:$0xff] }
  0x22   :  { %2406 = vmatprep.subr.bf16.mxu0 %v2745_v0  ;;  %v57_v18 = vld [vmem:[%s4603_s0 + $0x158] sm:$0xff]  ;;  %v68_v27 = vld [vmem:[%s4603_s0 + $0x1b0] sm:$0xff]  ;;  %v63_v30 = vld [vmem:[%s4603_s0 + $0x188] sm:$0xff] }
  0x23   :  { %v61_v20 = vld [vmem:[%s4603_s0 + $0x178] sm:$0xff]  ;;  %v67_v31 = vld [vmem:[%s4603_s0 + $0x1a8] sm:$0xff]  ;;  %v70_v37 = vld [vmem:[%s4603_s0 + $0x1c0] sm:$0xff] }
  0x24   :  { %2312 = vmatpush1.bf16.msra.mxu1 %v2311_v55  ;;  %v407_v55 = vld [vmem:[%s4602_s1 + $0x120] sm:$0xff]  ;;  %v71_v32 = vld [vmem:[%s4603_s0 + $0x1c8] sm:$0xff]  ;;  %v85_v46 = vld [vmem:[%s4603_s0 + $0x238] sm:$0xff] }
  0x25   :  { %2408 = vmatpush1.bf16.msra.mxu0 %v2407_v56  ;;  %2313 = vmatprep.subr.bf16.mxu1 %v2745_v0  ;;  %v408_v56 = vld [vmem:[%s4602_s1 + $0x128] sm:$0xff]  ;;  %v74_v38 = vld [vmem:[%s4603_s0 + $0x1e0] sm:$0xff]  ;;  %v89_v48 = vld [vmem:[%s4603_s0 + $0x258] sm:$0xff] }
  0x26   :  { %2409 = vmatprep.subr.bf16.mxu0 %v2745_v0  ;;  %v420_v36 = vld [vmem:[%s4602_s1 + $0x188] sm:$0xff]  ;;  %v78_v39 = vld [vmem:[%s4603_s0 + $0x200] sm:$0xff]  ;;  %v429_v7 = vld [vmem:[%s4602_s1 + $0x1d0] sm:$0xff] }
  0x27   :  { %v423_v49 = vld [vmem:[%s4602_s1 + $0x1a0] sm:$0xff]  ;;  %v430_v8 = vld [vmem:[%s4602_s1 + $0x1d8] sm:$0xff]  ;;  %v432_v15 = vld [vmem:[%s4602_s1 + $0x1e8] sm:$0xff] }
  0x28   :  { %2315 = vmatpush1.bf16.msra.mxu1 %v2314_v61  ;;  %v2341_v61 = vpack.c.bf16 %v408_v56, %v407_v55  ;;  %v96_v55 = vld [vmem:[%s4603_s0 + $0x290] sm:$0xff]  ;;  %v431_v14 = vld [vmem:[%s4602_s1 + $0x1e0] sm:$0xff] }
  0x29   :  { %2411 = vmatpush1.bf16.msra.mxu0 %v2410_v62  ;;  %2316 = vmatprep.subr.bf16.mxu1 %v2745_v0  ;;  %v40_v62 = vld [vmem:[%s4603_s0 + $0xd0] sm:$0xff] }
  0x2a   :  { %2412 = vmatprep.subr.bf16.mxu0 %v2745_v0  ;;  %v425_v56 = vld [vmem:[%s4602_s1 + $0x1b0] sm:$0xff] }
  0x2c   :  { %2318 = vmatpush1.bf16.msra.mxu1 %v2317_v4  ;;  %v43_v4 = vld [vmem:[%s4603_s0 + $0xe8] sm:$0xff] }
  0x2d   :  { %2414 = vmatpush1.bf16.msra.mxu0 %v2413_v5  ;;  %2319 = vmatprep.subr.bf16.mxu1 %v2745_v0  ;;  %v2344_v5 = vpack.c.bf16 %v410_v1, %v409_v63  ;;  %v427_v63 = vld [vmem:[%s4602_s1 + $0x1c0] sm:$0xff]  ;;  %v428_v1 = vld [vmem:[%s4602_s1 + $0x1c8] sm:$0xff] }
  0x2e   :  { %2415 = vmatprep.subr.bf16.mxu0 %v2745_v0 }
  0x30   :  { %2321 = vmatpush1.bf16.msra.mxu1 %v2320_v10  ;;  %v46_v10 = vld [vmem:[%s4603_s0 + $0x100] sm:$0xff] }
  0x31   :  { %2417 = vmatpush1.bf16.msra.mxu0 %v2416_v11  ;;  %2322 = vmatprep.subr.bf16.mxu1 %v2745_v0  ;;  %v50_v11 = vld [vmem:[%s4603_s0 + $0x120] sm:$0xff] }
  0x32   :  { %2418 = vmatprep.subr.bf16.mxu0 %v2745_v0 }
  0x34   :  { %2324 = vmatpush1.bf16.msra.mxu1 %v2323_v16  ;;  %v49_v16 = vld [vmem:[%s4603_s0 + $0x118] sm:$0xff] }
  0x35   :  { %2420 = vmatpush1.bf16.msra.mxu0 %v2419_v17  ;;  %2325 = vmatprep.subr.bf16.mxu1 %v2745_v0  ;;  %v53_v17 = vld [vmem:[%s4603_s0 + $0x138] sm:$0xff] }
  0x36   :  { %2421 = vmatprep.subr.bf16.mxu0 %v2745_v0 }
  0x38   :  { %2327 = vmatpush1.bf16.msra.mxu1 %v2326_v22  ;;  %v416_v22 = vld [vmem:[%s4602_s1 + $0x168] sm:$0xff] }
  0x39   :  { %2423 = vmatpush1.bf16.msra.mxu0 %v2422_v23  ;;  %2328 = vmatprep.subr.bf16.mxu1 %v2745_v0  ;;  %v56_v23 = vld [vmem:[%s4603_s0 + $0x150] sm:$0xff]  ;;  %v2353_v26 = vpack.c.bf16 %v416_v22, %v415_v21  ;;  %v119_v21 = vld [vmem:[%s4603_s0 + $0x348] sm:$0xff] }
  0x3a   :  { %2424 = vmatprep.subr.bf16.mxu0 %v2745_v0  ;;  %v123_v22 = vld [vmem:[%s4603_s0 + $0x368] sm:$0xff] }
  0x3c   :  { %2330 = vmatpush1.bf16.msra.mxu1 %v2329_v28  ;;  %v417_v28 = vld [vmem:[%s4602_s1 + $0x170] sm:$0xff] }
  0x3d   :  { %2426 = vmatpush1.bf16.msra.mxu0 %v2425_v29  ;;  %2331 = vmatprep.subr.bf16.mxu1 %v2745_v0  ;;  %v418_v29 = vld [vmem:[%s4602_s1 + $0x178] sm:$0xff] }
  0x3e   :  { %2427 = vmatprep.subr.bf16.mxu0 %v2745_v0  ;;  %v2356_v33 = vpack.c.bf16 %v418_v29, %v417_v28  ;;  %v133_v28 = vld [vmem:[%s4603_s0 + $0x3b8] sm:$0xff]  ;;  %v433_v29 = vld [vmem:[%s4602_s1 + $0x1f0] sm:$0xff] }
  0x40   :  { %2333 = vmatpush1.bf16.msra.mxu1 %v2332_v34  ;;  %v75_v34 = vld [vmem:[%s4603_s0 + $0x1e8] sm:$0xff] }
  0x41   :  { %2429 = vmatpush1.bf16.msra.mxu0 %v2428_v35  ;;  %2334 = vmatprep.subr.bf16.mxu1 %v2745_v0  ;;  %v419_v35 = vld [vmem:[%s4602_s1 + $0x180] sm:$0xff] }
  0x42   :  { %2430 = vmatprep.subr.bf16.mxu0 %v2745_v0 }
  0x43   :  { %697 = vmatmul.mubr.f32.vlgmr.msra.gmra.mrb[0].mxu1 %v14_v40  ;;  %v2359_v40 = vpack.c.bf16 %v420_v36, %v419_v35  ;;  %v140_v35 = vld [vmem:[%s4603_s0 + $0x3f0] sm:$0xff] }
  0x44   :  { %1337 = vmatmul.mubr.f32.vlgmr.msra.gmra.mrb[0].mxu0 %v18_v42  ;;  %2336 = vmatpush1.bf16.msra.mxu1 %v2335_v41  ;;  %v82_v41 = vld [vmem:[%s4603_s0 + $0x220] sm:$0xff]  ;;  %v421_v42 = vld [vmem:[%s4602_s1 + $0x190] sm:$0xff] }
  0x45   :  { %701 = vmatprep.mubr.f32.mxu1 %v22_v43  ;;  %1341 = vmatprep.mubr.f32.mxu0 %v26_v44  ;;  %v422_v43 = vld [vmem:[%s4602_s1 + $0x198] sm:$0xff]  ;;  %v144_v36 = vld [vmem:[%s4603_s0 + $0x410] sm:$0xff] }
  0x46   :  { %2432 = vmatpush3.bf16.msra.mxu0 %v2431_v45  ;;  %2337 = vmatprep.subr.bf16.mxu1 %v2745_v0  ;;  %v77_v44 = vld [vmem:[%s4603_s0 + $0x1f8] sm:$0xff]  ;;  %v2362_v47 = vpack.c.bf16 %v422_v43, %v421_v42  ;;  %v159_v42 = vld [vmem:[%s4603_s0 + $0x488] sm:$0xff]  ;;  %v154_v43 = vld [vmem:[%s4603_s0 + $0x460] sm:$0xff] }
  0x47   :  { %702 = vmatmul.mubr.f32.gmra.mrb[2].mxu1 %v21_v50  ;;  %2433 = vmatprep.subr.bf16.mxu0 %v2745_v0  ;;  %v81_v45 = vld [vmem:[%s4603_s0 + $0x218] sm:$0xff]  ;;  %v424_v50 = vld [vmem:[%s4602_s1 + $0x1a8] sm:$0xff] }
  0x48   :  { %1342 = vmatmul.mubr.f32.gmra.mrb[2].mxu0 %v25_v51  ;;  %706 = vmatprep.mubr.f32.mxu1 %v29_v52  ;;  %v84_v51 = vld [vmem:[%s4603_s0 + $0x230] sm:$0xff] }
  0x49   :  { %1346 = vmatprep.mubr.f32.mxu0 %v33_v54  ;;  %2339 = vmatpush1.bf16.msra.mxu1 %v2338_v53  ;;  %v88_v52 = vld [vmem:[%s4603_s0 + $0x250] sm:$0xff]  ;;  %v2365_v54 = vpack.c.bf16 %v424_v50, %v423_v49  ;;  %v169_v49 = vld [vmem:[%s4603_s0 + $0x4d8] sm:$0xff] }
  0x4a   :  { %2340 = vmatprep.subr.bf16.mxu1 %v2745_v0  ;;  %2435 = vmatpush3.bf16.msra.mxu0 %v2434_v57  ;;  %v92_v53 = vld [vmem:[%s4603_s0 + $0x270] sm:$0xff]  ;;  %v426_v57 = vld [vmem:[%s4602_s1 + $0x1b8] sm:$0xff] }
  0x4b   :  { %707 = vmatmul.mubr.f32.gmra.mrb[4].mxu1 %v28_v58  ;;  %v91_v58 = vld [vmem:[%s4603_s0 + $0x268] sm:$0xff]  ;;  %v173_v50 = vld [vmem:[%s4603_s0 + $0x4f8] sm:$0xff] }
  0x4c   :  { %1347 = vmatmul.mubr.f32.gmra.mrb[4].mxu0 %v32_v59  ;;  %711 = vmatprep.mubr.f32.mxu1 %v36_v60  ;;  %v95_v59 = vld [vmem:[%s4603_s0 + $0x288] sm:$0xff] }
  0x4d   :  { %1351 = vmatprep.mubr.f32.mxu0 %v40_v62  ;;  %2342 = vmatpush1.bf16.msra.mxu1 %v2341_v61  ;;  %v99_v60 = vld [vmem:[%s4603_s0 + $0x2a8] sm:$0xff]  ;;  %v2368_v61 = vpack.c.bf16 %v426_v57, %v425_v56 }
  0x4e   :  { %2343 = vmatprep.subr.bf16.mxu1 %v2745_v0  ;;  %v103_v62 = vld [vmem:[%s4603_s0 + $0x2c8] sm:$0xff] }
  0x4f   :  { %712 = vmatmul.mubr.f32.gmra.mrb[6].mxu1 %v35_v2  ;;  %v98_v2 = vld [vmem:[%s4603_s0 + $0x2a0] sm:$0xff]  ;;  %v179_v56 = vld [vmem:[%s4603_s0 + $0x528] sm:$0xff] }
  0x50   :  { %1352 = vmatmul.mubr.f32.gmra.mrb[6].mxu0 %v39_v3  ;;  %716 = vmatprep.mubr.f32.mxu1 %v43_v4  ;;  %v102_v3 = vld [vmem:[%s4603_s0 + $0x2c0] sm:$0xff]  ;;  %v183_v57 = vld [vmem:[%s4603_s0 + $0x548] sm:$0xff] }
  0x51   :  { %1356 = vmatprep.mubr.f32.mxu0 %v47_v6  ;;  %2345 = vmatpush1.bf16.msra.mxu1 %v2344_v5  ;;  %v106_v4 = vld [vmem:[%s4603_s0 + $0x2e0] sm:$0xff]  ;;  %v2371_v5 = vpack.c.bf16 %v428_v1, %v427_v63  ;;  %v189_v63 = vld [vmem:[%s4603_s0 + $0x578] sm:$0xff] }
  0x52   :  { %2346 = vmatprep.subr.bf16.mxu1 %v2745_v0  ;;  %v110_v6 = vld [vmem:[%s4603_s0 + $0x300] sm:$0xff]  ;;  %v193_v1 = vld [vmem:[%s4603_s0 + $0x598] sm:$0xff] }
  0x53   :  { %717 = vmatmul.mubr.f32.gmra.mrb[8].mxu1 %v42_v9  ;;  %v105_v9 = vld [vmem:[%s4603_s0 + $0x2d8] sm:$0xff] }
  0x54   :  { %1357 = vmatmul.mubr.f32.gmra.mrb[8].mxu0 %v46_v10  ;;  %721 = vmatprep.mubr.f32.mxu1 %v50_v11  ;;  %v109_v10 = vld [vmem:[%s4603_s0 + $0x2f8] sm:$0xff] }
  0x55   :  { %1361 = vmatprep.mubr.f32.mxu0 %v54_v13  ;;  %2348 = vmatpush1.bf16.msra.mxu1 %v2347_v12  ;;  %v113_v11 = vld [vmem:[%s4603_s0 + $0x318] sm:$0xff]  ;;  %v2374_v12 = vpack.c.bf16 %v430_v8, %v429_v7  ;;  %v208_v7 = vld [vmem:[%s4603_s0 + $0x610] sm:$0xff]  ;;  %v203_v8 = vld [vmem:[%s4603_s0 + $0x5e8] sm:$0xff] }
  0x56   :  { %2349 = vmatprep.subr.bf16.mxu1 %v2745_v0  ;;  %v117_v13 = vld [vmem:[%s4603_s0 + $0x338] sm:$0xff] }
  0x57   :  { %722 = vmatmul.mubr.f32.gmra.mrb[10].mxu1 %v49_v16  ;;  %v112_v16 = vld [vmem:[%s4603_s0 + $0x310] sm:$0xff] }
  0x58   :  { %1362 = vmatmul.mubr.f32.gmra.mrb[10].mxu0 %v53_v17  ;;  %726 = vmatprep.mubr.f32.mxu1 %v57_v18  ;;  %v116_v17 = vld [vmem:[%s4603_s0 + $0x330] sm:$0xff] }
  0x59   :  { %1366 = vmatprep.mubr.f32.mxu0 %v61_v20  ;;  %2351 = vmatpush1.bf16.msra.mxu1 %v2350_v19  ;;  %v120_v18 = vld [vmem:[%s4603_s0 + $0x350] sm:$0xff]  ;;  %v2377_v19 = vpack.c.bf16 %v432_v15, %v431_v14  ;;  %v218_v14 = vld [vmem:[%s4603_s0 + $0x660] sm:$0xff] }
  0x5a   :  { %2352 = vmatprep.subr.bf16.mxu1 %v2745_v0  ;;  %v124_v20 = vld [vmem:[%s4603_s0 + $0x370] sm:$0xff]  ;;  %v222_v15 = vld [vmem:[%s4603_s0 + $0x680] sm:$0xff] }
  0x5b   :  { %727 = vmatmul.mubr.f32.gmra.mrb[12].mxu1 %v56_v23  ;;  %v127_v23 = vld [vmem:[%s4603_s0 + $0x388] sm:$0xff] }
  0x5c   :  { %1367 = vmatmul.mubr.f32.gmra.mrb[12].mxu0 %v60_v24  ;;  %731 = vmatprep.mubr.f32.mxu1 %v64_v25  ;;  %v131_v24 = vld [vmem:[%s4603_s0 + $0x3a8] sm:$0xff]  ;;  %v126_v25 = vld [vmem:[%s4603_s0 + $0x380] sm:$0xff] }
  0x5d   :  { %1371 = vmatprep.mubr.f32.mxu0 %v68_v27  ;;  %2354 = vmatpush1.bf16.msra.mxu1 %v2353_v26  ;;  %v130_v26 = vld [vmem:[%s4603_s0 + $0x3a0] sm:$0xff] }
  0x5e   :  { %2355 = vmatprep.subr.bf16.mxu1 %v2745_v0  ;;  %v134_v27 = vld [vmem:[%s4603_s0 + $0x3c0] sm:$0xff] }
  0x5f   :  { %732 = vmatmul.mubr.f32.gmra.mrb[14].mxu1 %v63_v30  ;;  %v434_v30 = vld [vmem:[%s4602_s1 + $0x1f8] sm:$0xff] }
  0x60   :  { %1372 = vmatmul.mubr.f32.gmra.mrb[14].mxu0 %v67_v31  ;;  %736 = vmatprep.mubr.f32.mxu1 %v71_v32  ;;  %v137_v31 = vld [vmem:[%s4603_s0 + $0x3d8] sm:$0xff] }
  0x61   :  { %1376 = vmatprep.mubr.f32.mxu0 %v75_v34  ;;  %2357 = vmatpush1.bf16.msra.mxu1 %v2356_v33  ;;  %v141_v32 = vld [vmem:[%s4603_s0 + $0x3f8] sm:$0xff]  ;;  %v2380_v33 = vpack.c.bf16 %v434_v30, %v433_v29  ;;  %v246_v29 = vld [vmem:[%s4603_s0 + $0x740] sm:$0xff] }
  0x62   :  { %2358 = vmatprep.subr.bf16.mxu1 %v2745_v0  ;;  %v145_v34 = vld [vmem:[%s4603_s0 + $0x418] sm:$0xff]  ;;  %v250_v30 = vld [vmem:[%s4603_s0 + $0x760] sm:$0xff] }
  0x63   :  { %737 = vmatmul.mubr.f32.gmra.mrb[16].mxu1 %v70_v37  ;;  %v148_v37 = vld [vmem:[%s4603_s0 + $0x430] sm:$0xff] }
  0x64   :  { %1377 = vmatmul.mubr.f32.gmra.mrb[16].mxu0 %v74_v38  ;;  %741 = vmatprep.mubr.f32.mxu1 %v78_v39  ;;  %v152_v38 = vld [vmem:[%s4603_s0 + $0x450] sm:$0xff]  ;;  %v147_v39 = vld [vmem:[%s4603_s0 + $0x428] sm:$0xff] }
  0x65   :  { %1381 = vmatprep.mubr.f32.mxu0 %v82_v41  ;;  %2360 = vmatpush1.bf16.msra.mxu1 %v2359_v40  ;;  %v151_v40 = vld [vmem:[%s4603_s0 + $0x448] sm:$0xff] }
  0x66   :  { %2361 = vmatprep.subr.bf16.mxu1 %v2745_v0  ;;  %v155_v41 = vld [vmem:[%s4603_s0 + $0x468] sm:$0xff] }
  0x67   :  { %742 = vmatmul.mubr.f32.gmra.mrb[18].mxu1 %v77_v44  ;;  %v158_v44 = vld [vmem:[%s4603_s0 + $0x480] sm:$0xff] }
  0x68   :  { %1382 = vmatmul.mubr.f32.gmra.mrb[18].mxu0 %v81_v45  ;;  %746 = vmatprep.mubr.f32.mxu1 %v85_v46  ;;  %v162_v45 = vld [vmem:[%s4603_s0 + $0x4a0] sm:$0xff] }
  0x69   :  { %1386 = vmatprep.mubr.f32.mxu0 %v89_v48  ;;  %2363 = vmatpush1.bf16.msra.mxu1 %v2362_v47  ;;  %v166_v46 = vld [vmem:[%s4603_s0 + $0x4c0] sm:$0xff]  ;;  %v161_v47 = vld [vmem:[%s4603_s0 + $0x498] sm:$0xff] }
  0x6a   :  { %2364 = vmatprep.subr.bf16.mxu1 %v2745_v0  ;;  %v165_v48 = vld [vmem:[%s4603_s0 + $0x4b8] sm:$0xff] }
  0x6b   :  { %747 = vmatmul.mubr.f32.gmra.mrb[20].mxu1 %v84_v51  ;;  %v168_v51 = vld [vmem:[%s4603_s0 + $0x4d0] sm:$0xff] }
  0x6c   :  { %1387 = vmatmul.mubr.f32.gmra.mrb[20].mxu0 %v88_v52  ;;  %751 = vmatprep.mubr.f32.mxu1 %v92_v53  ;;  %v172_v52 = vld [vmem:[%s4603_s0 + $0x4f0] sm:$0xff] }
  0x6d   :  { %1391 = vmatprep.mubr.f32.mxu0 %v96_v55  ;;  %2366 = vmatpush1.bf16.msra.mxu1 %v2365_v54  ;;  %v176_v53 = vld [vmem:[%s4603_s0 + $0x510] sm:$0xff]  ;;  %v175_v55 = vld [vmem:[%s4603_s0 + $0x508] sm:$0xff] }
  0x6e   :  { %2367 = vmatprep.subr.bf16.mxu1 %v2745_v0  ;;  %v180_v54 = vld [vmem:[%s4603_s0 + $0x530] sm:$0xff] }
  0x6f   :  { %752 = vmatmul.mubr.f32.gmra.mrb[22].mxu1 %v91_v58  ;;  %v187_v58 = vld [vmem:[%s4603_s0 + $0x568] sm:$0xff] }
  0x70   :  { %1392 = vmatmul.mubr.f32.gmra.mrb[22].mxu0 %v95_v59  ;;  %756 = vmatprep.mubr.f32.mxu1 %v99_v60  ;;  %v182_v59 = vld [vmem:[%s4603_s0 + $0x540] sm:$0xff] }
  0x71   :  { %1396 = vmatprep.mubr.f32.mxu0 %v103_v62  ;;  %2369 = vmatpush1.bf16.msra.mxu1 %v2368_v61  ;;  %v186_v60 = vld [vmem:[%s4603_s0 + $0x560] sm:$0xff] }
  0x72   :  { %2370 = vmatprep.subr.bf16.mxu1 %v2745_v0  ;;  %v190_v61 = vld [vmem:[%s4603_s0 + $0x580] sm:$0xff] }
  0x73   :  { %757 = vmatmul.mubr.f32.gmra.mrb[24].mxu1 %v98_v2  ;;  %v194_v62 = vld [vmem:[%s4603_s0 + $0x5a0] sm:$0xff]  ;;  %v197_v2 = vld [vmem:[%s4603_s0 + $0x5b8] sm:$0xff] }
  0x74   :  { %1397 = vmatmul.mubr.f32.gmra.mrb[24].mxu0 %v102_v3  ;;  %761 = vmatprep.mubr.f32.mxu1 %v106_v4  ;;  %v201_v3 = vld [vmem:[%s4603_s0 + $0x5d8] sm:$0xff]  ;;  %v196_v4 = vld [vmem:[%s4603_s0 + $0x5b0] sm:$0xff] }
  0x75   :  { %1401 = vmatprep.mubr.f32.mxu0 %v110_v6  ;;  %2372 = vmatpush1.bf16.msra.mxu1 %v2371_v5  ;;  %v200_v5 = vld [vmem:[%s4603_s0 + $0x5d0] sm:$0xff] }
  0x76   :  { %2373 = vmatprep.subr.bf16.mxu1 %v2745_v0  ;;  %v204_v6 = vld [vmem:[%s4603_s0 + $0x5f0] sm:$0xff] }
  0x77   :  { %762 = vmatmul.mubr.f32.gmra.mrb[26].mxu1 %v105_v9  ;;  %v207_v9 = vld [vmem:[%s4603_s0 + $0x608] sm:$0xff] }
  0x78   :  { %1402 = vmatmul.mubr.f32.gmra.mrb[26].mxu0 %v109_v10  ;;  %766 = vmatprep.mubr.f32.mxu1 %v113_v11  ;;  %v211_v10 = vld [vmem:[%s4603_s0 + $0x628] sm:$0xff] }
  0x79   :  { %1406 = vmatprep.mubr.f32.mxu0 %v117_v13  ;;  %2375 = vmatpush1.bf16.msra.mxu1 %v2374_v12  ;;  %v215_v11 = vld [vmem:[%s4603_s0 + $0x648] sm:$0xff]  ;;  %v210_v12 = vld [vmem:[%s4603_s0 + $0x620] sm:$0xff] }
  0x7a   :  { %2376 = vmatprep.subr.bf16.mxu1 %v2745_v0  ;;  %v214_v13 = vld [vmem:[%s4603_s0 + $0x640] sm:$0xff] }
  0x7b   :  { %767 = vmatmul.mubr.f32.gmra.mrb[28].mxu1 %v112_v16  ;;  %v217_v16 = vld [vmem:[%s4603_s0 + $0x658] sm:$0xff] }
  0x7c   :  { %1407 = vmatmul.mubr.f32.gmra.mrb[28].mxu0 %v116_v17  ;;  %771 = vmatprep.mubr.f32.mxu1 %v120_v18  ;;  %v221_v17 = vld [vmem:[%s4603_s0 + $0x678] sm:$0xff] }
  0x7d   :  { %1411 = vmatprep.mubr.f32.mxu0 %v124_v20  ;;  %2378 = vmatpush1.bf16.msra.mxu1 %v2377_v19  ;;  %v225_v18 = vld [vmem:[%s4603_s0 + $0x698] sm:$0xff]  ;;  %v224_v20 = vld [vmem:[%s4603_s0 + $0x690] sm:$0xff] }
  0x7e   :  { %2379 = vmatprep.subr.bf16.mxu1 %v2745_v0  ;;  %v138_v0 = vld [vmem:[%s4603_s0 + $0x3e0] sm:$0xff]  ;;  %v229_v19 = vld [vmem:[%s4603_s0 + $0x6b8] sm:$0xff] }
  0x7f   :  { %772 = vmatmul.mubr.f32.gmra.mrb[30].mxu1 %v119_v21  ;;  %v228_v21 = vld [vmem:[%s4603_s0 + $0x6b0] sm:$0xff] }
  0x80   :  { %1412 = vmatmul.mubr.f32.gmra.mrb[30].mxu0 %v123_v22  ;;  %776 = vmatprep.mubr.f32.mxu1 %v127_v23  ;;  %v232_v22 = vld [vmem:[%s4603_s0 + $0x6d0] sm:$0xff] }
  0x81   :  { %1416 = vmatprep.mubr.f32.mxu0 %v131_v24  ;;  %2381 = vmatpush1.bf16.msra.mxu1 %v2380_v33  ;;  %v236_v23 = vld [vmem:[%s4603_s0 + $0x6f0] sm:$0xff]  ;;  %v231_v24 = vld [vmem:[%s4603_s0 + $0x6c8] sm:$0xff]  ;;  %v253_v33 = vld [vmem:[%s4603_s0 + $0x778] sm:$0xff] }
  0x83   :  { %777 = vmatmul.mubr.f32.gmra.mrb[32].mxu1 %v126_v25  ;;  %v235_v25 = vld [vmem:[%s4603_s0 + $0x6e8] sm:$0xff] }
  0x84   :  { %1417 = vmatmul.mubr.f32.gmra.mrb[32].mxu0 %v130_v26  ;;  %781 = vmatprep.mubr.f32.mxu1 %v134_v27  ;;  %v239_v26 = vld [vmem:[%s4603_s0 + $0x708] sm:$0xff] }
  0x85   :  { %1421 = vmatprep.mubr.f32.mxu0 %v138_v0  ;;  %v243_v27 = vld [vmem:[%s4603_s0 + $0x728] sm:$0xff]  ;;  %v238_v0 = vld [vmem:[%s4603_s0 + $0x700] sm:$0xff] }
  0x87   :  { %782 = vmatmul.mubr.f32.gmra.mrb[34].mxu1 %v133_v28  ;;  %v242_v28 = vld [vmem:[%s4603_s0 + $0x720] sm:$0xff] }
  0x88   :  { %1422 = vmatmul.mubr.f32.gmra.mrb[34].mxu0 %v137_v31  ;;  %786 = vmatprep.mubr.f32.mxu1 %v141_v32  ;;  %v245_v31 = vld [vmem:[%s4603_s0 + $0x738] sm:$0xff] }
  0x89   :  { %1426 = vmatprep.mubr.f32.mxu0 %v145_v34  ;;  %v249_v32 = vld [vmem:[%s4603_s0 + $0x758] sm:$0xff] }
  0x8a   :  { %v257_v34 = vld [vmem:[%s4603_s0 + $0x798] sm:$0xff] }
  0x8b   :  { %787 = vmatmul.mubr.f32.gmra.mrb[36].mxu1 %v140_v35  ;;  %v252_v35 = vld [vmem:[%s4603_s0 + $0x770] sm:$0xff] }
  0x8c   :  { %1427 = vmatmul.mubr.f32.gmra.mrb[36].mxu0 %v144_v36  ;;  %791 = vmatprep.mubr.f32.mxu1 %v148_v37  ;;  %v256_v36 = vld [vmem:[%s4603_s0 + $0x790] sm:$0xff] }
  0x8d   :  { %1431 = vmatprep.mubr.f32.mxu0 %v152_v38  ;;  %v260_v37 = vld [vmem:[%s4603_s0 + $0x7b0] sm:$0xff] }
  0x8e   :  { %v264_v38 = vld [vmem:[%s4603_s0 + $0x7d0] sm:$0xff] }
  0x8f   :  { %792 = vmatmul.mubr.f32.gmra.mrb[38].mxu1 %v147_v39  ;;  %v259_v39 = vld [vmem:[%s4603_s0 + $0x7a8] sm:$0xff] }
  0x90   :  { %1432 = vmatmul.mubr.f32.gmra.mrb[38].mxu0 %v151_v40  ;;  %796 = vmatprep.mubr.f32.mxu1 %v155_v41  ;;  %v263_v40 = vld [vmem:[%s4603_s0 + $0x7c8] sm:$0xff] }
  0x91   :  { %1436 = vmatprep.mubr.f32.mxu0 %v159_v42  ;;  %v267_v41 = vld [vmem:[%s4603_s0 + $0x7e8] sm:$0xff] }
  0x92   :  { %v271_v42 = vld [vmem:[%s4603_s0 + $0x808] sm:$0xff] }
  0x93   :  { %797 = vmatmul.mubr.f32.gmra.mrb[40].mxu1 %v154_v43  ;;  %v266_v43 = vld [vmem:[%s4603_s0 + $0x7e0] sm:$0xff] }
  0x94   :  { %1437 = vmatmul.mubr.f32.gmra.mrb[40].mxu0 %v158_v44  ;;  %801 = vmatprep.mubr.f32.mxu1 %v162_v45  ;;  %v270_v44 = vld [vmem:[%s4603_s0 + $0x800] sm:$0xff] }
  0x95   :  { %1441 = vmatprep.mubr.f32.mxu0 %v166_v46  ;;  %v274_v45 = vld [vmem:[%s4603_s0 + $0x820] sm:$0xff] }
  0x96   :  { %v278_v46 = vld [vmem:[%s4603_s0 + $0x840] sm:$0xff] }
  0x97   :  { %802 = vmatmul.mubr.f32.gmra.mrb[42].mxu1 %v161_v47  ;;  %v273_v47 = vld [vmem:[%s4603_s0 + $0x818] sm:$0xff] }
  0x98   :  { %1442 = vmatmul.mubr.f32.gmra.mrb[42].mxu0 %v165_v48  ;;  %806 = vmatprep.mubr.f32.mxu1 %v169_v49  ;;  %v277_v48 = vld [vmem:[%s4603_s0 + $0x838] sm:$0xff] }
  0x99   :  { %1446 = vmatprep.mubr.f32.mxu0 %v173_v50  ;;  %v281_v49 = vld [vmem:[%s4603_s0 + $0x858] sm:$0xff] }
  0x9a   :  { %v285_v50 = vld [vmem:[%s4603_s0 + $0x878] sm:$0xff] }
  0x9b   :  { %807 = vmatmul.mubr.f32.gmra.mrb[44].mxu1 %v168_v51  ;;  %v280_v51 = vld [vmem:[%s4603_s0 + $0x850] sm:$0xff] }
  0x9c   :  { %1447 = vmatmul.mubr.f32.gmra.mrb[44].mxu0 %v172_v52  ;;  %811 = vmatprep.mubr.f32.mxu1 %v176_v53  ;;  %v284_v52 = vld [vmem:[%s4603_s0 + $0x870] sm:$0xff] }
  0x9d   :  { %1451 = vmatprep.mubr.f32.mxu0 %v180_v54  ;;  %v288_v53 = vld [vmem:[%s4603_s0 + $0x890] sm:$0xff] }
  0x9e   :  { %v292_v54 = vld [vmem:[%s4603_s0 + $0x8b0] sm:$0xff] }
  0x9f   :  { %812 = vmatmul.mubr.f32.gmra.mrb[46].mxu1 %v175_v55  ;;  %v287_v55 = vld [vmem:[%s4603_s0 + $0x888] sm:$0xff] }
  0xa0   :  { %1452 = vmatmul.mubr.f32.gmra.mrb[46].mxu0 %v179_v56  ;;  %816 = vmatprep.mubr.f32.mxu1 %v183_v57  ;;  %v291_v56 = vld [vmem:[%s4603_s0 + $0x8a8] sm:$0xff] }
  0xa1   :  { %1456 = vmatprep.mubr.f32.mxu0 %v187_v58  ;;  %v295_v57 = vld [vmem:[%s4603_s0 + $0x8c8] sm:$0xff] }
  0xa2   :  { %v299_v58 = vld [vmem:[%s4603_s0 + $0x8e8] sm:$0xff] }
  0xa3   :  { %817 = vmatmul.mubr.f32.gmra.mrb[48].mxu1 %v182_v59  ;;  %v294_v59 = vld [vmem:[%s4603_s0 + $0x8c0] sm:$0xff] }
  0xa4   :  { %1457 = vmatmul.mubr.f32.gmra.mrb[48].mxu0 %v186_v60  ;;  %821 = vmatprep.mubr.f32.mxu1 %v190_v61  ;;  %v298_v60 = vld [vmem:[%s4603_s0 + $0x8e0] sm:$0xff] }
  0xa5   :  { %1461 = vmatprep.mubr.f32.mxu0 %v194_v62  ;;  %v302_v61 = vld [vmem:[%s4603_s0 + $0x900] sm:$0xff] }
  0xa6   :  { %v306_v62 = vld [vmem:[%s4603_s0 + $0x920] sm:$0xff] }
  0xa7   :  { %822 = vmatmul.mubr.f32.gmra.mrb[50].mxu1 %v189_v63  ;;  %v301_v63 = vld [vmem:[%s4603_s0 + $0x8f8] sm:$0xff] }
  0xa8   :  { %1462 = vmatmul.mubr.f32.gmra.mrb[50].mxu0 %v193_v1  ;;  %826 = vmatprep.mubr.f32.mxu1 %v197_v2  ;;  %v305_v1 = vld [vmem:[%s4603_s0 + $0x918] sm:$0xff] }
  0xa9   :  { %1466 = vmatprep.mubr.f32.mxu0 %v201_v3  ;;  %v309_v2 = vld [vmem:[%s4603_s0 + $0x938] sm:$0xff] }
  0xaa   :  { %v313_v3 = vld [vmem:[%s4603_s0 + $0x958] sm:$0xff] }
  0xab   :  { %827 = vmatmul.mubr.f32.gmra.mrb[52].mxu1 %v196_v4  ;;  %v308_v4 = vld [vmem:[%s4603_s0 + $0x930] sm:$0xff] }
  0xac   :  { %1467 = vmatmul.mubr.f32.gmra.mrb[52].mxu0 %v200_v5  ;;  %831 = vmatprep.mubr.f32.mxu1 %v204_v6  ;;  %v312_v5 = vld [vmem:[%s4603_s0 + $0x950] sm:$0xff] }
  0xad   :  { %1471 = vmatprep.mubr.f32.mxu0 %v208_v7  ;;  %v316_v6 = vld [vmem:[%s4603_s0 + $0x970] sm:$0xff] }
  0xae   :  { %v320_v7 = vld [vmem:[%s4603_s0 + $0x990] sm:$0xff] }
  0xaf   :  { %832 = vmatmul.mubr.f32.gmra.mrb[54].mxu1 %v203_v8  ;;  %v315_v8 = vld [vmem:[%s4603_s0 + $0x968] sm:$0xff] }
  0xb0   :  { %1472 = vmatmul.mubr.f32.gmra.mrb[54].mxu0 %v207_v9  ;;  %836 = vmatprep.mubr.f32.mxu1 %v211_v10  ;;  %v319_v9 = vld [vmem:[%s4603_s0 + $0x988] sm:$0xff] }
  0xb1   :  { %1476 = vmatprep.mubr.f32.mxu0 %v215_v11  ;;  %v323_v10 = vld [vmem:[%s4603_s0 + $0x9a8] sm:$0xff] }
  0xb2   :  { %v327_v11 = vld [vmem:[%s4603_s0 + $0x9c8] sm:$0xff] }
  0xb3   :  { %837 = vmatmul.mubr.f32.gmra.mrb[56].mxu1 %v210_v12  ;;  %v322_v12 = vld [vmem:[%s4603_s0 + $0x9a0] sm:$0xff] }
  0xb4   :  { %1477 = vmatmul.mubr.f32.gmra.mrb[56].mxu0 %v214_v13  ;;  %841 = vmatprep.mubr.f32.mxu1 %v218_v14  ;;  %v326_v13 = vld [vmem:[%s4603_s0 + $0x9c0] sm:$0xff] }
  0xb5   :  { %1481 = vmatprep.mubr.f32.mxu0 %v222_v15  ;;  %v330_v14 = vld [vmem:[%s4603_s0 + $0x9e0] sm:$0xff] }
  0xb6   :  { %v334_v15 = vld [vmem:[%s4603_s0 + $0xa00] sm:$0xff] }
  0xb7   :  { %842 = vmatmul.mubr.f32.gmra.mrb[58].mxu1 %v217_v16  ;;  %v329_v16 = vld [vmem:[%s4603_s0 + $0x9d8] sm:$0xff] }
  0xb8   :  { %1482 = vmatmul.mubr.f32.gmra.mrb[58].mxu0 %v221_v17  ;;  %846 = vmatprep.mubr.f32.mxu1 %v225_v18  ;;  %v333_v17 = vld [vmem:[%s4603_s0 + $0x9f8] sm:$0xff] }
  0xb9   :  { %1486 = vmatprep.mubr.f32.mxu0 %v229_v19  ;;  %v337_v18 = vld [vmem:[%s4603_s0 + $0xa18] sm:$0xff] }
  0xba   :  { %v341_v19 = vld [vmem:[%s4603_s0 + $0xa38] sm:$0xff] }
  0xbb   :  { %847 = vmatmul.mubr.f32.gmra.mrb[60].mxu1 %v224_v20  ;;  %v336_v20 = vld [vmem:[%s4603_s0 + $0xa10] sm:$0xff] }
  0xbc   :  { %1487 = vmatmul.mubr.f32.gmra.mrb[60].mxu0 %v228_v21  ;;  %851 = vmatprep.mubr.f32.mxu1 %v232_v22  ;;  %v340_v21 = vld [vmem:[%s4603_s0 + $0xa30] sm:$0xff] }
  0xbd   :  { %1491 = vmatprep.mubr.f32.mxu0 %v236_v23  ;;  %v344_v22 = vld [vmem:[%s4603_s0 + $0xa50] sm:$0xff] }
  0xbe   :  { %v348_v23 = vld [vmem:[%s4603_s0 + $0xa70] sm:$0xff] }
  0xbf   :  { %852 = vmatmul.mubr.f32.gmra.mrb[62].mxu1 %v231_v24  ;;  %v343_v24 = vld [vmem:[%s4603_s0 + $0xa48] sm:$0xff] }
  0xc0   :  { %1492 = vmatmul.mubr.f32.gmra.mrb[62].mxu0 %v235_v25  ;;  %856 = vmatprep.mubr.f32.mxu1 %v239_v26  ;;  %v347_v25 = vld [vmem:[%s4603_s0 + $0xa68] sm:$0xff] }
  0xc1   :  { %1496 = vmatprep.mubr.f32.mxu0 %v243_v27  ;;  %v351_v26 = vld [vmem:[%s4603_s0 + $0xa88] sm:$0xff] }
  0xc2   :  { %v355_v27 = vld [vmem:[%s4603_s0 + $0xaa8] sm:$0xff] }
  0xc3   :  { %857 = vmatmul.mubr.f32.gmra.mrb[64].mxu1 %v238_v0  ;;  %v350_v0 = vld [vmem:[%s4603_s0 + $0xa80] sm:$0xff] }
  0xc4   :  { %1497 = vmatmul.mubr.f32.gmra.mrb[64].mxu0 %v242_v28  ;;  %861 = vmatprep.mubr.f32.mxu1 %v246_v29  ;;  %v354_v28 = vld [vmem:[%s4603_s0 + $0xaa0] sm:$0xff] }
  0xc5   :  { %1501 = vmatprep.mubr.f32.mxu0 %v250_v30  ;;  %v358_v29 = vld [vmem:[%s4603_s0 + $0xac0] sm:$0xff] }
  0xc6   :  { %v362_v30 = vld [vmem:[%s4603_s0 + $0xae0] sm:$0xff] }
  0xc7   :  { %862 = vmatmul.mubr.f32.gmra.mrb[66].mxu1 %v245_v31  ;;  %v357_v31 = vld [vmem:[%s4603_s0 + $0xab8] sm:$0xff] }
  0xc8   :  { %1502 = vmatmul.mubr.f32.gmra.mrb[66].mxu0 %v249_v32  ;;  %866 = vmatprep.mubr.f32.mxu1 %v253_v33  ;;  %v361_v32 = vld [vmem:[%s4603_s0 + $0xad8] sm:$0xff] }
  0xc9   :  { %1506 = vmatprep.mubr.f32.mxu0 %v257_v34  ;;  %v365_v33 = vld [vmem:[%s4603_s0 + $0xaf8] sm:$0xff] }
  0xca   :  { %v369_v34 = vld [vmem:[%s4603_s0 + $0xb18] sm:$0xff] }
  0xcb   :  { %867 = vmatmul.mubr.f32.gmra.mrb[68].mxu1 %v252_v35  ;;  %v364_v35 = vld [vmem:[%s4603_s0 + $0xaf0] sm:$0xff] }
  0xcc   :  { %1507 = vmatmul.mubr.f32.gmra.mrb[68].mxu0 %v256_v36  ;;  %871 = vmatprep.mubr.f32.mxu1 %v260_v37  ;;  %v368_v36 = vld [vmem:[%s4603_s0 + $0xb10] sm:$0xff]  ;;  %v17_v37 = vld [vmem:[%s4603_s0 + $0x18] sm:$0xff] }
  0xcd   :  { %1511 = vmatprep.mubr.f32.mxu0 %v264_v38  ;;  %v16_v38 = vld [vmem:[%s4603_s0 + $0x10] sm:$0xff] }
  0xcf   :  { %872 = vmatmul.mubr.f32.gmra.mrb[70].mxu1 %v259_v39  ;;  %v2747_v39 = vmov 0.0  }
  0xd0   :  { %1512 = vmatmul.mubr.f32.gmra.mrb[70].mxu0 %v263_v40  ;;  %876 = vmatprep.mubr.f32.mxu1 %v267_v41  ;;  %v20_v40 = vld [vmem:[%s4603_s0 + $0x30] sm:$0xff] }
  0xd1   :  { %1516 = vmatprep.mubr.f32.mxu0 %v271_v42  ;;  %v24_v41 = vld [vmem:[%s4603_s0 + $0x50] sm:$0xff]  ;;  %v23_v42 = vld [vmem:[%s4603_s0 + $0x48] sm:$0xff] }
  0xd3   :  { %877 = vmatmul.mubr.f32.gmra.mrb[72].mxu1 %v266_v43  ;;  %v27_v43 = vld [vmem:[%s4603_s0 + $0x68] sm:$0xff] }
  0xd4   :  { %1517 = vmatmul.mubr.f32.gmra.mrb[72].mxu0 %v270_v44  ;;  %881 = vmatprep.mubr.f32.mxu1 %v274_v45  ;;  %v31_v44 = vld [vmem:[%s4603_s0 + $0x88] sm:$0xff]  ;;  %v30_v45 = vld [vmem:[%s4603_s0 + $0x80] sm:$0xff] }
  0xd5   :  { %1521 = vmatprep.mubr.f32.mxu0 %v278_v46  ;;  %v34_v46 = vld [vmem:[%s4603_s0 + $0xa0] sm:$0xff] }
  0xd7   :  { %882 = vmatmul.mubr.f32.gmra.mrb[74].mxu1 %v273_v47  ;;  %v38_v47 = vld [vmem:[%s4603_s0 + $0xc0] sm:$0xff] }
  0xd8   :  { %1522 = vmatmul.mubr.f32.gmra.mrb[74].mxu0 %v277_v48  ;;  %886 = vmatprep.mubr.f32.mxu1 %v281_v49  ;;  %v37_v48 = vld [vmem:[%s4603_s0 + $0xb8] sm:$0xff] }
  0xd9   :  { %1526 = vmatprep.mubr.f32.mxu0 %v285_v50  ;;  %v41_v49 = vld [vmem:[%s4603_s0 + $0xd8] sm:$0xff] }
  0xda   :  { %v45_v50 = vld [vmem:[%s4603_s0 + $0xf8] sm:$0xff] }
  0xdb   :  { %887 = vmatmul.mubr.f32.gmra.mrb[76].mxu1 %v280_v51  ;;  %v44_v51 = vld [vmem:[%s4603_s0 + $0xf0] sm:$0xff] }
  0xdc   :  { %1527 = vmatmul.mubr.f32.gmra.mrb[76].mxu0 %v284_v52  ;;  %891 = vmatprep.mubr.f32.mxu1 %v288_v53  ;;  %v48_v52 = vld [vmem:[%s4603_s0 + $0x110] sm:$0xff] }
  0xdd   :  { %1531 = vmatprep.mubr.f32.mxu0 %v292_v54  ;;  %v52_v53 = vld [vmem:[%s4603_s0 + $0x130] sm:$0xff]  ;;  %v51_v54 = vld [vmem:[%s4603_s0 + $0x128] sm:$0xff] }
  0xdf   :  { %892 = vmatmul.mubr.f32.gmra.mrb[78].mxu1 %v287_v55  ;;  %v55_v55 = vld [vmem:[%s4603_s0 + $0x148] sm:$0xff] }
  0xe0   :  { %1532 = vmatmul.mubr.f32.gmra.mrb[78].mxu0 %v291_v56  ;;  %896 = vmatprep.mubr.f32.mxu1 %v295_v57  ;;  %v59_v56 = vld [vmem:[%s4603_s0 + $0x168] sm:$0xff]  ;;  %v58_v57 = vld [vmem:[%s4603_s0 + $0x160] sm:$0xff] }
  0xe1   :  { %1536 = vmatprep.mubr.f32.mxu0 %v299_v58  ;;  %v62_v58 = vld [vmem:[%s4603_s0 + $0x180] sm:$0xff] }
  0xe3   :  { %897 = vmatmul.mubr.f32.gmra.mrb[80].mxu1 %v294_v59  ;;  %v66_v59 = vld [vmem:[%s4603_s0 + $0x1a0] sm:$0xff] }
  0xe4   :  { %1537 = vmatmul.mubr.f32.gmra.mrb[80].mxu0 %v298_v60  ;;  %901 = vmatprep.mubr.f32.mxu1 %v302_v61  ;;  %v65_v60 = vld [vmem:[%s4603_s0 + $0x198] sm:$0xff] }
  0xe5   :  { %1541 = vmatprep.mubr.f32.mxu0 %v306_v62  ;;  %v69_v61 = vld [vmem:[%s4603_s0 + $0x1b8] sm:$0xff] }
  0xe6   :  { %v73_v62 = vld [vmem:[%s4603_s0 + $0x1d8] sm:$0xff] }
  0xe7   :  { %902 = vmatmul.mubr.f32.gmra.mrb[82].mxu1 %v301_v63  ;;  %v72_v63 = vld [vmem:[%s4603_s0 + $0x1d0] sm:$0xff] }
  0xe8   :  { %1542 = vmatmul.mubr.f32.gmra.mrb[82].mxu0 %v305_v1  ;;  %906 = vmatprep.mubr.f32.mxu1 %v309_v2  ;;  %v76_v1 = vld [vmem:[%s4603_s0 + $0x1f0] sm:$0xff] }
  0xe9   :  { %1546 = vmatprep.mubr.f32.mxu0 %v313_v3  ;;  %v80_v2 = vld [vmem:[%s4603_s0 + $0x210] sm:$0xff]  ;;  %v79_v3 = vld [vmem:[%s4603_s0 + $0x208] sm:$0xff] }
  0xeb   :  { %907 = vmatmul.mubr.f32.gmra.mrb[84].mxu1 %v308_v4  ;;  %v83_v4 = vld [vmem:[%s4603_s0 + $0x228] sm:$0xff] }
  0xec   :  { %1547 = vmatmul.mubr.f32.gmra.mrb[84].mxu0 %v312_v5  ;;  %911 = vmatprep.mubr.f32.mxu1 %v316_v6  ;;  %v87_v5 = vld [vmem:[%s4603_s0 + $0x248] sm:$0xff]  ;;  %v86_v6 = vld [vmem:[%s4603_s0 + $0x240] sm:$0xff] }
  0xed   :  { %1551 = vmatprep.mubr.f32.mxu0 %v320_v7  ;;  %v90_v7 = vld [vmem:[%s4603_s0 + $0x260] sm:$0xff] }
  0xef   :  { %912 = vmatmul.mubr.f32.gmra.mrb[86].mxu1 %v315_v8  ;;  %v94_v8 = vld [vmem:[%s4603_s0 + $0x280] sm:$0xff] }
  0xf0   :  { %1552 = vmatmul.mubr.f32.gmra.mrb[86].mxu0 %v319_v9  ;;  %916 = vmatprep.mubr.f32.mxu1 %v323_v10  ;;  %v93_v9 = vld [vmem:[%s4603_s0 + $0x278] sm:$0xff] }
  0xf1   :  { %1556 = vmatprep.mubr.f32.mxu0 %v327_v11  ;;  %v97_v10 = vld [vmem:[%s4603_s0 + $0x298] sm:$0xff] }
  0xf2   :  { %v101_v11 = vld [vmem:[%s4603_s0 + $0x2b8] sm:$0xff] }
  0xf3   :  { %917 = vmatmul.mubr.f32.gmra.mrb[88].mxu1 %v322_v12  ;;  %v100_v12 = vld [vmem:[%s4603_s0 + $0x2b0] sm:$0xff] }
  0xf4   :  { %1557 = vmatmul.mubr.f32.gmra.mrb[88].mxu0 %v326_v13  ;;  %921 = vmatprep.mubr.f32.mxu1 %v330_v14  ;;  %v104_v13 = vld [vmem:[%s4603_s0 + $0x2d0] sm:$0xff] }
  0xf5   :  { %1561 = vmatprep.mubr.f32.mxu0 %v334_v15  ;;  %v108_v14 = vld [vmem:[%s4603_s0 + $0x2f0] sm:$0xff]  ;;  %v107_v15 = vld [vmem:[%s4603_s0 + $0x2e8] sm:$0xff] }
  0xf7   :  { %922 = vmatmul.mubr.f32.gmra.mrb[90].mxu1 %v329_v16  ;;  %v111_v16 = vld [vmem:[%s4603_s0 + $0x308] sm:$0xff] }
  0xf8   :  { %1562 = vmatmul.mubr.f32.gmra.mrb[90].mxu0 %v333_v17  ;;  %926 = vmatprep.mubr.f32.mxu1 %v337_v18  ;;  %v115_v17 = vld [vmem:[%s4603_s0 + $0x328] sm:$0xff]  ;;  %v114_v18 = vld [vmem:[%s4603_s0 + $0x320] sm:$0xff] }
  0xf9   :  { %1566 = vmatprep.mubr.f32.mxu0 %v341_v19  ;;  %v118_v19 = vld [vmem:[%s4603_s0 + $0x340] sm:$0xff] }
  0xfb   :  { %927 = vmatmul.mubr.f32.gmra.mrb[92].mxu1 %v336_v20  ;;  %v122_v20 = vld [vmem:[%s4603_s0 + $0x360] sm:$0xff] }
  0xfc   :  { %1567 = vmatmul.mubr.f32.gmra.mrb[92].mxu0 %v340_v21  ;;  %931 = vmatprep.mubr.f32.mxu1 %v344_v22  ;;  %v121_v21 = vld [vmem:[%s4603_s0 + $0x358] sm:$0xff] }
  0xfd   :  { %1571 = vmatprep.mubr.f32.mxu0 %v348_v23  ;;  %v125_v22 = vld [vmem:[%s4603_s0 + $0x378] sm:$0xff] }
  0xfe   :  { %v129_v23 = vld [vmem:[%s4603_s0 + $0x398] sm:$0xff] }
  0xff   :  { %932 = vmatmul.mubr.f32.gmra.mrb[94].mxu1 %v343_v24  ;;  %v128_v24 = vld [vmem:[%s4603_s0 + $0x390] sm:$0xff] }
 0x100   :  { %1572 = vmatmul.mubr.f32.gmra.mrb[94].mxu0 %v347_v25  ;;  %936 = vmatprep.mubr.f32.mxu1 %v351_v26  ;;  %v132_v25 = vld [vmem:[%s4603_s0 + $0x3b0] sm:$0xff] }
 0x101   :  { %1576 = vmatprep.mubr.f32.mxu0 %v355_v27  ;;  %v136_v26 = vld [vmem:[%s4603_s0 + $0x3d0] sm:$0xff]  ;;  %v135_v27 = vld [vmem:[%s4603_s0 + $0x3c8] sm:$0xff] }
 0x103   :  { %937 = vmatmul.mubr.f32.gmra.mrb[96].mxu1 %v350_v0  ;;  %v139_v0 = vld [vmem:[%s4603_s0 + $0x3e8] sm:$0xff] }
 0x104   :  { %1577 = vmatmul.mubr.f32.gmra.mrb[96].mxu0 %v354_v28  ;;  %941 = vmatprep.mubr.f32.mxu1 %v358_v29  ;;  %v143_v28 = vld [vmem:[%s4603_s0 + $0x408] sm:$0xff]  ;;  %v142_v29 = vld [vmem:[%s4603_s0 + $0x400] sm:$0xff] }
 0x105   :  { %1581 = vmatprep.mubr.f32.mxu0 %v362_v30  ;;  %v146_v30 = vld [vmem:[%s4603_s0 + $0x420] sm:$0xff] }
 0x107   :  { %942 = vmatmul.mubr.f32.gmra.mrb[98].mxu1 %v357_v31  ;;  %v150_v31 = vld [vmem:[%s4603_s0 + $0x440] sm:$0xff] }
 0x108   :  { %1582 = vmatmul.mubr.f32.gmra.mrb[98].mxu0 %v361_v32  ;;  %946 = vmatprep.mubr.f32.mxu1 %v365_v33  ;;  %v149_v32 = vld [vmem:[%s4603_s0 + $0x438] sm:$0xff] }
 0x109   :  { %1586 = vmatprep.mubr.f32.mxu0 %v369_v34  ;;  %v153_v33 = vld [vmem:[%s4603_s0 + $0x458] sm:$0xff] }
 0x10a   :  { %v157_v34 = vld [vmem:[%s4603_s0 + $0x478] sm:$0xff] }
 0x10b   :  { %947 = vmatmul.mubr.f32.gmra.mrb[100].mxu1 %v364_v35  ;;  %v156_v35 = vld [vmem:[%s4603_s0 + $0x470] sm:$0xff] }
 0x10c   :  { %1587 = vmatmul.mubr.f32.gmra.mrb[100].mxu0 %v368_v36  ;;  %1016 = vmatprep.mubr.f32.mxu1 %v17_v37  ;;  %v160_v36 = vld [vmem:[%s4603_s0 + $0x490] sm:$0xff] }
 0x10d   :  { %2133 = vmatprep.mubr.msk.f32.mxu0 %vm2746_vm0, %v2747_v39  ;;  %v164_v37 = vld [vmem:[%s4603_s0 + $0x4b0] sm:$0xff] }
 0x10f   :  { %1017 = vmatmul.mubr.f32.vlgmr.msra.gmra.mrb[0].mxu1 %v16_v38  ;;  %v163_v38 = vld [vmem:[%s4603_s0 + $0x4a8] sm:$0xff] }
 0x110   :  { %2134 = vmatmul.mubr.msk.f32.vlgmr.msra.gmra.mrb[0].mxu0 %vm478_vm1, %v20_v40  ;;  %1021 = vmatprep.mubr.f32.mxu1 %v24_v41  ;;  %v167_v40 = vld [vmem:[%s4603_s0 + $0x4c8] sm:$0xff] }
 0x111   :  { %2136 = vmatprep.mubr.msk.f32.mxu0 %vm2746_vm0, %v2747_v39  ;;  %v171_v41 = vld [vmem:[%s4603_s0 + $0x4e8] sm:$0xff] }
 0x113   :  { %1022 = vmatmul.mubr.f32.gmra.mrb[2].mxu1 %v23_v42  ;;  %v170_v42 = vld [vmem:[%s4603_s0 + $0x4e0] sm:$0xff] }
 0x114   :  { %2137 = vmatmul.mubr.msk.f32.gmra.mrb[2].mxu0 %vm478_vm1, %v27_v43  ;;  %1026 = vmatprep.mubr.f32.mxu1 %v31_v44  ;;  %v174_v43 = vld [vmem:[%s4603_s0 + $0x500] sm:$0xff] }
 0x115   :  { %2139 = vmatprep.mubr.msk.f32.mxu0 %vm2746_vm0, %v2747_v39  ;;  %v178_v44 = vld [vmem:[%s4603_s0 + $0x520] sm:$0xff] }
 0x117   :  { %1027 = vmatmul.mubr.f32.gmra.mrb[4].mxu1 %v30_v45  ;;  %v177_v45 = vld [vmem:[%s4603_s0 + $0x518] sm:$0xff] }
 0x118   :  { %2140 = vmatmul.mubr.msk.f32.gmra.mrb[4].mxu0 %vm478_vm1, %v34_v46  ;;  %1031 = vmatprep.mubr.f32.mxu1 %v38_v47  ;;  %v181_v46 = vld [vmem:[%s4603_s0 + $0x538] sm:$0xff] }
 0x119   :  { %2142 = vmatprep.mubr.msk.f32.mxu0 %vm2746_vm0, %v2747_v39  ;;  %v185_v47 = vld [vmem:[%s4603_s0 + $0x558] sm:$0xff] }
 0x11b   :  { %1032 = vmatmul.mubr.f32.gmra.mrb[6].mxu1 %v37_v48  ;;  %v184_v48 = vld [vmem:[%s4603_s0 + $0x550] sm:$0xff] }
 0x11c   :  { %2143 = vmatmul.mubr.msk.f32.gmra.mrb[6].mxu0 %vm478_vm1, %v41_v49  ;;  %1036 = vmatprep.mubr.f32.mxu1 %v45_v50  ;;  %v188_v49 = vld [vmem:[%s4603_s0 + $0x570] sm:$0xff] }
 0x11d   :  { %2145 = vmatprep.mubr.msk.f32.mxu0 %vm2746_vm0, %v2747_v39  ;;  %v192_v50 = vld [vmem:[%s4603_s0 + $0x590] sm:$0xff] }
 0x11f   :  { %1037 = vmatmul.mubr.f32.gmra.mrb[8].mxu1 %v44_v51  ;;  %v191_v51 = vld [vmem:[%s4603_s0 + $0x588] sm:$0xff] }
 0x120   :  { %2146 = vmatmul.mubr.msk.f32.gmra.mrb[8].mxu0 %vm478_vm1, %v48_v52  ;;  %1041 = vmatprep.mubr.f32.mxu1 %v52_v53  ;;  %v195_v52 = vld [vmem:[%s4603_s0 + $0x5a8] sm:$0xff] }
 0x121   :  { %2148 = vmatprep.mubr.msk.f32.mxu0 %vm2746_vm0, %v2747_v39  ;;  %v199_v53 = vld [vmem:[%s4603_s0 + $0x5c8] sm:$0xff] }
 0x123   :  { %1042 = vmatmul.mubr.f32.gmra.mrb[10].mxu1 %v51_v54  ;;  %v198_v54 = vld [vmem:[%s4603_s0 + $0x5c0] sm:$0xff] }
 0x124   :  { %2149 = vmatmul.mubr.msk.f32.gmra.mrb[10].mxu0 %vm478_vm1, %v55_v55  ;;  %1046 = vmatprep.mubr.f32.mxu1 %v59_v56  ;;  %v202_v55 = vld [vmem:[%s4603_s0 + $0x5e0] sm:$0xff] }
 0x125   :  { %2151 = vmatprep.mubr.msk.f32.mxu0 %vm2746_vm0, %v2747_v39  ;;  %v206_v56 = vld [vmem:[%s4603_s0 + $0x600] sm:$0xff] }
 0x127   :  { %1047 = vmatmul.mubr.f32.gmra.mrb[12].mxu1 %v58_v57  ;;  %v205_v57 = vld [vmem:[%s4603_s0 + $0x5f8] sm:$0xff] }
 0x128   :  { %2152 = vmatmul.mubr.msk.f32.gmra.mrb[12].mxu0 %vm478_vm1, %v62_v58  ;;  %1051 = vmatprep.mubr.f32.mxu1 %v66_v59  ;;  %v209_v58 = vld [vmem:[%s4603_s0 + $0x618] sm:$0xff] }
 0x129   :  { %2154 = vmatprep.mubr.msk.f32.mxu0 %vm2746_vm0, %v2747_v39  ;;  %v213_v59 = vld [vmem:[%s4603_s0 + $0x638] sm:$0xff] }
 0x12b   :  { %1052 = vmatmul.mubr.f32.gmra.mrb[14].mxu1 %v65_v60  ;;  %v212_v60 = vld [vmem:[%s4603_s0 + $0x630] sm:$0xff] }
 0x12c   :  { %2155 = vmatmul.mubr.msk.f32.gmra.mrb[14].mxu0 %vm478_vm1, %v69_v61  ;;  %1056 = vmatprep.mubr.f32.mxu1 %v73_v62  ;;  %v216_v61 = vld [vmem:[%s4603_s0 + $0x650] sm:$0xff] }
 0x12d   :  { %2157 = vmatprep.mubr.msk.f32.mxu0 %vm2746_vm0, %v2747_v39  ;;  %v220_v62 = vld [vmem:[%s4603_s0 + $0x670] sm:$0xff] }
 0x12f   :  { %1057 = vmatmul.mubr.f32.gmra.mrb[16].mxu1 %v72_v63  ;;  %v219_v63 = vld [vmem:[%s4603_s0 + $0x668] sm:$0xff] }
 0x130   :  { %2158 = vmatmul.mubr.msk.f32.gmra.mrb[16].mxu0 %vm478_vm1, %v76_v1  ;;  %1061 = vmatprep.mubr.f32.mxu1 %v80_v2  ;;  %v223_v1 = vld [vmem:[%s4603_s0 + $0x688] sm:$0xff] }
 0x131   :  { %2160 = vmatprep.mubr.msk.f32.mxu0 %vm2746_vm0, %v2747_v39  ;;  %v227_v2 = vld [vmem:[%s4603_s0 + $0x6a8] sm:$0xff] }
 0x133   :  { %1062 = vmatmul.mubr.f32.gmra.mrb[18].mxu1 %v79_v3  ;;  %v226_v3 = vld [vmem:[%s4603_s0 + $0x6a0] sm:$0xff] }
 0x134   :  { %2161 = vmatmul.mubr.msk.f32.gmra.mrb[18].mxu0 %vm478_vm1, %v83_v4  ;;  %1066 = vmatprep.mubr.f32.mxu1 %v87_v5  ;;  %v230_v4 = vld [vmem:[%s4603_s0 + $0x6c0] sm:$0xff] }
 0x135   :  { %2163 = vmatprep.mubr.msk.f32.mxu0 %vm2746_vm0, %v2747_v39  ;;  %v234_v5 = vld [vmem:[%s4603_s0 + $0x6e0] sm:$0xff] }
 0x137   :  { %1067 = vmatmul.mubr.f32.gmra.mrb[20].mxu1 %v86_v6  ;;  %v233_v6 = vld [vmem:[%s4603_s0 + $0x6d8] sm:$0xff] }
 0x138   :  { %2164 = vmatmul.mubr.msk.f32.gmra.mrb[20].mxu0 %vm478_vm1, %v90_v7  ;;  %1071 = vmatprep.mubr.f32.mxu1 %v94_v8  ;;  %v237_v7 = vld [vmem:[%s4603_s0 + $0x6f8] sm:$0xff] }
 0x139   :  { %2166 = vmatprep.mubr.msk.f32.mxu0 %vm2746_vm0, %v2747_v39  ;;  %v241_v8 = vld [vmem:[%s4603_s0 + $0x718] sm:$0xff] }
 0x13b   :  { %1072 = vmatmul.mubr.f32.gmra.mrb[22].mxu1 %v93_v9  ;;  %v240_v9 = vld [vmem:[%s4603_s0 + $0x710] sm:$0xff] }
 0x13c   :  { %2167 = vmatmul.mubr.msk.f32.gmra.mrb[22].mxu0 %vm478_vm1, %v97_v10  ;;  %1076 = vmatprep.mubr.f32.mxu1 %v101_v11  ;;  %v244_v10 = vld [vmem:[%s4603_s0 + $0x730] sm:$0xff] }
 0x13d   :  { %2169 = vmatprep.mubr.msk.f32.mxu0 %vm2746_vm0, %v2747_v39  ;;  %v248_v11 = vld [vmem:[%s4603_s0 + $0x750] sm:$0xff] }
 0x13f   :  { %1077 = vmatmul.mubr.f32.gmra.mrb[24].mxu1 %v100_v12  ;;  %v247_v12 = vld [vmem:[%s4603_s0 + $0x748] sm:$0xff] }
 0x140   :  { %2170 = vmatmul.mubr.msk.f32.gmra.mrb[24].mxu0 %vm478_vm1, %v104_v13  ;;  %1081 = vmatprep.mubr.f32.mxu1 %v108_v14  ;;  %v251_v13 = vld [vmem:[%s4603_s0 + $0x768] sm:$0xff] }
 0x141   :  { %2172 = vmatprep.mubr.msk.f32.mxu0 %vm2746_vm0, %v2747_v39  ;;  %v255_v14 = vld [vmem:[%s4603_s0 + $0x788] sm:$0xff] }
 0x143   :  { %1082 = vmatmul.mubr.f32.gmra.mrb[26].mxu1 %v107_v15  ;;  %v254_v15 = vld [vmem:[%s4603_s0 + $0x780] sm:$0xff] }
 0x144   :  { %2173 = vmatmul.mubr.msk.f32.gmra.mrb[26].mxu0 %vm478_vm1, %v111_v16  ;;  %1086 = vmatprep.mubr.f32.mxu1 %v115_v17  ;;  %v258_v16 = vld [vmem:[%s4603_s0 + $0x7a0] sm:$0xff] }
 0x145   :  { %2175 = vmatprep.mubr.msk.f32.mxu0 %vm2746_vm0, %v2747_v39  ;;  %v262_v17 = vld [vmem:[%s4603_s0 + $0x7c0] sm:$0xff] }
 0x147   :  { %1087 = vmatmul.mubr.f32.gmra.mrb[28].mxu1 %v114_v18  ;;  %v261_v18 = vld [vmem:[%s4603_s0 + $0x7b8] sm:$0xff] }
 0x148   :  { %2176 = vmatmul.mubr.msk.f32.gmra.mrb[28].mxu0 %vm478_vm1, %v118_v19  ;;  %1091 = vmatprep.mubr.f32.mxu1 %v122_v20  ;;  %v265_v19 = vld [vmem:[%s4603_s0 + $0x7d8] sm:$0xff] }
 0x149   :  { %2178 = vmatprep.mubr.msk.f32.mxu0 %vm2746_vm0, %v2747_v39  ;;  %v269_v20 = vld [vmem:[%s4603_s0 + $0x7f8] sm:$0xff] }
 0x14b   :  { %1092 = vmatmul.mubr.f32.gmra.mrb[30].mxu1 %v121_v21  ;;  %v268_v21 = vld [vmem:[%s4603_s0 + $0x7f0] sm:$0xff] }
 0x14c   :  { %2179 = vmatmul.mubr.msk.f32.gmra.mrb[30].mxu0 %vm478_vm1, %v125_v22  ;;  %1096 = vmatprep.mubr.f32.mxu1 %v129_v23  ;;  %v272_v22 = vld [vmem:[%s4603_s0 + $0x810] sm:$0xff] }
 0x14d   :  { %2181 = vmatprep.mubr.msk.f32.mxu0 %vm2746_vm0, %v2747_v39  ;;  %v276_v23 = vld [vmem:[%s4603_s0 + $0x830] sm:$0xff] }
 0x14f   :  { %1097 = vmatmul.mubr.f32.gmra.mrb[32].mxu1 %v128_v24  ;;  %v275_v24 = vld [vmem:[%s4603_s0 + $0x828] sm:$0xff] }
 0x150   :  { %2182 = vmatmul.mubr.msk.f32.gmra.mrb[32].mxu0 %vm478_vm1, %v132_v25  ;;  %1101 = vmatprep.mubr.f32.mxu1 %v136_v26  ;;  %v279_v25 = vld [vmem:[%s4603_s0 + $0x848] sm:$0xff] }
 0x151   :  { %2184 = vmatprep.mubr.msk.f32.mxu0 %vm2746_vm0, %v2747_v39  ;;  %v283_v26 = vld [vmem:[%s4603_s0 + $0x868] sm:$0xff] }
 0x153   :  { %1102 = vmatmul.mubr.f32.gmra.mrb[34].mxu1 %v135_v27  ;;  %v282_v27 = vld [vmem:[%s4603_s0 + $0x860] sm:$0xff] }
 0x154   :  { %2185 = vmatmul.mubr.msk.f32.gmra.mrb[34].mxu0 %vm478_vm1, %v139_v0  ;;  %1106 = vmatprep.mubr.f32.mxu1 %v143_v28  ;;  %v286_v0 = vld [vmem:[%s4603_s0 + $0x880] sm:$0xff] }
 0x155   :  { %2187 = vmatprep.mubr.msk.f32.mxu0 %vm2746_vm0, %v2747_v39  ;;  %v290_v28 = vld [vmem:[%s4603_s0 + $0x8a0] sm:$0xff] }
 0x157   :  { %1107 = vmatmul.mubr.f32.gmra.mrb[36].mxu1 %v142_v29  ;;  %v289_v29 = vld [vmem:[%s4603_s0 + $0x898] sm:$0xff] }
 0x158   :  { %2188 = vmatmul.mubr.msk.f32.gmra.mrb[36].mxu0 %vm478_vm1, %v146_v30  ;;  %1111 = vmatprep.mubr.f32.mxu1 %v150_v31  ;;  %v293_v30 = vld [vmem:[%s4603_s0 + $0x8b8] sm:$0xff] }
 0x159   :  { %2190 = vmatprep.mubr.msk.f32.mxu0 %vm2746_vm0, %v2747_v39  ;;  %v297_v31 = vld [vmem:[%s4603_s0 + $0x8d8] sm:$0xff] }
 0x15b   :  { %1112 = vmatmul.mubr.f32.gmra.mrb[38].mxu1 %v149_v32  ;;  %v296_v32 = vld [vmem:[%s4603_s0 + $0x8d0] sm:$0xff] }
 0x15c   :  { %2191 = vmatmul.mubr.msk.f32.gmra.mrb[38].mxu0 %vm478_vm1, %v153_v33  ;;  %1116 = vmatprep.mubr.f32.mxu1 %v157_v34  ;;  %v300_v33 = vld [vmem:[%s4603_s0 + $0x8f0] sm:$0xff] }
 0x15d   :  { %2193 = vmatprep.mubr.msk.f32.mxu0 %vm2746_vm0, %v2747_v39  ;;  %v304_v34 = vld [vmem:[%s4603_s0 + $0x910] sm:$0xff] }
 0x15f   :  { %1117 = vmatmul.mubr.f32.gmra.mrb[40].mxu1 %v156_v35  ;;  %v303_v35 = vld [vmem:[%s4603_s0 + $0x908] sm:$0xff] }
 0x160   :  { %2194 = vmatmul.mubr.msk.f32.gmra.mrb[40].mxu0 %vm478_vm1, %v160_v36  ;;  %1121 = vmatprep.mubr.f32.mxu1 %v164_v37  ;;  %v307_v36 = vld [vmem:[%s4603_s0 + $0x928] sm:$0xff] }
 0x161   :  { %2196 = vmatprep.mubr.msk.f32.mxu0 %vm2746_vm0, %v2747_v39  ;;  %v311_v37 = vld [vmem:[%s4603_s0 + $0x948] sm:$0xff] }
 0x163   :  { %1122 = vmatmul.mubr.f32.gmra.mrb[42].mxu1 %v163_v38  ;;  %v310_v38 = vld [vmem:[%s4603_s0 + $0x940] sm:$0xff] }
 0x164   :  { %2197 = vmatmul.mubr.msk.f32.gmra.mrb[42].mxu0 %vm478_vm1, %v167_v40  ;;  %1126 = vmatprep.mubr.f32.mxu1 %v171_v41  ;;  %v314_v40 = vld [vmem:[%s4603_s0 + $0x960] sm:$0xff] }
 0x165   :  { %2199 = vmatprep.mubr.msk.f32.mxu0 %vm2746_vm0, %v2747_v39  ;;  %v318_v41 = vld [vmem:[%s4603_s0 + $0x980] sm:$0xff] }
 0x167   :  { %1127 = vmatmul.mubr.f32.gmra.mrb[44].mxu1 %v170_v42  ;;  %v317_v42 = vld [vmem:[%s4603_s0 + $0x978] sm:$0xff] }
 0x168   :  { %2200 = vmatmul.mubr.msk.f32.gmra.mrb[44].mxu0 %vm478_vm1, %v174_v43  ;;  %1131 = vmatprep.mubr.f32.mxu1 %v178_v44  ;;  %v321_v43 = vld [vmem:[%s4603_s0 + $0x998] sm:$0xff] }
 0x169   :  { %2202 = vmatprep.mubr.msk.f32.mxu0 %vm2746_vm0, %v2747_v39  ;;  %v325_v44 = vld [vmem:[%s4603_s0 + $0x9b8] sm:$0xff] }
 0x16b   :  { %1132 = vmatmul.mubr.f32.gmra.mrb[46].mxu1 %v177_v45  ;;  %v324_v45 = vld [vmem:[%s4603_s0 + $0x9b0] sm:$0xff] }
 0x16c   :  { %2203 = vmatmul.mubr.msk.f32.gmra.mrb[46].mxu0 %vm478_vm1, %v181_v46  ;;  %1136 = vmatprep.mubr.f32.mxu1 %v185_v47  ;;  %v328_v46 = vld [vmem:[%s4603_s0 + $0x9d0] sm:$0xff] }
 0x16d   :  { %2205 = vmatprep.mubr.msk.f32.mxu0 %vm2746_vm0, %v2747_v39  ;;  %v332_v47 = vld [vmem:[%s4603_s0 + $0x9f0] sm:$0xff] }
 0x16f   :  { %1137 = vmatmul.mubr.f32.gmra.mrb[48].mxu1 %v184_v48  ;;  %v331_v48 = vld [vmem:[%s4603_s0 + $0x9e8] sm:$0xff] }
 0x170   :  { %2206 = vmatmul.mubr.msk.f32.gmra.mrb[48].mxu0 %vm478_vm1, %v188_v49  ;;  %1141 = vmatprep.mubr.f32.mxu1 %v192_v50  ;;  %v335_v49 = vld [vmem:[%s4603_s0 + $0xa08] sm:$0xff] }
 0x171   :  { %2208 = vmatprep.mubr.msk.f32.mxu0 %vm2746_vm0, %v2747_v39  ;;  %v339_v50 = vld [vmem:[%s4603_s0 + $0xa28] sm:$0xff] }
 0x173   :  { %1142 = vmatmul.mubr.f32.gmra.mrb[50].mxu1 %v191_v51  ;;  %v338_v51 = vld [vmem:[%s4603_s0 + $0xa20] sm:$0xff] }
 0x174   :  { %2209 = vmatmul.mubr.msk.f32.gmra.mrb[50].mxu0 %vm478_vm1, %v195_v52  ;;  %1146 = vmatprep.mubr.f32.mxu1 %v199_v53  ;;  %v342_v52 = vld [vmem:[%s4603_s0 + $0xa40] sm:$0xff] }
 0x175   :  { %2211 = vmatprep.mubr.msk.f32.mxu0 %vm2746_vm0, %v2747_v39  ;;  %v346_v53 = vld [vmem:[%s4603_s0 + $0xa60] sm:$0xff] }
 0x177   :  { %1147 = vmatmul.mubr.f32.gmra.mrb[52].mxu1 %v198_v54  ;;  %v345_v54 = vld [vmem:[%s4603_s0 + $0xa58] sm:$0xff] }
 0x178   :  { %2212 = vmatmul.mubr.msk.f32.gmra.mrb[52].mxu0 %vm478_vm1, %v202_v55  ;;  %1151 = vmatprep.mubr.f32.mxu1 %v206_v56  ;;  %v349_v55 = vld [vmem:[%s4603_s0 + $0xa78] sm:$0xff] }
 0x179   :  { %2214 = vmatprep.mubr.msk.f32.mxu0 %vm2746_vm0, %v2747_v39  ;;  %v353_v56 = vld [vmem:[%s4603_s0 + $0xa98] sm:$0xff] }
 0x17b   :  { %1152 = vmatmul.mubr.f32.gmra.mrb[54].mxu1 %v205_v57  ;;  %v352_v57 = vld [vmem:[%s4603_s0 + $0xa90] sm:$0xff] }
 0x17c   :  { %2215 = vmatmul.mubr.msk.f32.gmra.mrb[54].mxu0 %vm478_vm1, %v209_v58  ;;  %1156 = vmatprep.mubr.f32.mxu1 %v213_v59  ;;  %v356_v58 = vld [vmem:[%s4603_s0 + $0xab0] sm:$0xff] }
 0x17d   :  { %2217 = vmatprep.mubr.msk.f32.mxu0 %vm2746_vm0, %v2747_v39  ;;  %v360_v59 = vld [vmem:[%s4603_s0 + $0xad0] sm:$0xff] }
 0x17f   :  { %1157 = vmatmul.mubr.f32.gmra.mrb[56].mxu1 %v212_v60  ;;  %v359_v60 = vld [vmem:[%s4603_s0 + $0xac8] sm:$0xff] }
 0x180   :  { %2218 = vmatmul.mubr.msk.f32.gmra.mrb[56].mxu0 %vm478_vm1, %v216_v61  ;;  %1161 = vmatprep.mubr.f32.mxu1 %v220_v62  ;;  %v363_v61 = vld [vmem:[%s4603_s0 + $0xae8] sm:$0xff] }
 0x181   :  { %2220 = vmatprep.mubr.msk.f32.mxu0 %vm2746_vm0, %v2747_v39  ;;  %v367_v62 = vld [vmem:[%s4603_s0 + $0xb08] sm:$0xff] }
 0x183   :  { %1162 = vmatmul.mubr.f32.gmra.mrb[58].mxu1 %v219_v63  ;;  %v366_v63 = vld [vmem:[%s4603_s0 + $0xb00] sm:$0xff] }
 0x184   :  { %2221 = vmatmul.mubr.msk.f32.gmra.mrb[58].mxu0 %vm478_vm1, %v223_v1  ;;  %1166 = vmatprep.mubr.f32.mxu1 %v227_v2  ;;  %v370_v1 = vld [vmem:[%s4603_s0 + $0xb20] sm:$0xff] }
 0x185   :  { %2223 = vmatprep.mubr.msk.f32.mxu0 %vm2746_vm0, %v2747_v39  ;;  %v4345_v2 = vld [vmem:[%s4604_s2] ss:$0 sm:$0xff] }
 0x187   :  { %1167 = vmatmul.mubr.f32.gmra.mrb[60].mxu1 %v226_v3 }
 0x188   :  { %2224 = vmatmul.mubr.msk.f32.gmra.mrb[60].mxu0 %vm478_vm1, %v230_v4  ;;  %1171 = vmatprep.mubr.f32.mxu1 %v234_v5 }
 0x189   :  { %2226 = vmatprep.mubr.msk.f32.mxu0 %vm2746_vm0, %v2747_v39 }
 0x18b   :  { %1172 = vmatmul.mubr.f32.gmra.mrb[62].mxu1 %v233_v6 }
 0x18c   :  { %2227 = vmatmul.mubr.msk.f32.gmra.mrb[62].mxu0 %vm478_vm1, %v237_v7  ;;  %1176 = vmatprep.mubr.f32.mxu1 %v241_v8 }
 0x18d   :  { %2229 = vmatprep.mubr.msk.f32.mxu0 %vm2746_vm0, %v2747_v39 }
 0x18f   :  { %1177 = vmatmul.mubr.f32.gmra.mrb[64].mxu1 %v240_v9 }
 0x190   :  { %2230 = vmatmul.mubr.msk.f32.gmra.mrb[64].mxu0 %vm478_vm1, %v244_v10  ;;  %1181 = vmatprep.mubr.f32.mxu1 %v248_v11 }
 0x191   :  { %2232 = vmatprep.mubr.msk.f32.mxu0 %vm2746_vm0, %v2747_v39 }
 0x193   :  { %1182 = vmatmul.mubr.f32.gmra.mrb[66].mxu1 %v247_v12 }
 0x194   :  { %2233 = vmatmul.mubr.msk.f32.gmra.mrb[66].mxu0 %vm478_vm1, %v251_v13  ;;  %1186 = vmatprep.mubr.f32.mxu1 %v255_v14 }
 0x195   :  { %2235 = vmatprep.mubr.msk.f32.mxu0 %vm2746_vm0, %v2747_v39 }
 0x197   :  { %1187 = vmatmul.mubr.f32.gmra.mrb[68].mxu1 %v254_v15 }
 0x198   :  { %2236 = vmatmul.mubr.msk.f32.gmra.mrb[68].mxu0 %vm478_vm1, %v258_v16  ;;  %1191 = vmatprep.mubr.f32.mxu1 %v262_v17 }
 0x199   :  { %2238 = vmatprep.mubr.msk.f32.mxu0 %vm2746_vm0, %v2747_v39 }
 0x19b   :  { %1192 = vmatmul.mubr.f32.gmra.mrb[70].mxu1 %v261_v18 }
 0x19c   :  { %2239 = vmatmul.mubr.msk.f32.gmra.mrb[70].mxu0 %vm478_vm1, %v265_v19  ;;  %1196 = vmatprep.mubr.f32.mxu1 %v269_v20 }
 0x19d   :  { %2241 = vmatprep.mubr.msk.f32.mxu0 %vm2746_vm0, %v2747_v39 }
 0x19f   :  { %1197 = vmatmul.mubr.f32.gmra.mrb[72].mxu1 %v268_v21 }
 0x1a0   :  { %2242 = vmatmul.mubr.msk.f32.gmra.mrb[72].mxu0 %vm478_vm1, %v272_v22  ;;  %1201 = vmatprep.mubr.f32.mxu1 %v276_v23 }
 0x1a1   :  { %2244 = vmatprep.mubr.msk.f32.mxu0 %vm2746_vm0, %v2747_v39 }
 0x1a3   :  { %1202 = vmatmul.mubr.f32.gmra.mrb[74].mxu1 %v275_v24 }
 0x1a4   :  { %2245 = vmatmul.mubr.msk.f32.gmra.mrb[74].mxu0 %vm478_vm1, %v279_v25  ;;  %1206 = vmatprep.mubr.f32.mxu1 %v283_v26 }
 0x1a5   :  { %2247 = vmatprep.mubr.msk.f32.mxu0 %vm2746_vm0, %v2747_v39 }
 0x1a7   :  { %1207 = vmatmul.mubr.f32.gmra.mrb[76].mxu1 %v282_v27 }
 0x1a8   :  { %2248 = vmatmul.mubr.msk.f32.gmra.mrb[76].mxu0 %vm478_vm1, %v286_v0  ;;  %1211 = vmatprep.mubr.f32.mxu1 %v290_v28 }
 0x1a9   :  { %2250 = vmatprep.mubr.msk.f32.mxu0 %vm2746_vm0, %v2747_v39 }
 0x1ab   :  { %1212 = vmatmul.mubr.f32.gmra.mrb[78].mxu1 %v289_v29 }
 0x1ac   :  { %2251 = vmatmul.mubr.msk.f32.gmra.mrb[78].mxu0 %vm478_vm1, %v293_v30  ;;  %1216 = vmatprep.mubr.f32.mxu1 %v297_v31 }
 0x1ad   :  { %2253 = vmatprep.mubr.msk.f32.mxu0 %vm2746_vm0, %v2747_v39 }
 0x1af   :  { %1217 = vmatmul.mubr.f32.gmra.mrb[80].mxu1 %v296_v32 }
 0x1b0   :  { %2254 = vmatmul.mubr.msk.f32.gmra.mrb[80].mxu0 %vm478_vm1, %v300_v33  ;;  %1221 = vmatprep.mubr.f32.mxu1 %v304_v34 }
 0x1b1   :  { %2256 = vmatprep.mubr.msk.f32.mxu0 %vm2746_vm0, %v2747_v39 }
 0x1b3   :  { %1222 = vmatmul.mubr.f32.gmra.mrb[82].mxu1 %v303_v35 }
 0x1b4   :  { %2257 = vmatmul.mubr.msk.f32.gmra.mrb[82].mxu0 %vm478_vm1, %v307_v36  ;;  %1226 = vmatprep.mubr.f32.mxu1 %v311_v37 }
 0x1b5   :  { %2259 = vmatprep.mubr.msk.f32.mxu0 %vm2746_vm0, %v2747_v39 }
 0x1b7   :  { %1227 = vmatmul.mubr.f32.gmra.mrb[84].mxu1 %v310_v38 }
 0x1b8   :  { %2260 = vmatmul.mubr.msk.f32.gmra.mrb[84].mxu0 %vm478_vm1, %v314_v40  ;;  %1231 = vmatprep.mubr.f32.mxu1 %v318_v41 }
 0x1b9   :  { %2262 = vmatprep.mubr.msk.f32.mxu0 %vm2746_vm0, %v2747_v39 }
 0x1bb   :  { %1232 = vmatmul.mubr.f32.gmra.mrb[86].mxu1 %v317_v42 }
 0x1bc   :  { %2263 = vmatmul.mubr.msk.f32.gmra.mrb[86].mxu0 %vm478_vm1, %v321_v43  ;;  %1236 = vmatprep.mubr.f32.mxu1 %v325_v44 }
 0x1bd   :  { %2265 = vmatprep.mubr.msk.f32.mxu0 %vm2746_vm0, %v2747_v39 }
 0x1bf   :  { %1237 = vmatmul.mubr.f32.gmra.mrb[88].mxu1 %v324_v45 }
 0x1c0   :  { %2266 = vmatmul.mubr.msk.f32.gmra.mrb[88].mxu0 %vm478_vm1, %v328_v46  ;;  %1241 = vmatprep.mubr.f32.mxu1 %v332_v47 }
 0x1c1   :  { %2268 = vmatprep.mubr.msk.f32.mxu0 %vm2746_vm0, %v2747_v39 }
 0x1c3   :  { %1242 = vmatmul.mubr.f32.gmra.mrb[90].mxu1 %v331_v48 }
 0x1c4   :  { %2269 = vmatmul.mubr.msk.f32.gmra.mrb[90].mxu0 %vm478_vm1, %v335_v49  ;;  %1246 = vmatprep.mubr.f32.mxu1 %v339_v50 }
 0x1c5   :  { %2271 = vmatprep.mubr.msk.f32.mxu0 %vm2746_vm0, %v2747_v39 }
 0x1c7   :  { %1247 = vmatmul.mubr.f32.gmra.mrb[92].mxu1 %v338_v51 }
 0x1c8   :  { %2272 = vmatmul.mubr.msk.f32.gmra.mrb[92].mxu0 %vm478_vm1, %v342_v52  ;;  %1251 = vmatprep.mubr.f32.mxu1 %v346_v53 }
 0x1c9   :  { %2274 = vmatprep.mubr.msk.f32.mxu0 %vm2746_vm0, %v2747_v39 }
 0x1cb   :  { %1252 = vmatmul.mubr.f32.gmra.mrb[94].mxu1 %v345_v54 }
 0x1cc   :  { %2275 = vmatmul.mubr.msk.f32.gmra.mrb[94].mxu0 %vm478_vm1, %v349_v55  ;;  %1256 = vmatprep.mubr.f32.mxu1 %v353_v56 }
 0x1cd   :  { %2277 = vmatprep.mubr.msk.f32.mxu0 %vm2746_vm0, %v2747_v39 }
 0x1cf   :  { %1257 = vmatmul.mubr.f32.gmra.mrb[96].mxu1 %v352_v57 }
 0x1d0   :  { %2278 = vmatmul.mubr.msk.f32.gmra.mrb[96].mxu0 %vm478_vm1, %v356_v58  ;;  %1261 = vmatprep.mubr.f32.mxu1 %v360_v59 }
 0x1d1   :  { %2280 = vmatprep.mubr.msk.f32.mxu0 %vm2746_vm0, %v2747_v39 }
 0x1d3   :  { %1262 = vmatmul.mubr.f32.gmra.mrb[98].mxu1 %v359_v60 }
 0x1d4   :  { %2281 = vmatmul.mubr.msk.f32.gmra.mrb[98].mxu0 %vm478_vm1, %v363_v61  ;;  %1266 = vmatprep.mubr.f32.mxu1 %v367_v62 }
 0x1d5   :  { %2283 = vmatprep.mubr.msk.f32.mxu0 %vm2746_vm0, %v2747_v39 }
 0x1d7   :  { %1267 = vmatmul.mubr.f32.gmra.mrb[100].mxu1 %v366_v63 }
 0x1d8   :  { %2284 = vmatmul.mubr.msk.f32.gmra.mrb[100].mxu0 %vm478_vm1, %v370_v1 }
 0x1e2   :  { %v1018_v3 = vpop.f32.mrb[0].mxu1 }
 0x1e3   :  { %v2436_v4 = vadd.f32 %v4345_v2, %v1018_v3  ;;  %v1658_v5 = vpop.f32.mrb[0].mxu0  ;;  %v1020_v6 = vpop.f32.mrb[1].mxu1 }
 0x1e4   :  { %v2135_v7 = vpop.f32.mrb[1].mxu0 }
 0x1e5   :  { %v2437_v8 = vadd.f32 %v2436_v4, %v1658_v5 }
 0x1e6   :  { %v1023_v39 = vpop.f32.mrb[2].mxu1 }
 0x1e7   :  { %v1912_v9 = vmax.f32 %v2437_v8, 0.0  ;;  %v2438_v10 = vadd.f32 %v4345_v2, %v1023_v39  ;;  %v1663_v11 = vpop.f32.mrb[2].mxu0  ;;  %v1025_v12 = vpop.f32.mrb[3].mxu1 }
 0x1e8   :  { %v2138_v13 = vpop.f32.mrb[3].mxu0 }
 0x1e9   :  { %1963 = vst.msk [vmem:[%s4605_s3] sm:$0xff] %vm478_vm1, %v1912_v9  ;;  %v2439_v14 = vadd.f32 %v2438_v10, %v1663_v11 }
 0x1ea   :  { %v1028_v15 = vpop.f32.mrb[4].mxu1 }
 0x1eb   :  { %v1913_v16 = vmax.f32 %v2439_v14, 0.0  ;;  %v2440_v17 = vadd.f32 %v4345_v2, %v1028_v15  ;;  %v1668_v18 = vpop.f32.mrb[4].mxu0  ;;  %v1030_v19 = vpop.f32.mrb[5].mxu1 }
 0x1ec   :  { %v2141_v20 = vpop.f32.mrb[5].mxu0 }
 0x1ed   :  { %1964 = vst.msk [vmem:[%s4605_s3 + $0x8] sm:$0xff] %vm478_vm1, %v1913_v16  ;;  %v2441_v21 = vadd.f32 %v2440_v17, %v1668_v18 }
 0x1ee   :  { %v1033_v22 = vpop.f32.mrb[6].mxu1 }
 0x1ef   :  { %v1914_v23 = vmax.f32 %v2441_v21, 0.0  ;;  %v2442_v24 = vadd.f32 %v4345_v2, %v1033_v22  ;;  %v1673_v25 = vpop.f32.mrb[6].mxu0  ;;  %v1035_v26 = vpop.f32.mrb[7].mxu1 }
 0x1f0   :  { %v2144_v27 = vpop.f32.mrb[7].mxu0 }
 0x1f1   :  { %1965 = vst.msk [vmem:[%s4605_s3 + $0x10] sm:$0xff] %vm478_vm1, %v1914_v23  ;;  %v2443_v0 = vadd.f32 %v2442_v24, %v1673_v25 }
 0x1f2   :  { %v1038_v28 = vpop.f32.mrb[8].mxu1 }
 0x1f3   :  { %v1915_v29 = vmax.f32 %v2443_v0, 0.0  ;;  %v2444_v30 = vadd.f32 %v4345_v2, %v1038_v28  ;;  %v1678_v31 = vpop.f32.mrb[8].mxu0  ;;  %v1040_v32 = vpop.f32.mrb[9].mxu1 }
 0x1f4   :  { %v2147_v33 = vpop.f32.mrb[9].mxu0 }
 0x1f5   :  { %1966 = vst.msk [vmem:[%s4605_s3 + $0x18] sm:$0xff] %vm478_vm1, %v1915_v29  ;;  %v2445_v34 = vadd.f32 %v2444_v30, %v1678_v31 }
 0x1f6   :  { %v1043_v35 = vpop.f32.mrb[10].mxu1 }
 0x1f7   :  { %v1916_v36 = vmax.f32 %v2445_v34, 0.0  ;;  %v2446_v37 = vadd.f32 %v4345_v2, %v1043_v35  ;;  %v1683_v38 = vpop.f32.mrb[10].mxu0  ;;  %v1045_v40 = vpop.f32.mrb[11].mxu1 }
 0x1f8   :  { %v2150_v41 = vpop.f32.mrb[11].mxu0 }
 0x1f9   :  { %1967 = vst.msk [vmem:[%s4605_s3 + $0x20] sm:$0xff] %vm478_vm1, %v1916_v36  ;;  %v2447_v42 = vadd.f32 %v2446_v37, %v1683_v38 }
 0x1fa   :  { %v1048_v43 = vpop.f32.mrb[12].mxu1 }
 0x1fb   :  { %v1917_v44 = vmax.f32 %v2447_v42, 0.0  ;;  %v2448_v45 = vadd.f32 %v4345_v2, %v1048_v43  ;;  %v1688_v46 = vpop.f32.mrb[12].mxu0  ;;  %v1050_v47 = vpop.f32.mrb[13].mxu1 }
 0x1fc   :  { %v2153_v48 = vpop.f32.mrb[13].mxu0 }
 0x1fd   :  { %1968 = vst.msk [vmem:[%s4605_s3 + $0x28] sm:$0xff] %vm478_vm1, %v1917_v44  ;;  %v2449_v49 = vadd.f32 %v2448_v45, %v1688_v46 }
 0x1fe   :  { %v1053_v50 = vpop.f32.mrb[14].mxu1 }
 0x1ff   :  { %v1918_v51 = vmax.f32 %v2449_v49, 0.0  ;;  %v2450_v52 = vadd.f32 %v4345_v2, %v1053_v50  ;;  %v1693_v53 = vpop.f32.mrb[14].mxu0  ;;  %v1055_v54 = vpop.f32.mrb[15].mxu1 }
 0x200   :  { %v2156_v55 = vpop.f32.mrb[15].mxu0 }
 0x201   :  { %1969 = vst.msk [vmem:[%s4605_s3 + $0x30] sm:$0xff] %vm478_vm1, %v1918_v51  ;;  %v2451_v56 = vadd.f32 %v2450_v52, %v1693_v53 }
 0x202   :  { %v1058_v57 = vpop.f32.mrb[16].mxu1 }
 0x203   :  { %v1919_v58 = vmax.f32 %v2451_v56, 0.0  ;;  %v2452_v59 = vadd.f32 %v4345_v2, %v1058_v57  ;;  %v1698_v60 = vpop.f32.mrb[16].mxu0  ;;  %v1060_v61 = vpop.f32.mrb[17].mxu1 }
 0x204   :  { %v2159_v62 = vpop.f32.mrb[17].mxu0 }
 0x205   :  { %1970 = vst.msk [vmem:[%s4605_s3 + $0x38] sm:$0xff] %vm478_vm1, %v1919_v58  ;;  %v2453_v63 = vadd.f32 %v2452_v59, %v1698_v60 }
 0x206   :  { %v1063_v1 = vpop.f32.mrb[18].mxu1 }
 0x207   :  { %v1920_v3 = vmax.f32 %v2453_v63, 0.0  ;;  %v2454_v4 = vadd.f32 %v4345_v2, %v1063_v1  ;;  %v1703_v5 = vpop.f32.mrb[18].mxu0  ;;  %v1065_v6 = vpop.f32.mrb[19].mxu1 }
 0x208   :  { %v2162_v7 = vpop.f32.mrb[19].mxu0 }
 0x209   :  { %1971 = vst.msk [vmem:[%s4605_s3 + $0x40] sm:$0xff] %vm478_vm1, %v1920_v3  ;;  %v2455_v8 = vadd.f32 %v2454_v4, %v1703_v5 }
 0x20a   :  { %v1068_v39 = vpop.f32.mrb[20].mxu1 }
 0x20b   :  { %v1921_v9 = vmax.f32 %v2455_v8, 0.0  ;;  %v2456_v10 = vadd.f32 %v4345_v2, %v1068_v39  ;;  %v1708_v11 = vpop.f32.mrb[20].mxu0  ;;  %v1070_v12 = vpop.f32.mrb[21].mxu1 }
 0x20c   :  { %v2165_v13 = vpop.f32.mrb[21].mxu0 }
 0x20d   :  { %1972 = vst.msk [vmem:[%s4605_s3 + $0x48] sm:$0xff] %vm478_vm1, %v1921_v9  ;;  %v2457_v14 = vadd.f32 %v2456_v10, %v1708_v11 }
 0x20e   :  { %v1073_v15 = vpop.f32.mrb[22].mxu1 }
 0x20f   :  { %v1922_v16 = vmax.f32 %v2457_v14, 0.0  ;;  %v2458_v17 = vadd.f32 %v4345_v2, %v1073_v15  ;;  %v1713_v18 = vpop.f32.mrb[22].mxu0  ;;  %v1075_v19 = vpop.f32.mrb[23].mxu1 }
 0x210   :  { %v2168_v20 = vpop.f32.mrb[23].mxu0 }
 0x211   :  { %1973 = vst.msk [vmem:[%s4605_s3 + $0x50] sm:$0xff] %vm478_vm1, %v1922_v16  ;;  %v2459_v21 = vadd.f32 %v2458_v17, %v1713_v18 }
 0x212   :  { %v1078_v22 = vpop.f32.mrb[24].mxu1 }
 0x213   :  { %v1923_v23 = vmax.f32 %v2459_v21, 0.0  ;;  %v2460_v24 = vadd.f32 %v4345_v2, %v1078_v22  ;;  %v1718_v25 = vpop.f32.mrb[24].mxu0  ;;  %v1080_v26 = vpop.f32.mrb[25].mxu1 }
 0x214   :  { %v2171_v27 = vpop.f32.mrb[25].mxu0 }
 0x215   :  { %1974 = vst.msk [vmem:[%s4605_s3 + $0x58] sm:$0xff] %vm478_vm1, %v1923_v23  ;;  %v2461_v0 = vadd.f32 %v2460_v24, %v1718_v25 }
 0x216   :  { %v1083_v28 = vpop.f32.mrb[26].mxu1 }
 0x217   :  { %v1924_v29 = vmax.f32 %v2461_v0, 0.0  ;;  %v2462_v30 = vadd.f32 %v4345_v2, %v1083_v28  ;;  %v1723_v31 = vpop.f32.mrb[26].mxu0  ;;  %v1085_v32 = vpop.f32.mrb[27].mxu1 }
 0x218   :  { %v2174_v33 = vpop.f32.mrb[27].mxu0 }
 0x219   :  { %1975 = vst.msk [vmem:[%s4605_s3 + $0x60] sm:$0xff] %vm478_vm1, %v1924_v29  ;;  %v2463_v34 = vadd.f32 %v2462_v30, %v1723_v31 }
 0x21a   :  { %v1088_v35 = vpop.f32.mrb[28].mxu1 }
 0x21b   :  { %v1925_v36 = vmax.f32 %v2463_v34, 0.0  ;;  %v2464_v37 = vadd.f32 %v4345_v2, %v1088_v35  ;;  %v1728_v38 = vpop.f32.mrb[28].mxu0  ;;  %v1090_v40 = vpop.f32.mrb[29].mxu1 }
 0x21c   :  { %v2177_v41 = vpop.f32.mrb[29].mxu0 }
 0x21d   :  { %1976 = vst.msk [vmem:[%s4605_s3 + $0x68] sm:$0xff] %vm478_vm1, %v1925_v36  ;;  %v2465_v42 = vadd.f32 %v2464_v37, %v1728_v38 }
 0x21e   :  { %v1093_v43 = vpop.f32.mrb[30].mxu1 }
 0x21f   :  { %v1926_v44 = vmax.f32 %v2465_v42, 0.0  ;;  %v2466_v45 = vadd.f32 %v4345_v2, %v1093_v43  ;;  %v1733_v46 = vpop.f32.mrb[30].mxu0  ;;  %v1095_v47 = vpop.f32.mrb[31].mxu1 }
 0x220   :  { %v2180_v48 = vpop.f32.mrb[31].mxu0 }
 0x221   :  { %1977 = vst.msk [vmem:[%s4605_s3 + $0x70] sm:$0xff] %vm478_vm1, %v1926_v44  ;;  %v2467_v49 = vadd.f32 %v2466_v45, %v1733_v46 }
 0x222   :  { %v1098_v50 = vpop.f32.mrb[32].mxu1 }
 0x223   :  { %v1927_v51 = vmax.f32 %v2467_v49, 0.0  ;;  %v2468_v52 = vadd.f32 %v4345_v2, %v1098_v50  ;;  %v1738_v53 = vpop.f32.mrb[32].mxu0  ;;  %v1100_v54 = vpop.f32.mrb[33].mxu1 }
 0x224   :  { %v2183_v55 = vpop.f32.mrb[33].mxu0 }
 0x225   :  { %1978 = vst.msk [vmem:[%s4605_s3 + $0x78] sm:$0xff] %vm478_vm1, %v1927_v51  ;;  %v2469_v56 = vadd.f32 %v2468_v52, %v1738_v53 }
 0x226   :  { %v1103_v57 = vpop.f32.mrb[34].mxu1 }
 0x227   :  { %v1928_v58 = vmax.f32 %v2469_v56, 0.0  ;;  %v2470_v59 = vadd.f32 %v4345_v2, %v1103_v57  ;;  %v1743_v60 = vpop.f32.mrb[34].mxu0  ;;  %v1105_v61 = vpop.f32.mrb[35].mxu1 }
 0x228   :  { %v2186_v62 = vpop.f32.mrb[35].mxu0 }
 0x229   :  { %1979 = vst.msk [vmem:[%s4605_s3 + $0x80] sm:$0xff] %vm478_vm1, %v1928_v58  ;;  %v2471_v63 = vadd.f32 %v2470_v59, %v1743_v60 }
 0x22a   :  { %v1108_v1 = vpop.f32.mrb[36].mxu1 }
 0x22b   :  { %v1929_v3 = vmax.f32 %v2471_v63, 0.0  ;;  %v2472_v4 = vadd.f32 %v4345_v2, %v1108_v1  ;;  %v1748_v5 = vpop.f32.mrb[36].mxu0  ;;  %v1110_v6 = vpop.f32.mrb[37].mxu1 }
 0x22c   :  { %v2189_v7 = vpop.f32.mrb[37].mxu0 }
 0x22d   :  { %1980 = vst.msk [vmem:[%s4605_s3 + $0x88] sm:$0xff] %vm478_vm1, %v1929_v3  ;;  %v2473_v8 = vadd.f32 %v2472_v4, %v1748_v5 }
 0x22e   :  { %v1113_v39 = vpop.f32.mrb[38].mxu1 }
 0x22f   :  { %v1930_v9 = vmax.f32 %v2473_v8, 0.0  ;;  %v2474_v10 = vadd.f32 %v4345_v2, %v1113_v39  ;;  %v1753_v11 = vpop.f32.mrb[38].mxu0  ;;  %v1115_v12 = vpop.f32.mrb[39].mxu1 }
 0x230   :  { %v2192_v13 = vpop.f32.mrb[39].mxu0 }
 0x231   :  { %1981 = vst.msk [vmem:[%s4605_s3 + $0x90] sm:$0xff] %vm478_vm1, %v1930_v9  ;;  %v2475_v14 = vadd.f32 %v2474_v10, %v1753_v11 }
 0x232   :  { %v1118_v15 = vpop.f32.mrb[40].mxu1 }
 0x233   :  { %v1931_v16 = vmax.f32 %v2475_v14, 0.0  ;;  %v2476_v17 = vadd.f32 %v4345_v2, %v1118_v15  ;;  %v1758_v18 = vpop.f32.mrb[40].mxu0  ;;  %v1120_v19 = vpop.f32.mrb[41].mxu1 }
 0x234   :  { %v2195_v20 = vpop.f32.mrb[41].mxu0 }
 0x235   :  { %1982 = vst.msk [vmem:[%s4605_s3 + $0x98] sm:$0xff] %vm478_vm1, %v1931_v16  ;;  %v2477_v21 = vadd.f32 %v2476_v17, %v1758_v18 }
 0x236   :  { %v1123_v22 = vpop.f32.mrb[42].mxu1 }
 0x237   :  { %v1932_v23 = vmax.f32 %v2477_v21, 0.0  ;;  %v2478_v24 = vadd.f32 %v4345_v2, %v1123_v22  ;;  %v1763_v25 = vpop.f32.mrb[42].mxu0  ;;  %v1125_v26 = vpop.f32.mrb[43].mxu1 }
 0x238   :  { %v2198_v27 = vpop.f32.mrb[43].mxu0 }
 0x239   :  { %1983 = vst.msk [vmem:[%s4605_s3 + $0xa0] sm:$0xff] %vm478_vm1, %v1932_v23  ;;  %v2479_v0 = vadd.f32 %v2478_v24, %v1763_v25 }
 0x23a   :  { %v1128_v28 = vpop.f32.mrb[44].mxu1 }
 0x23b   :  { %v1933_v29 = vmax.f32 %v2479_v0, 0.0  ;;  %v2480_v30 = vadd.f32 %v4345_v2, %v1128_v28  ;;  %v1768_v31 = vpop.f32.mrb[44].mxu0  ;;  %v1130_v32 = vpop.f32.mrb[45].mxu1 }
 0x23c   :  { %v2201_v33 = vpop.f32.mrb[45].mxu0 }
 0x23d   :  { %1984 = vst.msk [vmem:[%s4605_s3 + $0xa8] sm:$0xff] %vm478_vm1, %v1933_v29  ;;  %v2481_v34 = vadd.f32 %v2480_v30, %v1768_v31 }
 0x23e   :  { %v1133_v35 = vpop.f32.mrb[46].mxu1 }
 0x23f   :  { %v1934_v36 = vmax.f32 %v2481_v34, 0.0  ;;  %v2482_v37 = vadd.f32 %v4345_v2, %v1133_v35  ;;  %v1773_v38 = vpop.f32.mrb[46].mxu0  ;;  %v1135_v40 = vpop.f32.mrb[47].mxu1 }
 0x240   :  { %v2204_v41 = vpop.f32.mrb[47].mxu0 }
 0x241   :  { %1985 = vst.msk [vmem:[%s4605_s3 + $0xb0] sm:$0xff] %vm478_vm1, %v1934_v36  ;;  %v2483_v42 = vadd.f32 %v2482_v37, %v1773_v38 }
 0x242   :  { %v1138_v43 = vpop.f32.mrb[48].mxu1 }
 0x243   :  { %v1935_v44 = vmax.f32 %v2483_v42, 0.0  ;;  %v2484_v45 = vadd.f32 %v4345_v2, %v1138_v43  ;;  %v1778_v46 = vpop.f32.mrb[48].mxu0  ;;  %v1140_v47 = vpop.f32.mrb[49].mxu1 }
 0x244   :  { %v2207_v48 = vpop.f32.mrb[49].mxu0 }
 0x245   :  { %1986 = vst.msk [vmem:[%s4605_s3 + $0xb8] sm:$0xff] %vm478_vm1, %v1935_v44  ;;  %v2485_v49 = vadd.f32 %v2484_v45, %v1778_v46 }
 0x246   :  { %v1143_v50 = vpop.f32.mrb[50].mxu1 }
 0x247   :  { %v1936_v51 = vmax.f32 %v2485_v49, 0.0  ;;  %v2486_v52 = vadd.f32 %v4345_v2, %v1143_v50  ;;  %v1783_v53 = vpop.f32.mrb[50].mxu0  ;;  %v1145_v54 = vpop.f32.mrb[51].mxu1 }
 0x248   :  { %v2210_v55 = vpop.f32.mrb[51].mxu0 }
 0x249   :  { %1987 = vst.msk [vmem:[%s4605_s3 + $0xc0] sm:$0xff] %vm478_vm1, %v1936_v51  ;;  %v2487_v56 = vadd.f32 %v2486_v52, %v1783_v53 }
 0x24a   :  { %v1148_v57 = vpop.f32.mrb[52].mxu1 }
 0x24b   :  { %v1937_v58 = vmax.f32 %v2487_v56, 0.0  ;;  %v2488_v59 = vadd.f32 %v4345_v2, %v1148_v57  ;;  %v1788_v60 = vpop.f32.mrb[52].mxu0  ;;  %v1150_v61 = vpop.f32.mrb[53].mxu1 }
 0x24c   :  { %v2213_v62 = vpop.f32.mrb[53].mxu0 }
 0x24d   :  { %1988 = vst.msk [vmem:[%s4605_s3 + $0xc8] sm:$0xff] %vm478_vm1, %v1937_v58  ;;  %v2489_v63 = vadd.f32 %v2488_v59, %v1788_v60 }
 0x24e   :  { %v1153_v1 = vpop.f32.mrb[54].mxu1 }
 0x24f   :  { %v1938_v3 = vmax.f32 %v2489_v63, 0.0  ;;  %v2490_v4 = vadd.f32 %v4345_v2, %v1153_v1  ;;  %v1793_v5 = vpop.f32.mrb[54].mxu0  ;;  %v1155_v6 = vpop.f32.mrb[55].mxu1 }
 0x250   :  { %v2216_v7 = vpop.f32.mrb[55].mxu0 }
 0x251   :  { %1989 = vst.msk [vmem:[%s4605_s3 + $0xd0] sm:$0xff] %vm478_vm1, %v1938_v3  ;;  %v2491_v8 = vadd.f32 %v2490_v4, %v1793_v5 }
 0x252   :  { %v1158_v39 = vpop.f32.mrb[56].mxu1 }
 0x253   :  { %v1939_v9 = vmax.f32 %v2491_v8, 0.0  ;;  %v2492_v10 = vadd.f32 %v4345_v2, %v1158_v39  ;;  %v1798_v11 = vpop.f32.mrb[56].mxu0  ;;  %v1160_v12 = vpop.f32.mrb[57].mxu1 }
 0x254   :  { %v2219_v13 = vpop.f32.mrb[57].mxu0 }
 0x255   :  { %1990 = vst.msk [vmem:[%s4605_s3 + $0xd8] sm:$0xff] %vm478_vm1, %v1939_v9  ;;  %v2493_v14 = vadd.f32 %v2492_v10, %v1798_v11 }
 0x256   :  { %v1163_v15 = vpop.f32.mrb[58].mxu1 }
 0x257   :  { %v1940_v16 = vmax.f32 %v2493_v14, 0.0  ;;  %v2494_v17 = vadd.f32 %v4345_v2, %v1163_v15  ;;  %v1803_v18 = vpop.f32.mrb[58].mxu0  ;;  %v1165_v19 = vpop.f32.mrb[59].mxu1 }
 0x258   :  { %v2222_v20 = vpop.f32.mrb[59].mxu0 }
 0x259   :  { %1991 = vst.msk [vmem:[%s4605_s3 + $0xe0] sm:$0xff] %vm478_vm1, %v1940_v16  ;;  %v2495_v21 = vadd.f32 %v2494_v17, %v1803_v18 }
 0x25a   :  { %v1168_v22 = vpop.f32.mrb[60].mxu1 }
 0x25b   :  { %v1941_v23 = vmax.f32 %v2495_v21, 0.0  ;;  %v2496_v24 = vadd.f32 %v4345_v2, %v1168_v22  ;;  %v1808_v25 = vpop.f32.mrb[60].mxu0  ;;  %v1170_v26 = vpop.f32.mrb[61].mxu1 }
 0x25c   :  { %v2225_v27 = vpop.f32.mrb[61].mxu0 }
 0x25d   :  { %1992 = vst.msk [vmem:[%s4605_s3 + $0xe8] sm:$0xff] %vm478_vm1, %v1941_v23  ;;  %v2497_v0 = vadd.f32 %v2496_v24, %v1808_v25 }
 0x25e   :  { %v1173_v28 = vpop.f32.mrb[62].mxu1 }
 0x25f   :  { %v1942_v29 = vmax.f32 %v2497_v0, 0.0  ;;  %v2498_v30 = vadd.f32 %v4345_v2, %v1173_v28  ;;  %v1813_v31 = vpop.f32.mrb[62].mxu0  ;;  %v1175_v32 = vpop.f32.mrb[63].mxu1 }
 0x260   :  { %v2228_v33 = vpop.f32.mrb[63].mxu0 }
 0x261   :  { %1993 = vst.msk [vmem:[%s4605_s3 + $0xf0] sm:$0xff] %vm478_vm1, %v1942_v29  ;;  %v2499_v34 = vadd.f32 %v2498_v30, %v1813_v31 }
 0x262   :  { %v1178_v35 = vpop.f32.mrb[64].mxu1 }
 0x263   :  { %v1943_v36 = vmax.f32 %v2499_v34, 0.0  ;;  %v2500_v37 = vadd.f32 %v4345_v2, %v1178_v35  ;;  %v1818_v38 = vpop.f32.mrb[64].mxu0  ;;  %v1180_v40 = vpop.f32.mrb[65].mxu1 }
 0x264   :  { %v2231_v41 = vpop.f32.mrb[65].mxu0 }
 0x265   :  { %1994 = vst.msk [vmem:[%s4605_s3 + $0xf8] sm:$0xff] %vm478_vm1, %v1943_v36  ;;  %v2501_v42 = vadd.f32 %v2500_v37, %v1818_v38 }
 0x266   :  { %v1183_v43 = vpop.f32.mrb[66].mxu1 }
 0x267   :  { %v1944_v44 = vmax.f32 %v2501_v42, 0.0  ;;  %v2502_v45 = vadd.f32 %v4345_v2, %v1183_v43  ;;  %v1823_v46 = vpop.f32.mrb[66].mxu0  ;;  %v1185_v47 = vpop.f32.mrb[67].mxu1 }
 0x268   :  { %v2234_v48 = vpop.f32.mrb[67].mxu0 }
 0x269   :  { %1995 = vst.msk [vmem:[%s4605_s3 + $0x100] sm:$0xff] %vm478_vm1, %v1944_v44  ;;  %v2503_v49 = vadd.f32 %v2502_v45, %v1823_v46 }
 0x26a   :  { %v1188_v50 = vpop.f32.mrb[68].mxu1 }
 0x26b   :  { %v1945_v51 = vmax.f32 %v2503_v49, 0.0  ;;  %v2504_v52 = vadd.f32 %v4345_v2, %v1188_v50  ;;  %v1828_v53 = vpop.f32.mrb[68].mxu0  ;;  %v1190_v54 = vpop.f32.mrb[69].mxu1 }
 0x26c   :  { %v2237_v55 = vpop.f32.mrb[69].mxu0 }
 0x26d   :  { %1996 = vst.msk [vmem:[%s4605_s3 + $0x108] sm:$0xff] %vm478_vm1, %v1945_v51  ;;  %v2505_v56 = vadd.f32 %v2504_v52, %v1828_v53 }
 0x26e   :  { %v1193_v57 = vpop.f32.mrb[70].mxu1 }
 0x26f   :  { %v1946_v58 = vmax.f32 %v2505_v56, 0.0  ;;  %v2506_v59 = vadd.f32 %v4345_v2, %v1193_v57  ;;  %v1833_v60 = vpop.f32.mrb[70].mxu0  ;;  %v1195_v61 = vpop.f32.mrb[71].mxu1 }
 0x270   :  { %v2240_v62 = vpop.f32.mrb[71].mxu0 }
 0x271   :  { %1997 = vst.msk [vmem:[%s4605_s3 + $0x110] sm:$0xff] %vm478_vm1, %v1946_v58  ;;  %v2507_v63 = vadd.f32 %v2506_v59, %v1833_v60 }
 0x272   :  { %v1198_v1 = vpop.f32.mrb[72].mxu1 }
 0x273   :  { %v1947_v3 = vmax.f32 %v2507_v63, 0.0  ;;  %v2508_v4 = vadd.f32 %v4345_v2, %v1198_v1  ;;  %v1838_v5 = vpop.f32.mrb[72].mxu0  ;;  %v1200_v6 = vpop.f32.mrb[73].mxu1 }
 0x274   :  { %v2243_v7 = vpop.f32.mrb[73].mxu0 }
 0x275   :  { %1998 = vst.msk [vmem:[%s4605_s3 + $0x118] sm:$0xff] %vm478_vm1, %v1947_v3  ;;  %v2509_v8 = vadd.f32 %v2508_v4, %v1838_v5 }
 0x276   :  { %v1203_v39 = vpop.f32.mrb[74].mxu1 }
 0x277   :  { %v1948_v9 = vmax.f32 %v2509_v8, 0.0  ;;  %v2510_v10 = vadd.f32 %v4345_v2, %v1203_v39  ;;  %v1843_v11 = vpop.f32.mrb[74].mxu0  ;;  %v1205_v12 = vpop.f32.mrb[75].mxu1 }
 0x278   :  { %v2246_v13 = vpop.f32.mrb[75].mxu0 }
 0x279   :  { %1999 = vst.msk [vmem:[%s4605_s3 + $0x120] sm:$0xff] %vm478_vm1, %v1948_v9  ;;  %v2511_v14 = vadd.f32 %v2510_v10, %v1843_v11 }
 0x27a   :  { %v1208_v15 = vpop.f32.mrb[76].mxu1 }
 0x27b   :  { %v1949_v16 = vmax.f32 %v2511_v14, 0.0  ;;  %v2512_v17 = vadd.f32 %v4345_v2, %v1208_v15  ;;  %v1848_v18 = vpop.f32.mrb[76].mxu0  ;;  %v1210_v19 = vpop.f32.mrb[77].mxu1 }
 0x27c   :  { %v2249_v20 = vpop.f32.mrb[77].mxu0 }
 0x27d   :  { %2000 = vst.msk [vmem:[%s4605_s3 + $0x128] sm:$0xff] %vm478_vm1, %v1949_v16  ;;  %v2513_v21 = vadd.f32 %v2512_v17, %v1848_v18 }
 0x27e   :  { %v1213_v22 = vpop.f32.mrb[78].mxu1 }
 0x27f   :  { %v1950_v23 = vmax.f32 %v2513_v21, 0.0  ;;  %v2514_v24 = vadd.f32 %v4345_v2, %v1213_v22  ;;  %v1853_v25 = vpop.f32.mrb[78].mxu0  ;;  %v1215_v26 = vpop.f32.mrb[79].mxu1 }
 0x280   :  { %v2252_v27 = vpop.f32.mrb[79].mxu0 }
 0x281   :  { %2001 = vst.msk [vmem:[%s4605_s3 + $0x130] sm:$0xff] %vm478_vm1, %v1950_v23  ;;  %v2515_v0 = vadd.f32 %v2514_v24, %v1853_v25 }
 0x282   :  { %v1218_v28 = vpop.f32.mrb[80].mxu1 }
 0x283   :  { %v1951_v29 = vmax.f32 %v2515_v0, 0.0  ;;  %v2516_v30 = vadd.f32 %v4345_v2, %v1218_v28  ;;  %v1858_v31 = vpop.f32.mrb[80].mxu0  ;;  %v1220_v32 = vpop.f32.mrb[81].mxu1 }
 0x284   :  { %v2255_v33 = vpop.f32.mrb[81].mxu0 }
 0x285   :  { %2002 = vst.msk [vmem:[%s4605_s3 + $0x138] sm:$0xff] %vm478_vm1, %v1951_v29  ;;  %v2517_v34 = vadd.f32 %v2516_v30, %v1858_v31 }
 0x286   :  { %v1223_v35 = vpop.f32.mrb[82].mxu1 }
 0x287   :  { %v1952_v36 = vmax.f32 %v2517_v34, 0.0  ;;  %v2518_v37 = vadd.f32 %v4345_v2, %v1223_v35  ;;  %v1863_v38 = vpop.f32.mrb[82].mxu0  ;;  %v1225_v40 = vpop.f32.mrb[83].mxu1 }
 0x288   :  { %v2258_v41 = vpop.f32.mrb[83].mxu0 }
 0x289   :  { %2003 = vst.msk [vmem:[%s4605_s3 + $0x140] sm:$0xff] %vm478_vm1, %v1952_v36  ;;  %v2519_v42 = vadd.f32 %v2518_v37, %v1863_v38 }
 0x28a   :  { %v1228_v43 = vpop.f32.mrb[84].mxu1 }
 0x28b   :  { %v1953_v44 = vmax.f32 %v2519_v42, 0.0  ;;  %v2520_v45 = vadd.f32 %v4345_v2, %v1228_v43  ;;  %v1868_v46 = vpop.f32.mrb[84].mxu0  ;;  %v1230_v47 = vpop.f32.mrb[85].mxu1 }
 0x28c   :  { %v2261_v48 = vpop.f32.mrb[85].mxu0 }
 0x28d   :  { %2004 = vst.msk [vmem:[%s4605_s3 + $0x148] sm:$0xff] %vm478_vm1, %v1953_v44  ;;  %v2521_v49 = vadd.f32 %v2520_v45, %v1868_v46 }
 0x28e   :  { %v1233_v50 = vpop.f32.mrb[86].mxu1 }
 0x28f   :  { %v1954_v51 = vmax.f32 %v2521_v49, 0.0  ;;  %v2522_v52 = vadd.f32 %v4345_v2, %v1233_v50  ;;  %v1873_v53 = vpop.f32.mrb[86].mxu0  ;;  %v1235_v54 = vpop.f32.mrb[87].mxu1 }
 0x290   :  { %v2264_v55 = vpop.f32.mrb[87].mxu0 }
 0x291   :  { %2005 = vst.msk [vmem:[%s4605_s3 + $0x150] sm:$0xff] %vm478_vm1, %v1954_v51  ;;  %v2523_v56 = vadd.f32 %v2522_v52, %v1873_v53 }
 0x292   :  { %v1238_v57 = vpop.f32.mrb[88].mxu1 }
 0x293   :  { %v1955_v58 = vmax.f32 %v2523_v56, 0.0  ;;  %v2524_v59 = vadd.f32 %v4345_v2, %v1238_v57  ;;  %v1878_v60 = vpop.f32.mrb[88].mxu0  ;;  %v1240_v61 = vpop.f32.mrb[89].mxu1 }
 0x294   :  { %v2267_v62 = vpop.f32.mrb[89].mxu0 }
 0x295   :  { %2006 = vst.msk [vmem:[%s4605_s3 + $0x158] sm:$0xff] %vm478_vm1, %v1955_v58  ;;  %v2525_v63 = vadd.f32 %v2524_v59, %v1878_v60 }
 0x296   :  { %v1243_v1 = vpop.f32.mrb[90].mxu1 }
 0x297   :  { %v1956_v3 = vmax.f32 %v2525_v63, 0.0  ;;  %v2526_v4 = vadd.f32 %v4345_v2, %v1243_v1  ;;  %v1883_v5 = vpop.f32.mrb[90].mxu0  ;;  %v1245_v6 = vpop.f32.mrb[91].mxu1 }
 0x298   :  { %v2270_v7 = vpop.f32.mrb[91].mxu0 }
 0x299   :  { %2007 = vst.msk [vmem:[%s4605_s3 + $0x160] sm:$0xff] %vm478_vm1, %v1956_v3  ;;  %v2527_v8 = vadd.f32 %v2526_v4, %v1883_v5 }
 0x29a   :  { %v1248_v39 = vpop.f32.mrb[92].mxu1 }
 0x29b   :  { %v1957_v9 = vmax.f32 %v2527_v8, 0.0  ;;  %v2528_v10 = vadd.f32 %v4345_v2, %v1248_v39  ;;  %v1888_v11 = vpop.f32.mrb[92].mxu0  ;;  %v1250_v12 = vpop.f32.mrb[93].mxu1 }
 0x29c   :  { %v2273_v13 = vpop.f32.mrb[93].mxu0 }
 0x29d   :  { %2008 = vst.msk [vmem:[%s4605_s3 + $0x168] sm:$0xff] %vm478_vm1, %v1957_v9  ;;  %v2529_v14 = vadd.f32 %v2528_v10, %v1888_v11 }
 0x29e   :  { %v1253_v15 = vpop.f32.mrb[94].mxu1 }
 0x29f   :  { %v1958_v16 = vmax.f32 %v2529_v14, 0.0  ;;  %v2530_v17 = vadd.f32 %v4345_v2, %v1253_v15  ;;  %v1893_v18 = vpop.f32.mrb[94].mxu0  ;;  %v1255_v19 = vpop.f32.mrb[95].mxu1 }
 0x2a0   :  { %v2276_v20 = vpop.f32.mrb[95].mxu0 }
 0x2a1   :  { %2009 = vst.msk [vmem:[%s4605_s3 + $0x170] sm:$0xff] %vm478_vm1, %v1958_v16  ;;  %v2531_v21 = vadd.f32 %v2530_v17, %v1893_v18 }
 0x2a2   :  { %v1258_v22 = vpop.f32.mrb[96].mxu1 }
 0x2a3   :  { %v1959_v23 = vmax.f32 %v2531_v21, 0.0  ;;  %v2532_v24 = vadd.f32 %v4345_v2, %v1258_v22  ;;  %v1898_v25 = vpop.f32.mrb[96].mxu0  ;;  %v1260_v26 = vpop.f32.mrb[97].mxu1 }
 0x2a4   :  { %v2279_v27 = vpop.f32.mrb[97].mxu0 }
 0x2a5   :  { %2010 = vst.msk [vmem:[%s4605_s3 + $0x178] sm:$0xff] %vm478_vm1, %v1959_v23  ;;  %v2533_v0 = vadd.f32 %v2532_v24, %v1898_v25 }
 0x2a6   :  { %v1263_v28 = vpop.f32.mrb[98].mxu1 }
 0x2a7   :  { %v1960_v29 = vmax.f32 %v2533_v0, 0.0  ;;  %v2534_v30 = vadd.f32 %v4345_v2, %v1263_v28  ;;  %v1903_v31 = vpop.f32.mrb[98].mxu0  ;;  %v1265_v32 = vpop.f32.mrb[99].mxu1 }
 0x2a8   :  { %v2282_v33 = vpop.f32.mrb[99].mxu0 }
 0x2a9   :  { %2011 = vst.msk [vmem:[%s4605_s3 + $0x180] sm:$0xff] %vm478_vm1, %v1960_v29  ;;  %v2535_v34 = vadd.f32 %v2534_v30, %v1903_v31 }
 0x2aa   :  { %v1268_v35 = vpop.f32.mrb[100].mxu1 }
 0x2ab   :  { %v1961_v36 = vmax.f32 %v2535_v34, 0.0  ;;  %v2536_v37 = vadd.f32 %v4345_v2, %v1268_v35  ;;  %v1908_v38 = vpop.f32.mrb[100].mxu0  ;;  %v1270_v40 = vpop.f32.mrb[101].mxu1 }
 0x2ac   :  { %v2285_v41 = vpop.f32.mrb[101].mxu0 }
 0x2ad   :  { %2012 = vst.msk [vmem:[%s4605_s3 + $0x188] sm:$0xff] %vm478_vm1, %v1961_v36  ;;  %v2537_v42 = vadd.f32 %v2536_v37, %v1908_v38 }
 0x2af   :  { %v1962_v43 = vmax.f32 %v2537_v42, 0.0 }
 0x2b1   :  { %2013 = vst.msk [vmem:[%s4605_s3 + $0x190] sm:$0xff] %vm478_vm1, %v1962_v43 }

// kernel: miniworld_forward.6
= control target key start
LH: loop header
LB: loop body
LE: loop exit
PB: predicated region body
PF: predicated region fallthrough
CT: control target
= control target key end

     0   :  { %vm350_vm0 = vcmask 261120   ;;  %vm359_vm1 = vcmask 259072   ;;  %s917_s1 = inlined_call_operand.vmem [shape: f32[512,32], index: 1, kind: input, shape index: {}]   ;;  %s918_s0 = inlined_call_operand.vmem [shape: f32[70,512], index: 0, kind: input, shape index: {}]   ;;  %s919_s2 = inlined_call_operand.vmem [shape: f32[1,32], index: 2, kind: input, shape index: {}]   ;;  %s920_s3 = inlined_call_operand.vmem [shape: f32[70,32], index: 3, kind: output, shape index: {}]  }
   0x1   :  { %v66_v0 = vld [vmem:[%s917_s1 + $0x80] sm:$0xff]  ;;  %v67_v1 = vld [vmem:[%s917_s1 + $0x88] sm:$0xff]  ;;  %v68_v11 = vld [vmem:[%s917_s1 + $0x90] sm:$0xff] }
   0x2   :  { %v50_v2 = vld [vmem:[%s917_s1] sm:$0xff]  ;;  %v484_v3 = vpack.c.bf16 %v67_v1, %v66_v0  ;;  %v51_v4 = vld [vmem:[%s917_s1 + $0x8] sm:$0xff]  ;;  %v69_v13 = vld [vmem:[%s917_s1 + $0x98] sm:$0xff] }
   0x3   :  { %v98_v5 = vld [vmem:[%s917_s1 + $0x180] sm:$0xff]  ;;  %v99_v6 = vld [vmem:[%s917_s1 + $0x188] sm:$0xff]  ;;  %v486_v7 = vpack.c.bf16 %v51_v4, %v50_v2  ;;  %v52_v14 = vld [vmem:[%s917_s1 + $0x10] sm:$0xff]  ;;  %v488_v16 = vpack.c.bf16 %v69_v13, %v68_v11 }
   0x4   :  { %v516_v8 = vpack.c.bf16 %v99_v6, %v98_v5  ;;  %v82_v9 = vld [vmem:[%s917_s1 + $0x100] sm:$0xff]  ;;  %v83_v10 = vld [vmem:[%s917_s1 + $0x108] sm:$0xff]  ;;  %485 = vmatprep.subr.bf16.mxu0 %v484_v3  ;;  %v53_v15 = vld [vmem:[%s917_s1 + $0x18] sm:$0xff] }
   0x5   :  { %v518_v12 = vpack.c.bf16 %v83_v10, %v82_v9  ;;  %487 = vmatpush3.bf16.msra.mxu0 %v486_v7  ;;  %v490_v17 = vpack.c.bf16 %v53_v15, %v52_v14  ;;  %v100_v18 = vld [vmem:[%s917_s1 + $0x190] sm:$0xff]  ;;  %v101_v19 = vld [vmem:[%s917_s1 + $0x198] sm:$0xff]  ;;  %v70_v23 = vld [vmem:[%s917_s1 + $0xa0] sm:$0xff] }
   0x6   :  { %517 = vmatprep.subr.bf16.mxu1 %v516_v8  ;;  %v84_v20 = vld [vmem:[%s917_s1 + $0x110] sm:$0xff]  ;;  %v520_v21 = vpack.c.bf16 %v101_v19, %v100_v18  ;;  %v85_v22 = vld [vmem:[%s917_s1 + $0x118] sm:$0xff]  ;;  %v71_v24 = vld [vmem:[%s917_s1 + $0xa8] sm:$0xff]  ;;  %489 = vmatprep.subr.bf16.mxu0 %v488_v16 }
   0x7   :  { %519 = vmatpush3.bf16.msra.mxu1 %v518_v12  ;;  %v522_v25 = vpack.c.bf16 %v85_v22, %v84_v20  ;;  %v492_v26 = vpack.c.bf16 %v71_v24, %v70_v23  ;;  %v54_v27 = vld [vmem:[%s917_s1 + $0x20] sm:$0xff]  ;;  %v55_v28 = vld [vmem:[%s917_s1 + $0x28] sm:$0xff]  ;;  %v72_v35 = vld [vmem:[%s917_s1 + $0xb0] sm:$0xff] }
   0x8   :  { %v102_v29 = vld [vmem:[%s917_s1 + $0x1a0] sm:$0xff]  ;;  %521 = vmatprep.subr.bf16.mxu1 %v520_v21  ;;  %v103_v30 = vld [vmem:[%s917_s1 + $0x1a8] sm:$0xff]  ;;  %v494_v33 = vpack.c.bf16 %v55_v28, %v54_v27  ;;  %v73_v36 = vld [vmem:[%s917_s1 + $0xb8] sm:$0xff] }
   0x9   :  { %v86_v31 = vld [vmem:[%s917_s1 + $0x120] sm:$0xff]  ;;  %v87_v32 = vld [vmem:[%s917_s1 + $0x128] sm:$0xff]  ;;  %491 = vmatpush3.bf16.msra.mxu0 %v490_v17  ;;  %v524_v34 = vpack.c.bf16 %v103_v30, %v102_v29  ;;  %v56_v37 = vld [vmem:[%s917_s1 + $0x30] sm:$0xff]  ;;  %v496_v39 = vpack.c.bf16 %v73_v36, %v72_v35 }
   0xa   :  { %493 = vmatprep.subr.bf16.mxu0 %v492_v26  ;;  %v526_v38 = vpack.c.bf16 %v87_v32, %v86_v31  ;;  %v57_v40 = vld [vmem:[%s917_s1 + $0x38] sm:$0xff]  ;;  %v104_v41 = vld [vmem:[%s917_s1 + $0x1b0] sm:$0xff]  ;;  %v74_v46 = vld [vmem:[%s917_s1 + $0xc0] sm:$0xff] }
   0xb   :  { %523 = vmatpush3.bf16.msra.mxu1 %v522_v25  ;;  %v105_v42 = vld [vmem:[%s917_s1 + $0x1b8] sm:$0xff]  ;;  %v88_v44 = vld [vmem:[%s917_s1 + $0x130] sm:$0xff]  ;;  %v75_v47 = vld [vmem:[%s917_s1 + $0xc8] sm:$0xff]  ;;  %v498_v48 = vpack.c.bf16 %v57_v40, %v56_v37 }
   0xc   :  { %525 = vmatprep.subr.bf16.mxu1 %v524_v34  ;;  %v528_v43 = vpack.c.bf16 %v105_v42, %v104_v41  ;;  %v89_v45 = vld [vmem:[%s917_s1 + $0x138] sm:$0xff]  ;;  %v106_v49 = vld [vmem:[%s917_s1 + $0x1c0] sm:$0xff]  ;;  %v107_v50 = vld [vmem:[%s917_s1 + $0x1c8] sm:$0xff]  ;;  %v500_v52 = vpack.c.bf16 %v75_v47, %v74_v46 }
   0xd   :  { %495 = vmatpush3.bf16.msra.mxu0 %v494_v33  ;;  %v530_v51 = vpack.c.bf16 %v89_v45, %v88_v44  ;;  %v58_v53 = vld [vmem:[%s917_s1 + $0x40] sm:$0xff]  ;;  %v59_v54 = vld [vmem:[%s917_s1 + $0x48] sm:$0xff]  ;;  %v532_v56 = vpack.c.bf16 %v107_v50, %v106_v49  ;;  %v76_v58 = vld [vmem:[%s917_s1 + $0xd0] sm:$0xff] }
   0xe   :  { %497 = vmatprep.subr.bf16.mxu0 %v496_v39  ;;  %v90_v55 = vld [vmem:[%s917_s1 + $0x140] sm:$0xff]  ;;  %v91_v57 = vld [vmem:[%s917_s1 + $0x148] sm:$0xff]  ;;  %v77_v59 = vld [vmem:[%s917_s1 + $0xd8] sm:$0xff]  ;;  %v502_v62 = vpack.c.bf16 %v59_v54, %v58_v53 }
   0xf   :  { %527 = vmatpush3.bf16.msra.mxu1 %v526_v38  ;;  %v108_v60 = vld [vmem:[%s917_s1 + $0x1d0] sm:$0xff]  ;;  %v109_v61 = vld [vmem:[%s917_s1 + $0x1d8] sm:$0xff]  ;;  %v534_v63 = vpack.c.bf16 %v91_v57, %v90_v55  ;;  %v504_v0 = vpack.c.bf16 %v77_v59, %v76_v58  ;;  %v78_v6 = vld [vmem:[%s917_s1 + $0xe0] sm:$0xff] }
  0x10   :  { %529 = vmatprep.subr.bf16.mxu1 %v528_v43  ;;  %v60_v1 = vld [vmem:[%s917_s1 + $0x50] sm:$0xff]  ;;  %v61_v2 = vld [vmem:[%s917_s1 + $0x58] sm:$0xff]  ;;  %v536_v4 = vpack.c.bf16 %v109_v61, %v108_v60  ;;  %v79_v7 = vld [vmem:[%s917_s1 + $0xe8] sm:$0xff] }
  0x11   :  { %499 = vmatpush3.bf16.msra.mxu0 %v498_v48  ;;  %v92_v3 = vld [vmem:[%s917_s1 + $0x150] sm:$0xff]  ;;  %v93_v5 = vld [vmem:[%s917_s1 + $0x158] sm:$0xff]  ;;  %v110_v8 = vld [vmem:[%s917_s1 + $0x1e0] sm:$0xff]  ;;  %v506_v10 = vpack.c.bf16 %v61_v2, %v60_v1  ;;  %v508_v14 = vpack.c.bf16 %v79_v7, %v78_v6 }
  0x12   :  { %501 = vmatprep.subr.bf16.mxu0 %v500_v52  ;;  %v111_v9 = vld [vmem:[%s917_s1 + $0x1e8] sm:$0xff]  ;;  %v62_v11 = vld [vmem:[%s917_s1 + $0x60] sm:$0xff]  ;;  %v538_v13 = vpack.c.bf16 %v93_v5, %v92_v3  ;;  %v80_v19 = vld [vmem:[%s917_s1 + $0xf0] sm:$0xff] }
  0x13   :  { %531 = vmatpush3.bf16.msra.mxu1 %v530_v51  ;;  %v63_v12 = vld [vmem:[%s917_s1 + $0x68] sm:$0xff]  ;;  %v94_v15 = vld [vmem:[%s917_s1 + $0x160] sm:$0xff]  ;;  %v540_v18 = vpack.c.bf16 %v111_v9, %v110_v8  ;;  %v81_v20 = vld [vmem:[%s917_s1 + $0xf8] sm:$0xff] }
  0x14   :  { %533 = vmatprep.subr.bf16.mxu1 %v532_v56  ;;  %v95_v16 = vld [vmem:[%s917_s1 + $0x168] sm:$0xff]  ;;  %v17_v21 = vld [vmem:[%s918_s0 + $0x18] sm:$0xff]  ;;  %v112_v22 = vld [vmem:[%s917_s1 + $0x1f0] sm:$0xff]  ;;  %v510_v24 = vpack.c.bf16 %v63_v12, %v62_v11  ;;  %v512_v26 = vpack.c.bf16 %v81_v20, %v80_v19 }
  0x15   :  { %503 = vmatpush3.bf16.msra.mxu0 %v502_v62  ;;  %v15_v17 = vld [vmem:[%s918_s0 + $0x8] sm:$0xff]  ;;  %v113_v23 = vld [vmem:[%s917_s1 + $0x1f8] sm:$0xff]  ;;  %295 = vmatprep.mubr.f32.mxu1 %v17_v21  ;;  %v542_v25 = vpack.c.bf16 %v95_v16, %v94_v15  ;;  %v64_v27 = vld [vmem:[%s917_s1 + $0x70] sm:$0xff] }
  0x16   :  { %505 = vmatprep.subr.bf16.mxu0 %v504_v0  ;;  %185 = vmatprep.mubr.f32.mxu0 %v15_v17  ;;  %v65_v28 = vld [vmem:[%s917_s1 + $0x78] sm:$0xff]  ;;  %v544_v29 = vpack.c.bf16 %v113_v23, %v112_v22  ;;  %v96_v30 = vld [vmem:[%s917_s1 + $0x170] sm:$0xff]  ;;  %v14_v34 = vld [vmem:[%s918_s0] sm:$0xff] }
  0x17   :  { %535 = vmatpush3.bf16.msra.mxu1 %v534_v63  ;;  %v97_v31 = vld [vmem:[%s917_s1 + $0x178] sm:$0xff]  ;;  %v514_v32 = vpack.c.bf16 %v65_v28, %v64_v27  ;;  %v16_v35 = vld [vmem:[%s918_s0 + $0x10] sm:$0xff]  ;;  %v19_v36 = vld [vmem:[%s918_s0 + $0x28] sm:$0xff] }
  0x18   :  { %537 = vmatprep.subr.bf16.mxu1 %v536_v4  ;;  %v546_v33 = vpack.c.bf16 %v97_v31, %v96_v30  ;;  %v21_v37 = vld [vmem:[%s918_s0 + $0x38] sm:$0xff]  ;;  %v18_v38 = vld [vmem:[%s918_s0 + $0x20] sm:$0xff]  ;;  %v20_v39 = vld [vmem:[%s918_s0 + $0x30] sm:$0xff] }
  0x19   :  { %507 = vmatpush3.bf16.msra.mxu0 %v506_v10  ;;  %v23_v40 = vld [vmem:[%s918_s0 + $0x48] sm:$0xff]  ;;  %v25_v41 = vld [vmem:[%s918_s0 + $0x58] sm:$0xff]  ;;  %v22_v42 = vld [vmem:[%s918_s0 + $0x40] sm:$0xff] }
  0x1a   :  { %509 = vmatprep.subr.bf16.mxu0 %v508_v14  ;;  %v24_v43 = vld [vmem:[%s918_s0 + $0x50] sm:$0xff]  ;;  %v27_v44 = vld [vmem:[%s918_s0 + $0x68] sm:$0xff]  ;;  %v29_v45 = vld [vmem:[%s918_s0 + $0x78] sm:$0xff] }
  0x1b   :  { %539 = vmatpush3.bf16.msra.mxu1 %v538_v13  ;;  %v26_v46 = vld [vmem:[%s918_s0 + $0x60] sm:$0xff]  ;;  %v28_v47 = vld [vmem:[%s918_s0 + $0x70] sm:$0xff]  ;;  %v31_v48 = vld [vmem:[%s918_s0 + $0x88] sm:$0xff] }
  0x1c   :  { %541 = vmatprep.subr.bf16.mxu1 %v540_v18  ;;  %v33_v49 = vld [vmem:[%s918_s0 + $0x98] sm:$0xff]  ;;  %v30_v50 = vld [vmem:[%s918_s0 + $0x80] sm:$0xff]  ;;  %v32_v51 = vld [vmem:[%s918_s0 + $0x90] sm:$0xff] }
  0x1d   :  { %511 = vmatpush3.bf16.msra.mxu0 %v510_v24  ;;  %v35_v52 = vld [vmem:[%s918_s0 + $0xa8] sm:$0xff]  ;;  %v37_v53 = vld [vmem:[%s918_s0 + $0xb8] sm:$0xff]  ;;  %v34_v54 = vld [vmem:[%s918_s0 + $0xa0] sm:$0xff] }
  0x1e   :  { %513 = vmatprep.subr.bf16.mxu0 %v512_v26  ;;  %v36_v55 = vld [vmem:[%s918_s0 + $0xb0] sm:$0xff]  ;;  %v39_v56 = vld [vmem:[%s918_s0 + $0xc8] sm:$0xff]  ;;  %v41_v57 = vld [vmem:[%s918_s0 + $0xd8] sm:$0xff] }
  0x1f   :  { %543 = vmatpush3.bf16.msra.mxu1 %v542_v25  ;;  %v38_v58 = vld [vmem:[%s918_s0 + $0xc0] sm:$0xff]  ;;  %v40_v59 = vld [vmem:[%s918_s0 + $0xd0] sm:$0xff]  ;;  %v43_v60 = vld [vmem:[%s918_s0 + $0xe8] sm:$0xff] }
  0x20   :  { %545 = vmatprep.subr.bf16.mxu1 %v544_v29  ;;  %v45_v61 = vld [vmem:[%s918_s0 + $0xf8] sm:$0xff]  ;;  %v42_v62 = vld [vmem:[%s918_s0 + $0xe0] sm:$0xff]  ;;  %v44_v63 = vld [vmem:[%s918_s0 + $0xf0] sm:$0xff] }
  0x21   :  { %515 = vmatpush3.bf16.msra.mxu0 %v514_v32  ;;  %v47_v0 = vld [vmem:[%s918_s0 + $0x108] sm:$0x3f]  ;;  %v49_v1 = vld [vmem:[%s918_s0 + $0x118] sm:$0x3f]  ;;  %v46_v2 = vld [vmem:[%s918_s0 + $0x100] sm:$0x3f] }
  0x22   :  { %v48_v3 = vld [vmem:[%s918_s0 + $0x110] sm:$0x3f]  ;;  %v871_v5 = vld [vmem:[%s919_s2] ss:$0 sm:$0xff] }
  0x23   :  { %547 = vmatpush3.bf16.msra.mxu1 %v546_v33 }
  0x24   :  { %186 = vmatmul.mubr.f32.vlgmr.msra.gmra.mrb[0].mxu0 %v14_v34 }
  0x25   :  { %190 = vmatprep.mubr.f32.mxu0 %v19_v36 }
  0x26   :  { %296 = vmatmul.mubr.f32.vlgmr.msra.gmra.mrb[0].mxu1 %v16_v35 }
  0x27   :  { %300 = vmatprep.mubr.f32.mxu1 %v21_v37 }
  0x28   :  { %191 = vmatmul.mubr.f32.gmra.mrb[2].mxu0 %v18_v38 }
  0x29   :  { %195 = vmatprep.mubr.f32.mxu0 %v23_v40 }
  0x2a   :  { %301 = vmatmul.mubr.f32.gmra.mrb[2].mxu1 %v20_v39 }
  0x2b   :  { %305 = vmatprep.mubr.f32.mxu1 %v25_v41 }
  0x2c   :  { %196 = vmatmul.mubr.f32.gmra.mrb[4].mxu0 %v22_v42 }
  0x2d   :  { %200 = vmatprep.mubr.f32.mxu0 %v27_v44 }
  0x2e   :  { %306 = vmatmul.mubr.f32.gmra.mrb[4].mxu1 %v24_v43 }
  0x2f   :  { %310 = vmatprep.mubr.f32.mxu1 %v29_v45 }
  0x30   :  { %201 = vmatmul.mubr.f32.gmra.mrb[6].mxu0 %v26_v46 }
  0x31   :  { %205 = vmatprep.mubr.f32.mxu0 %v31_v48 }
  0x32   :  { %311 = vmatmul.mubr.f32.gmra.mrb[6].mxu1 %v28_v47 }
  0x33   :  { %315 = vmatprep.mubr.f32.mxu1 %v33_v49 }
  0x34   :  { %206 = vmatmul.mubr.f32.gmra.mrb[8].mxu0 %v30_v50 }
  0x35   :  { %210 = vmatprep.mubr.f32.mxu0 %v35_v52 }
  0x36   :  { %316 = vmatmul.mubr.f32.gmra.mrb[8].mxu1 %v32_v51 }
  0x37   :  { %320 = vmatprep.mubr.f32.mxu1 %v37_v53 }
  0x38   :  { %211 = vmatmul.mubr.f32.gmra.mrb[10].mxu0 %v34_v54 }
  0x39   :  { %215 = vmatprep.mubr.f32.mxu0 %v39_v56 }
  0x3a   :  { %321 = vmatmul.mubr.f32.gmra.mrb[10].mxu1 %v36_v55 }
  0x3b   :  { %325 = vmatprep.mubr.f32.mxu1 %v41_v57 }
  0x3c   :  { %216 = vmatmul.mubr.f32.gmra.mrb[12].mxu0 %v38_v58 }
  0x3d   :  { %220 = vmatprep.mubr.f32.mxu0 %v43_v60 }
  0x3e   :  { %326 = vmatmul.mubr.f32.gmra.mrb[12].mxu1 %v40_v59 }
  0x3f   :  { %330 = vmatprep.mubr.f32.mxu1 %v45_v61 }
  0x40   :  { %221 = vmatmul.mubr.f32.gmra.mrb[14].mxu0 %v42_v62 }
  0x41   :  { %225 = vmatprep.mubr.f32.mxu0 %v47_v0 }
  0x42   :  { %331 = vmatmul.mubr.f32.gmra.mrb[14].mxu1 %v44_v63 }
  0x43   :  { %335 = vmatprep.mubr.f32.mxu1 %v49_v1 }
  0x44   :  { %226 = vmatmul.mubr.f32.gmra.mrb[16].mxu0 %v46_v2 }
  0x46   :  { %336 = vmatmul.mubr.f32.gmra.mrb[16].mxu1 %v48_v3 }
  0xf7   :  { %v398_v4 = vpop.f32.mrb[0].mxu0 }
  0xf8   :  { %v399_v6 = vpop.f32.mrb[1].mxu0 }
  0xf9   :  { %v457_v7 = vpop.f32.mrb[0].mxu1  ;;  %v400_v8 = vadd.f32 %v399_v6, %v398_v4 }
  0xfa   :  { %v458_v9 = vpop.f32.mrb[1].mxu1 }
  0xfb   :  { %v459_v10 = vadd.f32 %v458_v9, %v457_v7  ;;  %v188_v11 = vadd.f32 %v400_v8, %v871_v5  ;;  %v401_v12 = vpop.f32.mrb[2].mxu0 }
  0xfc   :  { %v402_v13 = vpop.f32.mrb[3].mxu0 }
  0xfd   :  { %v460_v14 = vpop.f32.mrb[2].mxu1  ;;  %v298_v15 = vadd.f32 %v459_v10, %v188_v11  ;;  %v403_v16 = vadd.f32 %v402_v13, %v401_v12 }
  0xfe   :  { %v461_v17 = vpop.f32.mrb[3].mxu1 }
  0xff   :  { %v462_v18 = vadd.f32 %v461_v17, %v460_v14  ;;  %v341_v19 = vmax.f32 %v298_v15, 0.0  ;;  %v193_v20 = vadd.f32 %v403_v16, %v871_v5  ;;  %v404_v21 = vpop.f32.mrb[4].mxu0 }
 0x100   :  { %v405_v22 = vpop.f32.mrb[5].mxu0 }
 0x101   :  { %v463_v23 = vpop.f32.mrb[4].mxu1  ;;  %351 = vst.msk [vmem:[%s920_s3] sm:$0xff] %vm350_vm0, %v341_v19  ;;  %v303_v24 = vadd.f32 %v462_v18, %v193_v20  ;;  %v406_v25 = vadd.f32 %v405_v22, %v404_v21 }
 0x102   :  { %v464_v26 = vpop.f32.mrb[5].mxu1 }
 0x103   :  { %v465_v27 = vadd.f32 %v464_v26, %v463_v23  ;;  %v342_v28 = vmax.f32 %v303_v24, 0.0  ;;  %v198_v29 = vadd.f32 %v406_v25, %v871_v5  ;;  %v407_v30 = vpop.f32.mrb[6].mxu0 }
 0x104   :  { %v408_v31 = vpop.f32.mrb[7].mxu0 }
 0x105   :  { %v466_v32 = vpop.f32.mrb[6].mxu1  ;;  %352 = vst.msk [vmem:[%s920_s3 + $0x8] sm:$0xff] %vm350_vm0, %v342_v28  ;;  %v308_v33 = vadd.f32 %v465_v27, %v198_v29  ;;  %v409_v34 = vadd.f32 %v408_v31, %v407_v30 }
 0x106   :  { %v467_v35 = vpop.f32.mrb[7].mxu1 }
 0x107   :  { %v468_v36 = vadd.f32 %v467_v35, %v466_v32  ;;  %v343_v37 = vmax.f32 %v308_v33, 0.0  ;;  %v203_v38 = vadd.f32 %v409_v34, %v871_v5  ;;  %v410_v39 = vpop.f32.mrb[8].mxu0 }
 0x108   :  { %v411_v40 = vpop.f32.mrb[9].mxu0 }
 0x109   :  { %v469_v41 = vpop.f32.mrb[8].mxu1  ;;  %353 = vst.msk [vmem:[%s920_s3 + $0x10] sm:$0xff] %vm350_vm0, %v343_v37  ;;  %v313_v42 = vadd.f32 %v468_v36, %v203_v38  ;;  %v412_v43 = vadd.f32 %v411_v40, %v410_v39 }
 0x10a   :  { %v470_v44 = vpop.f32.mrb[9].mxu1 }
 0x10b   :  { %v471_v45 = vadd.f32 %v470_v44, %v469_v41  ;;  %v344_v46 = vmax.f32 %v313_v42, 0.0  ;;  %v208_v47 = vadd.f32 %v412_v43, %v871_v5  ;;  %v413_v48 = vpop.f32.mrb[10].mxu0 }
 0x10c   :  { %v414_v49 = vpop.f32.mrb[11].mxu0 }
 0x10d   :  { %v472_v50 = vpop.f32.mrb[10].mxu1  ;;  %354 = vst.msk [vmem:[%s920_s3 + $0x18] sm:$0xff] %vm350_vm0, %v344_v46  ;;  %v318_v51 = vadd.f32 %v471_v45, %v208_v47  ;;  %v415_v52 = vadd.f32 %v414_v49, %v413_v48 }
 0x10e   :  { %v473_v53 = vpop.f32.mrb[11].mxu1 }
 0x10f   :  { %v474_v54 = vadd.f32 %v473_v53, %v472_v50  ;;  %v345_v55 = vmax.f32 %v318_v51, 0.0  ;;  %v213_v56 = vadd.f32 %v415_v52, %v871_v5  ;;  %v416_v57 = vpop.f32.mrb[12].mxu0 }
 0x110   :  { %v417_v58 = vpop.f32.mrb[13].mxu0 }
 0x111   :  { %v475_v59 = vpop.f32.mrb[12].mxu1  ;;  %355 = vst.msk [vmem:[%s920_s3 + $0x20] sm:$0xff] %vm350_vm0, %v345_v55  ;;  %v323_v60 = vadd.f32 %v474_v54, %v213_v56  ;;  %v418_v61 = vadd.f32 %v417_v58, %v416_v57 }
 0x112   :  { %v476_v62 = vpop.f32.mrb[13].mxu1 }
 0x113   :  { %v477_v63 = vadd.f32 %v476_v62, %v475_v59  ;;  %v346_v0 = vmax.f32 %v323_v60, 0.0  ;;  %v218_v1 = vadd.f32 %v418_v61, %v871_v5  ;;  %v419_v2 = vpop.f32.mrb[14].mxu0 }
 0x114   :  { %v420_v3 = vpop.f32.mrb[15].mxu0 }
 0x115   :  { %v478_v4 = vpop.f32.mrb[14].mxu1  ;;  %356 = vst.msk [vmem:[%s920_s3 + $0x28] sm:$0xff] %vm350_vm0, %v346_v0  ;;  %v328_v6 = vadd.f32 %v477_v63, %v218_v1  ;;  %v421_v7 = vadd.f32 %v420_v3, %v419_v2 }
 0x116   :  { %v479_v8 = vpop.f32.mrb[15].mxu1 }
 0x117   :  { %v480_v9 = vadd.f32 %v479_v8, %v478_v4  ;;  %v347_v10 = vmax.f32 %v328_v6, 0.0  ;;  %v223_v11 = vadd.f32 %v421_v7, %v871_v5  ;;  %v422_v12 = vpop.f32.mrb[16].mxu0 }
 0x118   :  { %v423_v13 = vpop.f32.mrb[17].mxu0 }
 0x119   :  { %v481_v14 = vpop.f32.mrb[16].mxu1  ;;  %357 = vst.msk [vmem:[%s920_s3 + $0x30] sm:$0xff] %vm350_vm0, %v347_v10  ;;  %v333_v15 = vadd.f32 %v480_v9, %v223_v11  ;;  %v424_v16 = vadd.f32 %v423_v13, %v422_v12 }
 0x11a   :  { %v482_v17 = vpop.f32.mrb[17].mxu1 }
 0x11b   :  { %v483_v18 = vadd.f32 %v482_v17, %v481_v14  ;;  %v348_v19 = vmax.f32 %v333_v15, 0.0  ;;  %v228_v20 = vadd.f32 %v424_v16, %v871_v5 }
 0x11d   :  { %358 = vst.msk [vmem:[%s920_s3 + $0x38] sm:$0xff] %vm350_vm0, %v348_v19  ;;  %v338_v21 = vadd.f32 %v483_v18, %v228_v20 }
 0x11f   :  { %v349_v22 = vmax.f32 %v338_v21, 0.0 }
 0x121   :  { %360 = vst.msk [vmem:[%s920_s3 + $0x40] sm:$0x3f] %vm359_vm1, %v349_v22 }

// kernel: miniworld_forward.7
= control target key start
LH: loop header
LB: loop body
LE: loop exit
PB: predicated region body
PF: predicated region fallthrough
CT: control target
= control target key end

     0   :  { %v946_v43 = vmov 1983009808   ;;  %v172_v45 = vlaneseq  ;;  %s1431_s0 = inlined_call_operand.vmem [shape: f32[2,1120], index: 0, kind: input, shape index: {}]   ;;  %s1432_s1 = inlined_call_operand.vmem [shape: f32[1120,32], index: 1, kind: input, shape index: {}]   ;;  %s1433_s2 = inlined_call_operand.vmem [shape: f32[1,32], index: 2, kind: input, shape index: {}]   ;;  %s1434_s3 = inlined_call_operand.hbm [shape: f32[2,32], index: 3, kind: output, shape index: {}]  }
   0x1   :  { %v34_v0 = vld [vmem:[%s1432_s1 + $0x80] sm:$0xff]  ;;  %v35_v1 = vld [vmem:[%s1432_s1 + $0x88] sm:$0xff]  ;;  %v36_v11 = vld [vmem:[%s1432_s1 + $0x90] sm:$0xff]  ;;  %v170_v44 = vunpack.c.l.s4 %v946_v43 }
   0x2   :  { %v18_v2 = vld [vmem:[%s1432_s1] sm:$0xff]  ;;  %v769_v3 = vpack.c.bf16 %v35_v1, %v34_v0  ;;  %v19_v4 = vld [vmem:[%s1432_s1 + $0x8] sm:$0xff]  ;;  %v37_v13 = vld [vmem:[%s1432_s1 + $0x98] sm:$0xff]  ;;  %v173_v60 = vshrl.u32 %v172_v45, 7 }
   0x3   :  { %v66_v5 = vld [vmem:[%s1432_s1 + $0x180] sm:$0xff]  ;;  %v67_v6 = vld [vmem:[%s1432_s1 + $0x188] sm:$0xff]  ;;  %v771_v7 = vpack.c.bf16 %v19_v4, %v18_v2  ;;  %v20_v14 = vld [vmem:[%s1432_s1 + $0x10] sm:$0xff]  ;;  %v773_v16 = vpack.c.bf16 %v37_v13, %v36_v11  ;;  %v171_v59 = vunpack.c.0.s8 %v170_v44 }
   0x4   :  { %v801_v8 = vpack.c.bf16 %v67_v6, %v66_v5  ;;  %v50_v9 = vld [vmem:[%s1432_s1 + $0x100] sm:$0xff]  ;;  %v51_v10 = vld [vmem:[%s1432_s1 + $0x108] sm:$0xff]  ;;  %770 = vmatprep.subr.bf16.mxu0 %v769_v3  ;;  %v21_v15 = vld [vmem:[%s1432_s1 + $0x18] sm:$0xff] }
   0x5   :  { %v803_v12 = vpack.c.bf16 %v51_v10, %v50_v9  ;;  %772 = vmatpush3.bf16.msra.mxu0 %v771_v7  ;;  %v775_v17 = vpack.c.bf16 %v21_v15, %v20_v14  ;;  %v68_v18 = vld [vmem:[%s1432_s1 + $0x190] sm:$0xff]  ;;  %v69_v19 = vld [vmem:[%s1432_s1 + $0x198] sm:$0xff]  ;;  %v38_v23 = vld [vmem:[%s1432_s1 + $0xa0] sm:$0xff]  ;;  %v1115_v10 = vsub.s32 %v171_v59, %v173_v60 }
   0x6   :  { %802 = vmatprep.subr.bf16.mxu1 %v801_v8  ;;  %v52_v20 = vld [vmem:[%s1432_s1 + $0x110] sm:$0xff]  ;;  %v805_v21 = vpack.c.bf16 %v69_v19, %v68_v18  ;;  %v53_v22 = vld [vmem:[%s1432_s1 + $0x118] sm:$0xff]  ;;  %v39_v24 = vld [vmem:[%s1432_s1 + $0xa8] sm:$0xff]  ;;  %774 = vmatprep.subr.bf16.mxu0 %v773_v16 }
   0x7   :  { %804 = vmatpush3.bf16.msra.mxu1 %v803_v12  ;;  %v807_v25 = vpack.c.bf16 %v53_v22, %v52_v20  ;;  %v777_v26 = vpack.c.bf16 %v39_v24, %v38_v23  ;;  %v22_v27 = vld [vmem:[%s1432_s1 + $0x20] sm:$0xff]  ;;  %v23_v28 = vld [vmem:[%s1432_s1 + $0x28] sm:$0xff]  ;;  %v40_v35 = vld [vmem:[%s1432_s1 + $0xb0] sm:$0xff] }
   0x8   :  { %v70_v29 = vld [vmem:[%s1432_s1 + $0x1a0] sm:$0xff]  ;;  %806 = vmatprep.subr.bf16.mxu1 %v805_v21  ;;  %v71_v30 = vld [vmem:[%s1432_s1 + $0x1a8] sm:$0xff]  ;;  %v779_v33 = vpack.c.bf16 %v23_v28, %v22_v27  ;;  %v41_v36 = vld [vmem:[%s1432_s1 + $0xb8] sm:$0xff] }
   0x9   :  { %v54_v31 = vld [vmem:[%s1432_s1 + $0x120] sm:$0xff]  ;;  %v55_v32 = vld [vmem:[%s1432_s1 + $0x128] sm:$0xff]  ;;  %776 = vmatpush3.bf16.msra.mxu0 %v775_v17  ;;  %v809_v34 = vpack.c.bf16 %v71_v30, %v70_v29  ;;  %v24_v37 = vld [vmem:[%s1432_s1 + $0x30] sm:$0xff]  ;;  %v781_v39 = vpack.c.bf16 %v41_v36, %v40_v35 }
   0xa   :  { %778 = vmatprep.subr.bf16.mxu0 %v777_v26  ;;  %v811_v38 = vpack.c.bf16 %v55_v32, %v54_v31  ;;  %v25_v40 = vld [vmem:[%s1432_s1 + $0x38] sm:$0xff]  ;;  %v72_v41 = vld [vmem:[%s1432_s1 + $0x1b0] sm:$0xff]  ;;  %v42_v49 = vld [vmem:[%s1432_s1 + $0xc0] sm:$0xff] }
   0xb   :  { %808 = vmatpush3.bf16.msra.mxu1 %v807_v25  ;;  %v73_v42 = vld [vmem:[%s1432_s1 + $0x1b8] sm:$0xff]  ;;  %v56_v47 = vld [vmem:[%s1432_s1 + $0x130] sm:$0xff]  ;;  %v43_v50 = vld [vmem:[%s1432_s1 + $0xc8] sm:$0xff]  ;;  %v783_v51 = vpack.c.bf16 %v25_v40, %v24_v37 }
   0xc   :  { %810 = vmatprep.subr.bf16.mxu1 %v809_v34  ;;  %v813_v46 = vpack.c.bf16 %v73_v42, %v72_v41  ;;  %v57_v48 = vld [vmem:[%s1432_s1 + $0x138] sm:$0xff]  ;;  %v74_v52 = vld [vmem:[%s1432_s1 + $0x1c0] sm:$0xff]  ;;  %v75_v53 = vld [vmem:[%s1432_s1 + $0x1c8] sm:$0xff]  ;;  %v785_v55 = vpack.c.bf16 %v43_v50, %v42_v49 }
   0xd   :  { %780 = vmatpush3.bf16.msra.mxu0 %v779_v33  ;;  %v815_v54 = vpack.c.bf16 %v57_v48, %v56_v47  ;;  %v26_v56 = vld [vmem:[%s1432_s1 + $0x40] sm:$0xff]  ;;  %v27_v57 = vld [vmem:[%s1432_s1 + $0x48] sm:$0xff]  ;;  %v817_v61 = vpack.c.bf16 %v75_v53, %v74_v52  ;;  %v44_v63 = vld [vmem:[%s1432_s1 + $0xd0] sm:$0xff] }
   0xe   :  { %782 = vmatprep.subr.bf16.mxu0 %v781_v39  ;;  %v58_v58 = vld [vmem:[%s1432_s1 + $0x140] sm:$0xff]  ;;  %v59_v62 = vld [vmem:[%s1432_s1 + $0x148] sm:$0xff]  ;;  %v45_v0 = vld [vmem:[%s1432_s1 + $0xd8] sm:$0xff]  ;;  %v787_v3 = vpack.c.bf16 %v27_v57, %v26_v56 }
   0xf   :  { %812 = vmatpush3.bf16.msra.mxu1 %v811_v38  ;;  %v76_v1 = vld [vmem:[%s1432_s1 + $0x1d0] sm:$0xff]  ;;  %v77_v2 = vld [vmem:[%s1432_s1 + $0x1d8] sm:$0xff]  ;;  %v819_v5 = vpack.c.bf16 %v59_v62, %v58_v58  ;;  %v789_v6 = vpack.c.bf16 %v45_v0, %v44_v63  ;;  %v46_v12 = vld [vmem:[%s1432_s1 + $0xe0] sm:$0xff] }
  0x10   :  { %814 = vmatprep.subr.bf16.mxu1 %v813_v46  ;;  %v28_v4 = vld [vmem:[%s1432_s1 + $0x50] sm:$0xff]  ;;  %v29_v7 = vld [vmem:[%s1432_s1 + $0x58] sm:$0xff]  ;;  %v821_v11 = vpack.c.bf16 %v77_v2, %v76_v1  ;;  %v47_v13 = vld [vmem:[%s1432_s1 + $0xe8] sm:$0xff] }
  0x11   :  { %784 = vmatpush3.bf16.msra.mxu0 %v783_v51  ;;  %v60_v8 = vld [vmem:[%s1432_s1 + $0x150] sm:$0xff]  ;;  %v61_v9 = vld [vmem:[%s1432_s1 + $0x158] sm:$0xff]  ;;  %v78_v14 = vld [vmem:[%s1432_s1 + $0x1e0] sm:$0xff]  ;;  %v791_v16 = vpack.c.bf16 %v29_v7, %v28_v4  ;;  %v793_v19 = vpack.c.bf16 %v47_v13, %v46_v12 }
  0x12   :  { %786 = vmatprep.subr.bf16.mxu0 %v785_v55  ;;  %v79_v15 = vld [vmem:[%s1432_s1 + $0x1e8] sm:$0xff]  ;;  %v823_v17 = vpack.c.bf16 %v61_v9, %v60_v8  ;;  %v15_v18 = vld [vmem:[%s1431_s0] sm:$0xff]  ;;  %v48_v27 = vld [vmem:[%s1432_s1 + $0xf0] sm:$0xff] }
  0x13   :  { %816 = vmatpush3.bf16.msra.mxu1 %v815_v54  ;;  %v30_v20 = vld [vmem:[%s1432_s1 + $0x60] sm:$0xff]  ;;  %v31_v21 = vld [vmem:[%s1432_s1 + $0x68] sm:$0xff]  ;;  %v175_v23 = vrot.slane %v15_v18, %v1115_v10  ;;  %v168_v24 = vcombine.high %v15_v18, %v15_v18  ;;  %v825_v25 = vpack.c.bf16 %v79_v15, %v78_v14  ;;  %v49_v28 = vld [vmem:[%s1432_s1 + $0xf8] sm:$0xff] }
  0x14   :  { %818 = vmatprep.subr.bf16.mxu1 %v817_v61  ;;  %v62_v22 = vld [vmem:[%s1432_s1 + $0x160] sm:$0xff]  ;;  %v63_v26 = vld [vmem:[%s1432_s1 + $0x168] sm:$0xff]  ;;  %v80_v29 = vld [vmem:[%s1432_s1 + $0x1f0] sm:$0xff]  ;;  %v795_v33 = vpack.c.bf16 %v31_v21, %v30_v20  ;;  %v797_v35 = vpack.c.bf16 %v49_v28, %v48_v27 }
  0x15   :  { %788 = vmatpush3.bf16.msra.mxu0 %v787_v3  ;;  %v81_v30 = vld [vmem:[%s1432_s1 + $0x1f8] sm:$0xff]  ;;  %v183_v31 = vcombine.high %v175_v23, %v175_v23  ;;  %v182_v32 = vrot.slane %v168_v24, %v1115_v10  ;;  %v827_v34 = vpack.c.bf16 %v63_v26, %v62_v22  ;;  %v32_v36 = vld [vmem:[%s1432_s1 + $0x70] sm:$0xff]  ;;  %v98_v42 = vld [vmem:[%s1432_s1 + $0x280] sm:$0xff] }
  0x16   :  { %790 = vmatprep.subr.bf16.mxu0 %v789_v6  ;;  %v33_v37 = vld [vmem:[%s1432_s1 + $0x78] sm:$0xff]  ;;  %v64_v38 = vld [vmem:[%s1432_s1 + $0x170] sm:$0xff]  ;;  %v829_v40 = vpack.c.bf16 %v81_v30, %v80_v29  ;;  %v99_v43 = vld [vmem:[%s1432_s1 + $0x288] sm:$0xff] }
  0x17   :  { %820 = vmatpush3.bf16.msra.mxu1 %v819_v5  ;;  %v184_v39 = vcombine.high %v182_v32, %v182_v32  ;;  %284 = vmatprep.mubr.f32.mxu0 %v183_v31  ;;  %v65_v41 = vld [vmem:[%s1432_s1 + $0x178] sm:$0xff]  ;;  %v130_v44 = vld [vmem:[%s1432_s1 + $0x380] sm:$0xff]  ;;  %v131_v45 = vld [vmem:[%s1432_s1 + $0x388] sm:$0xff]  ;;  %v799_v46 = vpack.c.bf16 %v33_v37, %v32_v36  ;;  %v833_v48 = vpack.c.bf16 %v99_v43, %v98_v42 }
  0x18   :  { %822 = vmatprep.subr.bf16.mxu1 %v821_v11  ;;  %v831_v47 = vpack.c.bf16 %v65_v41, %v64_v38  ;;  %v82_v49 = vld [vmem:[%s1432_s1 + $0x200] sm:$0xff]  ;;  %v83_v50 = vld [vmem:[%s1432_s1 + $0x208] sm:$0xff]  ;;  %v865_v52 = vpack.c.bf16 %v131_v45, %v130_v44  ;;  %v100_v54 = vld [vmem:[%s1432_s1 + $0x290] sm:$0xff] }
  0x19   :  { %792 = vmatpush3.bf16.msra.mxu0 %v791_v16  ;;  %354 = vmatprep.mubr.f32.mxu1 %v184_v39  ;;  %v114_v51 = vld [vmem:[%s1432_s1 + $0x300] sm:$0xff]  ;;  %v115_v53 = vld [vmem:[%s1432_s1 + $0x308] sm:$0xff]  ;;  %v101_v55 = vld [vmem:[%s1432_s1 + $0x298] sm:$0xff]  ;;  %v835_v58 = vpack.c.bf16 %v83_v50, %v82_v49 }
  0x1a   :  { %794 = vmatprep.subr.bf16.mxu0 %v793_v19  ;;  %v132_v56 = vld [vmem:[%s1432_s1 + $0x390] sm:$0xff]  ;;  %v133_v57 = vld [vmem:[%s1432_s1 + $0x398] sm:$0xff]  ;;  %v867_v59 = vpack.c.bf16 %v115_v53, %v114_v51  ;;  %v837_v60 = vpack.c.bf16 %v101_v55, %v100_v54  ;;  %v102_v2 = vld [vmem:[%s1432_s1 + $0x2a0] sm:$0xff] }
  0x1b   :  { %824 = vmatpush3.bf16.msra.mxu1 %v823_v17  ;;  %v84_v61 = vld [vmem:[%s1432_s1 + $0x210] sm:$0xff]  ;;  %v85_v62 = vld [vmem:[%s1432_s1 + $0x218] sm:$0xff]  ;;  %v869_v0 = vpack.c.bf16 %v133_v57, %v132_v56  ;;  %v103_v3 = vld [vmem:[%s1432_s1 + $0x2a8] sm:$0xff] }
  0x1c   :  { %826 = vmatprep.subr.bf16.mxu1 %v825_v25  ;;  %v116_v63 = vld [vmem:[%s1432_s1 + $0x310] sm:$0xff]  ;;  %v117_v1 = vld [vmem:[%s1432_s1 + $0x318] sm:$0xff]  ;;  %v134_v4 = vld [vmem:[%s1432_s1 + $0x3a0] sm:$0xff]  ;;  %v839_v6 = vpack.c.bf16 %v85_v62, %v84_v61  ;;  %v841_v8 = vpack.c.bf16 %v103_v3, %v102_v2 }
  0x1d   :  { %796 = vmatpush3.bf16.msra.mxu0 %v795_v33  ;;  %v135_v5 = vld [vmem:[%s1432_s1 + $0x3a8] sm:$0xff]  ;;  %v871_v7 = vpack.c.bf16 %v117_v1, %v116_v63  ;;  %v86_v9 = vld [vmem:[%s1432_s1 + $0x220] sm:$0xff]  ;;  %v104_v15 = vld [vmem:[%s1432_s1 + $0x2b0] sm:$0xff] }
  0x1e   :  { %798 = vmatprep.subr.bf16.mxu0 %v797_v35  ;;  %v87_v11 = vld [vmem:[%s1432_s1 + $0x228] sm:$0xff]  ;;  %v118_v12 = vld [vmem:[%s1432_s1 + $0x320] sm:$0xff]  ;;  %v873_v13 = vpack.c.bf16 %v135_v5, %v134_v4  ;;  %v105_v16 = vld [vmem:[%s1432_s1 + $0x2b8] sm:$0xff] }
  0x1f   :  { %828 = vmatpush3.bf16.msra.mxu1 %v827_v34  ;;  %v119_v14 = vld [vmem:[%s1432_s1 + $0x328] sm:$0xff]  ;;  %v136_v17 = vld [vmem:[%s1432_s1 + $0x3b0] sm:$0xff]  ;;  %v137_v18 = vld [vmem:[%s1432_s1 + $0x3b8] sm:$0xff]  ;;  %v843_v19 = vpack.c.bf16 %v87_v11, %v86_v9  ;;  %v845_v22 = vpack.c.bf16 %v105_v16, %v104_v15 }
  0x20   :  { %830 = vmatprep.subr.bf16.mxu1 %v829_v40  ;;  %v88_v20 = vld [vmem:[%s1432_s1 + $0x230] sm:$0xff]  ;;  %v875_v21 = vpack.c.bf16 %v119_v14, %v118_v12  ;;  %v121_v25 = vld [vmem:[%s1432_s1 + $0x338] sm:$0xff]  ;;  %v877_v26 = vpack.c.bf16 %v137_v18, %v136_v17  ;;  %v106_v27 = vld [vmem:[%s1432_s1 + $0x2c0] sm:$0xff] }
  0x21   :  { %800 = vmatpush3.bf16.msra.mxu0 %v799_v46  ;;  %v120_v24 = vld [vmem:[%s1432_s1 + $0x330] sm:$0xff]  ;;  %v107_v28 = vld [vmem:[%s1432_s1 + $0x2c8] sm:$0xff]  ;;  %v138_v30 = vld [vmem:[%s1432_s1 + $0x3c0] sm:$0xff] }
  0x22   :  { %834 = vmatprep.subr.bf16.mxu0 %v833_v48  ;;  %v16_v29 = vld [vmem:[%s1431_s0 + $0x8] sm:$0xff]  ;;  %v879_v35 = vpack.c.bf16 %v121_v25, %v120_v24  ;;  %v849_v36 = vpack.c.bf16 %v107_v28, %v106_v27  ;;  %v90_v37 = vld [vmem:[%s1432_s1 + $0x240] sm:$0xff]  ;;  %v108_v44 = vld [vmem:[%s1432_s1 + $0x2d0] sm:$0xff] }
  0x23   :  { %832 = vmatpush3.bf16.msra.mxu1 %v831_v47  ;;  %v139_v31 = vld [vmem:[%s1432_s1 + $0x3c8] sm:$0xff]  ;;  %v185_v33 = vcombine.high %v16_v29, %v16_v29  ;;  %v122_v39 = vld [vmem:[%s1432_s1 + $0x340] sm:$0xff]  ;;  %v109_v45 = vld [vmem:[%s1432_s1 + $0x2d8] sm:$0xff] }
  0x24   :  { %866 = vmatprep.subr.bf16.mxu1 %v865_v52  ;;  %285 = vmatmul.mubr.f32.vlgmr.msra.gmra.mrb[0].mxu0 %v175_v23  ;;  %v89_v23 = vld [vmem:[%s1432_s1 + $0x238] sm:$0xff]  ;;  %v91_v38 = vld [vmem:[%s1432_s1 + $0x248] sm:$0xff]  ;;  %v881_v42 = vpack.c.bf16 %v139_v31, %v138_v30  ;;  %v140_v46 = vld [vmem:[%s1432_s1 + $0x3d0] sm:$0xff] }
  0x25   :  { %836 = vmatpush3.bf16.msra.mxu0 %v835_v58  ;;  %v847_v34 = vpack.c.bf16 %v89_v23, %v88_v20  ;;  %v1296_v41 = vrot.slane %v185_v33, %v1115_v10  ;;  %v123_v43 = vld [vmem:[%s1432_s1 + $0x348] sm:$0xff]  ;;  %v851_v48 = vpack.c.bf16 %v91_v38, %v90_v37 }
  0x26   :  { %355 = vmatmul.mubr.f32.vlgmr.msra.gmra.mrb[0].mxu1 %v182_v32  ;;  %838 = vmatprep.subr.bf16.mxu0 %v837_v60  ;;  %v1282_v32 = vrot.slane %v16_v29, %v1115_v10  ;;  %v141_v10 = vld [vmem:[%s1432_s1 + $0x3d8] sm:$0xff] }
  0x27   :  { %868 = vmatpush3.bf16.msra.mxu1 %v867_v59  ;;  %v201_v47 = vcombine.high %v1296_v41, %v1296_v41 }
  0x28   :  { %870 = vmatprep.subr.bf16.mxu1 %v869_v0  ;;  %v200_v40 = vcombine.high %v1282_v32, %v1282_v32 }
  0x29   :  { %840 = vmatpush3.bf16.msra.mxu0 %v839_v6 }
  0x2a   :  { %842 = vmatprep.subr.bf16.mxu0 %v841_v8  ;;  %424 = vmatprep.mubr.f32.mxu0 %v200_v40 }
  0x2b   :  { %872 = vmatpush3.bf16.msra.mxu1 %v871_v7 }
  0x2c   :  { %874 = vmatprep.subr.bf16.mxu1 %v873_v13 }
  0x2d   :  { %844 = vmatpush3.bf16.msra.mxu0 %v843_v19 }
  0x2e   :  { %846 = vmatprep.subr.bf16.mxu0 %v845_v22 }
  0x2f   :  { %876 = vmatpush3.bf16.msra.mxu1 %v875_v21 }
  0x30   :  { %878 = vmatprep.subr.bf16.mxu1 %v877_v26 }
  0x31   :  { %848 = vmatpush3.bf16.msra.mxu0 %v847_v34 }
  0x32   :  { %8 = vsyncpa [#allocation3], 0  ;;  %850 = vmatprep.subr.bf16.mxu0 %v849_v36  ;;  %v883_v49 = vpack.c.bf16 %v123_v43, %v122_v39  ;;  %v853_v50 = vpack.c.bf16 %v109_v45, %v108_v44  ;;  %v92_v51 = vld [vmem:[%s1432_s1 + $0x250] sm:$0xff]  ;;  %v93_v52 = vld [vmem:[%s1432_s1 + $0x258] sm:$0xff]  ;;  %v885_v54 = vpack.c.bf16 %v141_v10, %v140_v46  ;;  %494 = vmatprep.mubr.f32.mxu1 %v201_v47  ;;  %v947_v22 = vmov 0.0|0.0  }
  0x33   :  { %880 = vmatpush3.bf16.msra.mxu1 %v879_v35  ;;  %v124_v53 = vld [vmem:[%s1432_s1 + $0x350] sm:$0xff]  ;;  %v125_v55 = vld [vmem:[%s1432_s1 + $0x358] sm:$0xff]  ;;  %v110_v56 = vld [vmem:[%s1432_s1 + $0x2e0] sm:$0xff]  ;;  %v855_v60 = vpack.c.bf16 %v93_v52, %v92_v51  ;;  %vm948_vm0 = vmmov 0   ;;  %v949_v28 = vmov 0.0   ;;  %vm217_vm1 = vcmask 785408  }
  0x34   :  { %882 = vmatprep.subr.bf16.mxu1 %v881_v42  ;;  %v111_v57 = vld [vmem:[%s1432_s1 + $0x2e8] sm:$0xff]  ;;  %v142_v58 = vld [vmem:[%s1432_s1 + $0x3e0] sm:$0xff]  ;;  %v887_v61 = vpack.c.bf16 %v125_v55, %v124_v53  ;;  %v112_v4 = vld [vmem:[%s1432_s1 + $0x2f0] sm:$0xff]  ;;  %vm570_vm2 = vcmask 254976  }
  0x35   :  { %v143_v59 = vld [vmem:[%s1432_s1 + $0x3e8] sm:$0xff]  ;;  %852 = vmatpush3.bf16.msra.mxu0 %v851_v48  ;;  %v857_v62 = vpack.c.bf16 %v111_v57, %v110_v56  ;;  %v94_v63 = vld [vmem:[%s1432_s1 + $0x260] sm:$0xff]  ;;  %v113_v5 = vld [vmem:[%s1432_s1 + $0x2f8] sm:$0xff] }
  0x36   :  { %854 = vmatprep.subr.bf16.mxu0 %v853_v50  ;;  %v95_v0 = vld [vmem:[%s1432_s1 + $0x268] sm:$0xff]  ;;  %v126_v1 = vld [vmem:[%s1432_s1 + $0x360] sm:$0xff]  ;;  %v889_v2 = vpack.c.bf16 %v143_v59, %v142_v58  ;;  %v144_v6 = vld [vmem:[%s1432_s1 + $0x3f0] sm:$0xff]  ;;  %v861_v11 = vpack.c.bf16 %v113_v5, %v112_v4 }
  0x37   :  { %884 = vmatpush3.bf16.msra.mxu1 %v883_v49  ;;  %v127_v3 = vld [vmem:[%s1432_s1 + $0x368] sm:$0xff]  ;;  %v145_v7 = vld [vmem:[%s1432_s1 + $0x3f8] sm:$0xff]  ;;  %v859_v8 = vpack.c.bf16 %v95_v0, %v94_v63  ;;  %v96_v12 = vld [vmem:[%s1432_s1 + $0x270] sm:$0xff] }
  0x38   :  { %886 = vmatprep.subr.bf16.mxu1 %v885_v54  ;;  %v891_v9 = vpack.c.bf16 %v127_v3, %v126_v1  ;;  %v97_v13 = vld [vmem:[%s1432_s1 + $0x278] sm:$0xff]  ;;  %v893_v14 = vpack.c.bf16 %v145_v7, %v144_v6  ;;  %v128_v15 = vld [vmem:[%s1432_s1 + $0x370] sm:$0xff]  ;;  %v146_v19 = vld [vmem:[%s1432_s1 + $0x400] sm:$0xff] }
  0x39   :  { %856 = vmatpush3.bf16.msra.mxu0 %v855_v60  ;;  %v129_v16 = vld [vmem:[%s1432_s1 + $0x378] sm:$0xff]  ;;  %v863_v17 = vpack.c.bf16 %v97_v13, %v96_v12  ;;  %v147_v20 = vld [vmem:[%s1432_s1 + $0x408] sm:$0xff]  ;;  %v148_v23 = vld [vmem:[%s1432_s1 + $0x410] sm:$0xff] }
  0x3a   :  { %858 = vmatprep.subr.bf16.mxu0 %v857_v62  ;;  %v895_v18 = vpack.c.bf16 %v129_v16, %v128_v15  ;;  %v898_v21 = vpack.c.bf16 %v147_v20, %v146_v19  ;;  %v149_v24 = vld [vmem:[%s1432_s1 + $0x418] sm:$0xff]  ;;  %v150_v26 = vld [vmem:[%s1432_s1 + $0x420] sm:$0xff]  ;;  %v151_v27 = vld [vmem:[%s1432_s1 + $0x428] sm:$0xff] }
  0x3b   :  { %888 = vmatpush3.bf16.msra.mxu1 %v887_v61  ;;  %v901_v25 = vpack.c.bf16 %v149_v24, %v148_v23  ;;  %v904_v29 = vpack.c.bf16 %v151_v27, %v150_v26  ;;  %v152_v30 = vld [vmem:[%s1432_s1 + $0x430] sm:$0xff]  ;;  %v153_v31 = vld [vmem:[%s1432_s1 + $0x438] sm:$0xff]  ;;  %v154_v33 = vld [vmem:[%s1432_s1 + $0x440] sm:$0xff] }
  0x3c   :  { %890 = vmatprep.subr.bf16.mxu1 %v889_v2  ;;  %v155_v34 = vld [vmem:[%s1432_s1 + $0x448] sm:$0xff]  ;;  %v156_v36 = vld [vmem:[%s1432_s1 + $0x450] sm:$0xff]  ;;  %v157_v37 = vld [vmem:[%s1432_s1 + $0x458] sm:$0xff] }
  0x3d   :  { %860 = vmatpush3.bf16.msra.mxu0 %v859_v8  ;;  %v910_v35 = vpack.c.bf16 %v155_v34, %v154_v33  ;;  %v913_v38 = vpack.c.bf16 %v157_v37, %v156_v36  ;;  %v587_v39 = vld.sshfl [vmem:[%s1431_s0 + $0x10] sm:$0x3 pattern:$0x76325410]  ;;  %s950_s0 = smov [#allocation2]  }
  0x3e   :  { %862 = vmatprep.subr.bf16.mxu0 %v861_v11  ;;  %s578_s1 = sshll.u32 %s950_s0, 4  ;;  %s579_s1 = int_to_ptr.vmem [resolvable:$true] %s578_s1 }
  0x3f   :  { %892 = vmatpush3.bf16.msra.mxu1 %v891_v9  ;;  %p927_p1 = scmp.lt.s32.totalorder %s579_s1, %s579_s1 }
  0x40   :  { %894 = vmatprep.subr.bf16.mxu1 %v893_v14 }
  0x41   :  { %864 = vmatpush3.bf16.msra.mxu0 %v863_v17 }
  0x42   :  { %897 = vmatprep.subr.bf16.mxu0 %v947_v22 }
  0x43   :  { %896 = vmatpush3.bf16.msra.mxu1 %v895_v18 }
  0x44   :  { %425 = vmatmul.mubr.f32.vlgmr.msra.gmra.mrb[2].mxu0 %v1282_v32  ;;  %v907_v32 = vpack.c.bf16 %v153_v31, %v152_v30 }
  0x45   :  { %899 = vmatpush3.bf16.msra.mxu0 %v898_v21  ;;  %766 = vmatprep.mubr.msk.f32.mxu0 %vm948_vm0, %v949_v28 }
  0x46   :  { %495 = vmatmul.mubr.f32.vlgmr.msra.gmra.mrb[2].mxu1 %v1296_v41  ;;  %900 = vmatprep.subr.bf16.mxu0 %v947_v22  ;;  %v586_v41 = vld [vmem:[%s1433_s2] ss:$0 sm:$0xff]  ;;  %s922_s2 = scalar_lea.vmem %s579_s1, 32 }
  0x47   :  { %p923_p0 = scmp.ne.s32.totalorder %s579_s1, %s922_s2  ;;  %p928_p2 = scmp.lt.s32.totalorder %s922_s2, %s922_s2 }
  0x49   :  { %902 = vmatpush3.bf16.msra.mxu0 %v901_v25  ;;  %p929_p3 = por %p928_p2, %p927_p1 }
  0x4a   :  { %903 = vmatprep.subr.bf16.mxu0 %v947_v22 }
  0x4b   :  { %p930_p4 = pnand %p929_p3, %p923_p0 }
  0x4d   :  { %905 = vmatpush3.bf16.msra.mxu0 %v904_v29 }
  0x4e   :  { %906 = vmatprep.subr.bf16.mxu0 %v947_v22 }
  0x51   :  { %908 = vmatpush3.bf16.msra.mxu0 %v907_v32 }
  0x52   :  { %909 = vmatprep.subr.bf16.mxu0 %v947_v22 }
  0x55   :  { %911 = vmatpush3.bf16.msra.mxu0 %v910_v35 }
  0x56   :  { %912 = vmatprep.subr.bf16.mxu0 %v947_v22 }
  0x59   :  { %914 = vmatpush3.bf16.msra.mxu0 %v913_v38 }
  0x5c   :  { %767 = vmatmul.mubr.msk.f32.vlgmr.msra.gmra.mrb[4].mxu0 %vm217_vm1, %v587_v39 }
  0xf7   :  { %v621_v40 = vpop.f32.mrb[0].mxu0 }
  0xf8   :  { %v622_v42 = vpop.f32.mrb[1].mxu0 }
  0xf9   :  { %v656_v43 = vpop.f32.mrb[0].mxu1  ;;  %v623_v44 = vadd.f32 %v622_v42, %v621_v40 }
  0xfa   :  { %v657_v45 = vpop.f32.mrb[1].mxu1 }
  0xfb   :  { %v658_v46 = vadd.f32 %v657_v45, %v656_v43  ;;  %v287_v10 = vadd.f32 %v623_v44, %v586_v41 }
  0xfd   :  { %v357_v47 = vadd.f32 %v658_v46, %v287_v10 }
 0x117   :  { %v691_v48 = vpop.f32.mrb[2].mxu0 }
 0x118   :  { %v692_v49 = vpop.f32.mrb[3].mxu0 }
 0x119   :  { %v726_v50 = vpop.f32.mrb[2].mxu1  ;;  %v693_v51 = vadd.f32 %v692_v49, %v691_v48 }
 0x11a   :  { %v727_v52 = vpop.f32.mrb[3].mxu1 }
 0x11b   :  { %v728_v53 = vadd.f32 %v727_v52, %v726_v50  ;;  %v427_v54 = vadd.f32 %v693_v51, %v357_v47 }
 0x11d   :  { %v497_v55 = vadd.f32 %v728_v53, %v427_v54 }
 0x12f   :  { %v566_v56 = vpop.f32.mrb[4].mxu0 }
 0x130   :  { %v567_v57 = vadd.f32 %v566_v56, %v497_v55  ;;  %v768_v58 = vpop.f32.mrb[5].mxu0 }
 0x132   :  { %571 = vst.msk [vmem:[#allocation2] sm:$0x3] %vm570_vm2, %v567_v57 }
 0x133   :  { %933 = shalt.err (!%p930_p4)
}
 0x134   :  { %s934_s5 = scalar_lea.hbm %s1434_s3, 32 }
 0x135   :  { %p935_p5 = scmp.ne.s32.totalorder %s1434_s3, %s934_s5  ;;  %p938_p6 = scmp.lt.u32.totalorder %s934_s5, %s1434_s3 }
 0x137   :  { %p940_p7 = pnand %p938_p6, %p935_p5 }
 0x139   :  { %943 = shalt.err (!%p940_p7)
}
 0x13a   :  { %581 = dma.vmem_to_hbm [thread:$0]  %s579_s1, 32, %s1434_s3, [#allocation3]  }
 0x13b   :  { %944 = dma.done.wait [#allocation3], 32  }
 0x13c   :  { %945 = vsyncadd [#allocation3], 4294967264 }
 0x13d   :  { %585 = vsyncpa [#allocation3], 1 }

</bundles_post_ra>
